<compile_context>
chip_gen: v6e
topology: v6e:2x2x1
jax: 0.10.0
libtpu: 0.0.40
codegen_flags: <defaults>
</compile_context>

<pallas_src>
import functools

import jax
import jax.numpy as jnp
from jax.experimental import pallas as pl
from jax.experimental.pallas import tpu as pltpu


def _double_conv_kernel(xm_ref, xt_ref, w1_ref, w2_ref, s1_ref, b1_ref,
                        s2_ref, b2_ref, out_ref, acc1_ref, acc2_ref,
                        *, block_rows, H, W, Cin, Cmid, Cout):
    """Fused (conv3x3 -> BN -> ReLU) x2 for one (image, row-block) tile.

    xm_ref : (1, block_rows, W+4, Cin)  padded-input rows [r0, r0+block_rows)
    xt_ref : (1, 4, W+4, Cin)           padded-input rows [r0+BR, r0+BR+4)
    w1_ref : (9, Cin, Cmid)   conv1 taps, ordered dy*3+dx
    w2_ref : (9, Cmid, Cout)  conv2 taps
    s*_ref, b*_ref : (1, C)   folded BatchNorm scale / bias (f32)
    out_ref: (1, block_rows, W, Cout)
    acc1_ref / acc2_ref : f32 VMEM accumulators
    """
    r0 = pl.program_id(1) * block_rows          # first output row of this tile

    # Padded input window: original rows r0-2 .. r0+block_rows+1, all W+4 cols.
    xwin = jnp.concatenate([xm_ref[0], xt_ref[0]], axis=0)   # (BR+4, W+4, Cin)

    # ---------- conv1 (3x3, pad=1, no bias) + BN1 + ReLU ----------
    # Computed on a (BR+2, W+2) window so conv2 has its 1-pixel halo in VMEM.
    R1, C1 = block_rows + 2, W + 2
    acc1_ref[...] = jnp.zeros_like(acc1_ref)
    for dy in range(3):
        for dx in range(3):
            xs = xwin[dy:dy + R1, dx:dx + C1, :].reshape(R1 * C1, Cin)
            acc1_ref[...] += jnp.dot(xs, w1_ref[dy * 3 + dx],
                                     preferred_element_type=jnp.float32)
    y1 = jnp.maximum(acc1_ref[...] * s1_ref[...] + b1_ref[...], 0.0)
    y1 = y1.reshape(R1, C1, Cmid)

    # Intermediate rows/cols outside the real image are exactly conv2's zero
    # padding -> mask them (conv1 above computed garbage there from the extra
    # input padding).
    row = jax.lax.broadcasted_iota(jnp.int32, (R1, C1, Cmid), 0) + (r0 - 1)
    col = jax.lax.broadcasted_iota(jnp.int32, (R1, C1, Cmid), 1)
    valid = (row >= 0) & (row < H) & (col >= 1) & (col <= W)
    y1 = jnp.where(valid, y1, 0.0).astype(xwin.dtype)        # bf16 for the MXU

    # ---------- conv2 (3x3, pad=1, no bias) + BN2 + ReLU ----------
    acc2_ref[...] = jnp.zeros_like(acc2_ref)
    for dy in range(3):
        for dx in range(3):
            ys = y1[dy:dy + block_rows, dx:dx + W, :].reshape(block_rows * W, Cmid)
            acc2_ref[...] += jnp.dot(ys, w2_ref[dy * 3 + dx],
                                     preferred_element_type=jnp.float32)
    y2 = jnp.maximum(acc2_ref[...] * s2_ref[...] + b2_ref[...], 0.0)
    out_ref[...] = y2.reshape(1, block_rows, W, Cout).astype(out_ref.dtype)


def fold_bn(gamma, beta, mean, var, eps=1e-5):
    scale = (gamma / jnp.sqrt(var + eps)).astype(jnp.float32)
    bias = (beta - mean * scale).astype(jnp.float32)
    return scale.reshape(1, -1), bias.reshape(1, -1)


def _pick_block_rows(H, W, cin, cmid, cout, requested=None,
                     vmem_budget_bytes=6 * 1024 * 1024):
    """Pick the row-block size: multiple of 4, divides H, modest VMEM footprint."""
    def ok(t):
        return 4 <= t <= H and t % 4 == 0 and H % t == 0

    if requested is not None:
        if not ok(requested):
            raise ValueError(
                f"block_rows={requested} must be a multiple of 4 dividing H={H}")
        return requested
    cands = [t for t in range(4, H + 1) if ok(t)]
    if not cands:
        raise ValueError(f"H={H} must be a multiple of 4 (and >= 4)")

    def footprint(t):
        x_in = 2 * (t + 4) * (W + 4) * cin * 2        # double-buffered bf16 input
        inter = (t + 2) * (W + 2) * cmid * (4 + 2)    # f32 acc1 + bf16 intermediate
        acc2 = t * W * cout * 4
        out = 2 * t * W * cout * 4                    # double-buffered f32 output
        return x_in + inter + acc2 + out

    fitting = [t for t in cands if footprint(t) <= vmem_budget_bytes]
    return max(fitting) if fitting else min(cands)


def double_conv_forward(x_nchw, params, *, block_rows=None,
                        compute_dtype=jnp.bfloat16):
    """DoubleConv forward (inference).  Input/output are NCHW to match PyTorch."""
    N, Cin, H, W = x_nchw.shape
    w1, w2 = params["w1"], params["w2"]            # (9, Cin, Cmid), (9, Cmid, Cout)
    Cmid, Cout = w1.shape[2], w2.shape[2]
    TH = _pick_block_rows(H, W, Cin, Cmid, Cout, requested=block_rows)

    # NCHW -> NHWC, cast to bf16, zero-pad H/W by 2.  XLA fuses these into one
    # pass over the input (the transpose is forced by the NCHW API anyway).
    x = jnp.transpose(x_nchw, (0, 2, 3, 1)).astype(compute_dtype)
    xp = jnp.pad(x, ((0, 0), (2, 2), (2, 2), (0, 0)))

    s1, b1 = fold_bn(params["bn1_gamma"], params["bn1_beta"],
                     params["bn1_mean"], params["bn1_var"])
    s2, b2 = fold_bn(params["bn2_gamma"], params["bn2_beta"],
                     params["bn2_mean"], params["bn2_var"])

    kern = functools.partial(_double_conv_kernel, block_rows=TH, H=H, W=W,
                             Cin=Cin, Cmid=Cmid, Cout=Cout)
    out_nhwc = pl.pallas_call(
        kern,
        out_shape=jax.ShapeDtypeStruct((N, H, W, Cout), jnp.float32),
        grid=(N, H // TH),
        in_specs=[
            # main rows [h*TH, h*TH+TH) of the padded input
            pl.BlockSpec((1, TH, W + 4, Cin), lambda n, h: (n, h, 0, 0)),
            # 4 tail rows [h*TH+TH, h*TH+TH+4) of the padded input (row halo)
            pl.BlockSpec((1, 4, W + 4, Cin),
                         lambda n, h: (n, (h + 1) * (TH // 4), 0, 0)),
            pl.BlockSpec((9, Cin, Cmid), lambda n, h: (0, 0, 0)),
            pl.BlockSpec((9, Cmid, Cout), lambda n, h: (0, 0, 0)),
            pl.BlockSpec((1, Cmid), lambda n, h: (0, 0)),
            pl.BlockSpec((1, Cmid), lambda n, h: (0, 0)),
            pl.BlockSpec((1, Cout), lambda n, h: (0, 0)),
            pl.BlockSpec((1, Cout), lambda n, h: (0, 0)),
        ],
        out_specs=pl.BlockSpec((1, TH, W, Cout), lambda n, h: (n, h, 0, 0)),
        scratch_shapes=[
            pltpu.VMEM(((TH + 2) * (W + 2), Cmid), jnp.float32),
            pltpu.VMEM((TH * W, Cout), jnp.float32),
        ],
        compiler_params=pltpu.CompilerParams(
            dimension_semantics=("parallel", "parallel"),
            vmem_limit_bytes=64 * 1024 * 1024,
        ),
    )(xp, xp,
      w1.astype(compute_dtype), w2.astype(compute_dtype), s1, b1, s2, b2)
    return jnp.transpose(out_nhwc, (0, 3, 1, 2))              # NHWC -> NCHW


def make_params(key, in_channels, out_channels):
    ks = jax.random.split(key, 10)

    # PyTorch Conv2d weights are OIHW; convert once at init to the kernel-ready
    # tap-major (9, Cin, Cout) layout (taps ordered dy*3+dx).
    def to_taps(w_oihw):
        hwio = jnp.transpose(w_oihw, (2, 3, 1, 0))            # (3, 3, Cin, Cout)
        return hwio.reshape(9, hwio.shape[2], hwio.shape[3])

    w1_oihw = jax.random.normal(ks[0], (out_channels, in_channels, 3, 3),
                                jnp.float32) * 0.1
    w2_oihw = jax.random.normal(ks[1], (out_channels, out_channels, 3, 3),
                                jnp.float32) * 0.1
    return {
        "w1": to_taps(w1_oihw),
        "w2": to_taps(w2_oihw),
        "bn1_gamma": 0.5 + jax.random.uniform(ks[2], (out_channels,), jnp.float32),
        "bn1_beta": jax.random.normal(ks[3], (out_channels,), jnp.float32) * 0.1,
        "bn1_mean": jax.random.normal(ks[4], (out_channels,), jnp.float32) * 0.1,
        "bn1_var": 0.5 + jax.random.uniform(ks[5], (out_channels,), jnp.float32),
        "bn2_gamma": 0.5 + jax.random.uniform(ks[6], (out_channels,), jnp.float32),
        "bn2_beta": jax.random.normal(ks[7], (out_channels,), jnp.float32) * 0.1,
        "bn2_mean": jax.random.normal(ks[8], (out_channels,), jnp.float32) * 0.1,
        "bn2_var": 0.5 + jax.random.uniform(ks[9], (out_channels,), jnp.float32),
    }


def _reference_double_conv(x_nchw, params, compute_dtype=jnp.bfloat16):
    """Pure-JAX (lax.conv) reference with the same bf16-matmul / f32-accumulate
    numerics as the kernel."""
    _, cin, _, _ = x_nchw.shape
    cmid, cout = params["w1"].shape[2], params["w2"].shape[2]
    w1 = params["w1"].reshape(3, 3, cin, cmid).astype(compute_dtype)
    w2 = params["w2"].reshape(3, 3, cmid, cout).astype(compute_dtype)
    s1, b1 = fold_bn(params["bn1_gamma"], params["bn1_beta"],
                     params["bn1_mean"], params["bn1_var"])
    s2, b2 = fold_bn(params["bn2_gamma"], params["bn2_beta"],
                     params["bn2_mean"], params["bn2_var"])

    def block(x, w, s, b):
        y = jax.lax.conv_general_dilated(
            x, w, window_strides=(1, 1), padding="SAME",
            dimension_numbers=("NHWC", "HWIO", "NHWC"),
            preferred_element_type=jnp.float32)
        return jnp.maximum(y * s + b, 0.0)

    x = jnp.transpose(x_nchw, (0, 2, 3, 1)).astype(compute_dtype)
    y = block(x, w1, s1, b1)
    y = block(y.astype(compute_dtype), w2, s2, b2)
    return jnp.transpose(y, (0, 3, 1, 2))


if __name__ == "__main__":
    key = jax.random.PRNGKey(0)
    k_x, k_p = jax.random.split(key)

    N, C_in, C_out, H, W = 2, 4, 8, 16, 16
    x = jax.random.normal(k_x, (N, C_in, H, W), jnp.float32)
    params = make_params(k_p, C_in, C_out)

    # Forced 4-row blocks: exercises border + interior halo tiles (grid (2, 4)).
    fwd_tiled = jax.jit(functools.partial(double_conv_forward, block_rows=4))
    out = jax.block_until_ready(fwd_tiled(x, params))

    # Auto-picked block size (single row-block per image for this toy shape).
    fwd_auto = jax.jit(double_conv_forward)
    out_auto = jax.block_until_ready(fwd_auto(x, params))

    ref = _reference_double_conv(x, params)
    assert out.shape == (N, C_out, H, W), out.shape
    assert out_auto.shape == (N, C_out, H, W), out_auto.shape
    assert jnp.allclose(out, ref, rtol=2e-2, atol=2e-2), "mismatch vs reference"
    assert jnp.allclose(out_auto, ref, rtol=2e-2, atol=2e-2), "mismatch vs reference"

    print("KERNEL_OK")
</pallas_src>

<mosaic_0001>
module attributes {stable_mosaic.version = 11 : i64} {
  func.func @_double_conv_kernel(%arg0: i32, %arg1: i32, %arg2: memref<1x4x20x4xbf16, #tpu.memory_space<vmem>>, %arg3: memref<1x4x20x4xbf16, #tpu.memory_space<vmem>>, %arg4: memref<9x4x8xbf16, #tpu.memory_space<vmem>>, %arg5: memref<9x8x8xbf16, #tpu.memory_space<vmem>>, %arg6: memref<1x8xf32, #tpu.memory_space<vmem>>, %arg7: memref<1x8xf32, #tpu.memory_space<vmem>>, %arg8: memref<1x8xf32, #tpu.memory_space<vmem>>, %arg9: memref<1x8xf32, #tpu.memory_space<vmem>>, %arg10: memref<1x4x16x8xf32, #tpu.memory_space<vmem>>, %arg11: memref<108x8xf32, #tpu.memory_space<vmem>>, %arg12: memref<64x8xf32, #tpu.memory_space<vmem>>) attributes {dimension_semantics = [#tpu.dimension_semantics<parallel>, #tpu.dimension_semantics<parallel>], iteration_bounds = array<i64: 2, 4>, scalar_prefetch = 0 : i64, scratch_operands = 2 : i64, tpu.core_type = #tpu.core_type<tc>, window_params = [{transform_indices = @transform_0, window_bounds = array<i64: 1, 4, 20, 4>}, {transform_indices = @transform_1, window_bounds = array<i64: 1, 4, 20, 4>}, {pipeline_mode = #tpu.pipeline_mode<synchronous>, transform_indices = @transform_2, window_bounds = array<i64: 9, 4, 8>}, {pipeline_mode = #tpu.pipeline_mode<synchronous>, transform_indices = @transform_3, window_bounds = array<i64: 9, 8, 8>}, {pipeline_mode = #tpu.pipeline_mode<synchronous>, transform_indices = @transform_4, window_bounds = array<i64: 1, 8>}, {pipeline_mode = #tpu.pipeline_mode<synchronous>, transform_indices = @transform_5, window_bounds = array<i64: 1, 8>}, {pipeline_mode = #tpu.pipeline_mode<synchronous>, transform_indices = @transform_6, window_bounds = array<i64: 1, 8>}, {pipeline_mode = #tpu.pipeline_mode<synchronous>, transform_indices = @transform_7, window_bounds = array<i64: 1, 8>}, {transform_indices = @transform_8, window_bounds = array<i64: 1, 4, 16, 8>}]} {
    %c4_i32 = arith.constant 4 : i32
    %0 = arith.muli %arg1, %c4_i32 : i32
    %c0 = arith.constant 0 : index
    %c0_0 = arith.constant 0 : index
    %c0_1 = arith.constant 0 : index
    %c0_2 = arith.constant 0 : index
    %1 = vector.load %arg2[%c0, %c0_0, %c0_1, %c0_2] : memref<1x4x20x4xbf16, #tpu.memory_space<vmem>>, vector<1x4x20x4xbf16>
    %2 = vector.shape_cast %1 : vector<1x4x20x4xbf16> to vector<4x20x4xbf16>
    %c0_3 = arith.constant 0 : index
    %c0_4 = arith.constant 0 : index
    %c0_5 = arith.constant 0 : index
    %c0_6 = arith.constant 0 : index
    %3 = vector.load %arg3[%c0_3, %c0_4, %c0_5, %c0_6] : memref<1x4x20x4xbf16, #tpu.memory_space<vmem>>, vector<1x4x20x4xbf16>
    %4 = vector.shape_cast %3 : vector<1x4x20x4xbf16> to vector<4x20x4xbf16>
    %5 = tpu.concatenate %2, %4 in 0 : vector<4x20x4xbf16>, vector<4x20x4xbf16> -> vector<8x20x4xbf16>
    %cst = arith.constant 0.000000e+00 : f32
    %6 = vector.broadcast %cst : f32 to vector<108x8xf32>
    %c0_7 = arith.constant 0 : index
    %c0_8 = arith.constant 0 : index
    %7 = vector.load %arg11[%c0_7, %c0_8] : memref<108x8xf32, #tpu.memory_space<vmem>>, vector<108x8xf32>
    tpu.vector_store %arg11[%c0_7, %c0_8], %6 {strides = array<i32>} : memref<108x8xf32, #tpu.memory_space<vmem>>, vector<108x8xf32>,
    %8 = vector.extract_strided_slice %5 {offsets = [0, 0, 0], sizes = [6, 18, 4], strides = [1, 1, 1]} : vector<8x20x4xbf16> to vector<6x18x4xbf16>
    %9 = vector.shape_cast %8 : vector<6x18x4xbf16> to vector<108x4xbf16>
    %c0_9 = arith.constant 0 : index
    %c0_10 = arith.constant 0 : index
    %10 = vector.load %arg11[%c0_9, %c0_10] : memref<108x8xf32, #tpu.memory_space<vmem>>, vector<108x8xf32>
    %c0_11 = arith.constant 0 : index
    %c0_12 = arith.constant 0 : index
    %c0_13 = arith.constant 0 : index
    %11 = vector.load %arg4[%c0_11, %c0_12, %c0_13] : memref<9x4x8xbf16, #tpu.memory_space<vmem>>, vector<1x4x8xbf16>
    %12 = vector.shape_cast %11 : vector<1x4x8xbf16> to vector<4x8xbf16>
    %cst_14 = arith.constant dense<0.000000e+00> : vector<108x8xf32>
    %13 = tpu.matmul %9, %12, %cst_14 {dimension_numbers = #tpu.dot_dimension_numbers<[1], [0], [0], [1], [0, 0, 1, 1], [], []>} : vector<108x4xbf16>, vector<4x8xbf16>, vector<108x8xf32> -> vector<108x8xf32>
    %14 = arith.addf %10, %13 : vector<108x8xf32>
    %c0_15 = arith.constant 0 : index
    %c0_16 = arith.constant 0 : index
    %15 = vector.load %arg11[%c0_15, %c0_16] : memref<108x8xf32, #tpu.memory_space<vmem>>, vector<108x8xf32>
    tpu.vector_store %arg11[%c0_15, %c0_16], %14 {strides = array<i32>} : memref<108x8xf32, #tpu.memory_space<vmem>>, vector<108x8xf32>,
    %16 = vector.extract_strided_slice %5 {offsets = [0, 1, 0], sizes = [6, 18, 4], strides = [1, 1, 1]} : vector<8x20x4xbf16> to vector<6x18x4xbf16>
    %17 = vector.shape_cast %16 : vector<6x18x4xbf16> to vector<108x4xbf16>
    %c0_17 = arith.constant 0 : index
    %c0_18 = arith.constant 0 : index
    %18 = vector.load %arg11[%c0_17, %c0_18] : memref<108x8xf32, #tpu.memory_space<vmem>>, vector<108x8xf32>
    %c1 = arith.constant 1 : index
    %c0_19 = arith.constant 0 : index
    %c0_20 = arith.constant 0 : index
    %19 = vector.load %arg4[%c1, %c0_19, %c0_20] : memref<9x4x8xbf16, #tpu.memory_space<vmem>>, vector<1x4x8xbf16>
    %20 = vector.shape_cast %19 : vector<1x4x8xbf16> to vector<4x8xbf16>
    %cst_21 = arith.constant dense<0.000000e+00> : vector<108x8xf32>
    %21 = tpu.matmul %17, %20, %cst_21 {dimension_numbers = #tpu.dot_dimension_numbers<[1], [0], [0], [1], [0, 0, 1, 1], [], []>} : vector<108x4xbf16>, vector<4x8xbf16>, vector<108x8xf32> -> vector<108x8xf32>
    %22 = arith.addf %18, %21 : vector<108x8xf32>
    %c0_22 = arith.constant 0 : index
    %c0_23 = arith.constant 0 : index
    %23 = vector.load %arg11[%c0_22, %c0_23] : memref<108x8xf32, #tpu.memory_space<vmem>>, vector<108x8xf32>
    tpu.vector_store %arg11[%c0_22, %c0_23], %22 {strides = array<i32>} : memref<108x8xf32, #tpu.memory_space<vmem>>, vector<108x8xf32>,
    %24 = vector.extract_strided_slice %5 {offsets = [0, 2, 0], sizes = [6, 18, 4], strides = [1, 1, 1]} : vector<8x20x4xbf16> to vector<6x18x4xbf16>
    %25 = vector.shape_cast %24 : vector<6x18x4xbf16> to vector<108x4xbf16>
    %c0_24 = arith.constant 0 : index
    %c0_25 = arith.constant 0 : index
    %26 = vector.load %arg11[%c0_24, %c0_25] : memref<108x8xf32, #tpu.memory_space<vmem>>, vector<108x8xf32>
    %c2 = arith.constant 2 : index
    %c0_26 = arith.constant 0 : index
    %c0_27 = arith.constant 0 : index
    %27 = vector.load %arg4[%c2, %c0_26, %c0_27] : memref<9x4x8xbf16, #tpu.memory_space<vmem>>, vector<1x4x8xbf16>
    %28 = vector.shape_cast %27 : vector<1x4x8xbf16> to vector<4x8xbf16>
    %cst_28 = arith.constant dense<0.000000e+00> : vector<108x8xf32>
    %29 = tpu.matmul %25, %28, %cst_28 {dimension_numbers = #tpu.dot_dimension_numbers<[1], [0], [0], [1], [0, 0, 1, 1], [], []>} : vector<108x4xbf16>, vector<4x8xbf16>, vector<108x8xf32> -> vector<108x8xf32>
    %30 = arith.addf %26, %29 : vector<108x8xf32>
    %c0_29 = arith.constant 0 : index
    %c0_30 = arith.constant 0 : index
    %31 = vector.load %arg11[%c0_29, %c0_30] : memref<108x8xf32, #tpu.memory_space<vmem>>, vector<108x8xf32>
    tpu.vector_store %arg11[%c0_29, %c0_30], %30 {strides = array<i32>} : memref<108x8xf32, #tpu.memory_space<vmem>>, vector<108x8xf32>,
    %32 = vector.extract_strided_slice %5 {offsets = [1, 0, 0], sizes = [6, 18, 4], strides = [1, 1, 1]} : vector<8x20x4xbf16> to vector<6x18x4xbf16>
    %33 = vector.shape_cast %32 : vector<6x18x4xbf16> to vector<108x4xbf16>
    %c0_31 = arith.constant 0 : index
    %c0_32 = arith.constant 0 : index
    %34 = vector.load %arg11[%c0_31, %c0_32] : memref<108x8xf32, #tpu.memory_space<vmem>>, vector<108x8xf32>
    %c3 = arith.constant 3 : index
    %c0_33 = arith.constant 0 : index
    %c0_34 = arith.constant 0 : index
    %35 = vector.load %arg4[%c3, %c0_33, %c0_34] : memref<9x4x8xbf16, #tpu.memory_space<vmem>>, vector<1x4x8xbf16>
    %36 = vector.shape_cast %35 : vector<1x4x8xbf16> to vector<4x8xbf16>
    %cst_35 = arith.constant dense<0.000000e+00> : vector<108x8xf32>
    %37 = tpu.matmul %33, %36, %cst_35 {dimension_numbers = #tpu.dot_dimension_numbers<[1], [0], [0], [1], [0, 0, 1, 1], [], []>} : vector<108x4xbf16>, vector<4x8xbf16>, vector<108x8xf32> -> vector<108x8xf32>
    %38 = arith.addf %34, %37 : vector<108x8xf32>
    %c0_36 = arith.constant 0 : index
    %c0_37 = arith.constant 0 : index
    %39 = vector.load %arg11[%c0_36, %c0_37] : memref<108x8xf32, #tpu.memory_space<vmem>>, vector<108x8xf32>
    tpu.vector_store %arg11[%c0_36, %c0_37], %38 {strides = array<i32>} : memref<108x8xf32, #tpu.memory_space<vmem>>, vector<108x8xf32>,
    %40 = vector.extract_strided_slice %5 {offsets = [1, 1, 0], sizes = [6, 18, 4], strides = [1, 1, 1]} : vector<8x20x4xbf16> to vector<6x18x4xbf16>
    %41 = vector.shape_cast %40 : vector<6x18x4xbf16> to vector<108x4xbf16>
    %c0_38 = arith.constant 0 : index
    %c0_39 = arith.constant 0 : index
    %42 = vector.load %arg11[%c0_38, %c0_39] : memref<108x8xf32, #tpu.memory_space<vmem>>, vector<108x8xf32>
    %c4 = arith.constant 4 : index
    %c0_40 = arith.constant 0 : index
    %c0_41 = arith.constant 0 : index
    %43 = vector.load %arg4[%c4, %c0_40, %c0_41] : memref<9x4x8xbf16, #tpu.memory_space<vmem>>, vector<1x4x8xbf16>
    %44 = vector.shape_cast %43 : vector<1x4x8xbf16> to vector<4x8xbf16>
    %cst_42 = arith.constant dense<0.000000e+00> : vector<108x8xf32>
    %45 = tpu.matmul %41, %44, %cst_42 {dimension_numbers = #tpu.dot_dimension_numbers<[1], [0], [0], [1], [0, 0, 1, 1], [], []>} : vector<108x4xbf16>, vector<4x8xbf16>, vector<108x8xf32> -> vector<108x8xf32>
    %46 = arith.addf %42, %45 : vector<108x8xf32>
    %c0_43 = arith.constant 0 : index
    %c0_44 = arith.constant 0 : index
    %47 = vector.load %arg11[%c0_43, %c0_44] : memref<108x8xf32, #tpu.memory_space<vmem>>, vector<108x8xf32>
    tpu.vector_store %arg11[%c0_43, %c0_44], %46 {strides = array<i32>} : memref<108x8xf32, #tpu.memory_space<vmem>>, vector<108x8xf32>,
    %48 = vector.extract_strided_slice %5 {offsets = [1, 2, 0], sizes = [6, 18, 4], strides = [1, 1, 1]} : vector<8x20x4xbf16> to vector<6x18x4xbf16>
    %49 = vector.shape_cast %48 : vector<6x18x4xbf16> to vector<108x4xbf16>
    %c0_45 = arith.constant 0 : index
    %c0_46 = arith.constant 0 : index
    %50 = vector.load %arg11[%c0_45, %c0_46] : memref<108x8xf32, #tpu.memory_space<vmem>>, vector<108x8xf32>
    %c5 = arith.constant 5 : index
    %c0_47 = arith.constant 0 : index
    %c0_48 = arith.constant 0 : index
    %51 = vector.load %arg4[%c5, %c0_47, %c0_48] : memref<9x4x8xbf16, #tpu.memory_space<vmem>>, vector<1x4x8xbf16>
    %52 = vector.shape_cast %51 : vector<1x4x8xbf16> to vector<4x8xbf16>
    %cst_49 = arith.constant dense<0.000000e+00> : vector<108x8xf32>
    %53 = tpu.matmul %49, %52, %cst_49 {dimension_numbers = #tpu.dot_dimension_numbers<[1], [0], [0], [1], [0, 0, 1, 1], [], []>} : vector<108x4xbf16>, vector<4x8xbf16>, vector<108x8xf32> -> vector<108x8xf32>
    %54 = arith.addf %50, %53 : vector<108x8xf32>
    %c0_50 = arith.constant 0 : index
    %c0_51 = arith.constant 0 : index
    %55 = vector.load %arg11[%c0_50, %c0_51] : memref<108x8xf32, #tpu.memory_space<vmem>>, vector<108x8xf32>
    tpu.vector_store %arg11[%c0_50, %c0_51], %54 {strides = array<i32>} : memref<108x8xf32, #tpu.memory_space<vmem>>, vector<108x8xf32>,
    %56 = vector.extract_strided_slice %5 {offsets = [2, 0, 0], sizes = [6, 18, 4], strides = [1, 1, 1]} : vector<8x20x4xbf16> to vector<6x18x4xbf16>
    %57 = vector.shape_cast %56 : vector<6x18x4xbf16> to vector<108x4xbf16>
    %c0_52 = arith.constant 0 : index
    %c0_53 = arith.constant 0 : index
    %58 = vector.load %arg11[%c0_52, %c0_53] : memref<108x8xf32, #tpu.memory_space<vmem>>, vector<108x8xf32>
    %c6 = arith.constant 6 : index
    %c0_54 = arith.constant 0 : index
    %c0_55 = arith.constant 0 : index
    %59 = vector.load %arg4[%c6, %c0_54, %c0_55] : memref<9x4x8xbf16, #tpu.memory_space<vmem>>, vector<1x4x8xbf16>
    %60 = vector.shape_cast %59 : vector<1x4x8xbf16> to vector<4x8xbf16>
    %cst_56 = arith.constant dense<0.000000e+00> : vector<108x8xf32>
    %61 = tpu.matmul %57, %60, %cst_56 {dimension_numbers = #tpu.dot_dimension_numbers<[1], [0], [0], [1], [0, 0, 1, 1], [], []>} : vector<108x4xbf16>, vector<4x8xbf16>, vector<108x8xf32> -> vector<108x8xf32>
    %62 = arith.addf %58, %61 : vector<108x8xf32>
    %c0_57 = arith.constant 0 : index
    %c0_58 = arith.constant 0 : index
    %63 = vector.load %arg11[%c0_57, %c0_58] : memref<108x8xf32, #tpu.memory_space<vmem>>, vector<108x8xf32>
    tpu.vector_store %arg11[%c0_57, %c0_58], %62 {strides = array<i32>} : memref<108x8xf32, #tpu.memory_space<vmem>>, vector<108x8xf32>,
    %64 = vector.extract_strided_slice %5 {offsets = [2, 1, 0], sizes = [6, 18, 4], strides = [1, 1, 1]} : vector<8x20x4xbf16> to vector<6x18x4xbf16>
    %65 = vector.shape_cast %64 : vector<6x18x4xbf16> to vector<108x4xbf16>
    %c0_59 = arith.constant 0 : index
    %c0_60 = arith.constant 0 : index
    %66 = vector.load %arg11[%c0_59, %c0_60] : memref<108x8xf32, #tpu.memory_space<vmem>>, vector<108x8xf32>
    %c7 = arith.constant 7 : index
    %c0_61 = arith.constant 0 : index
    %c0_62 = arith.constant 0 : index
    %67 = vector.load %arg4[%c7, %c0_61, %c0_62] : memref<9x4x8xbf16, #tpu.memory_space<vmem>>, vector<1x4x8xbf16>
    %68 = vector.shape_cast %67 : vector<1x4x8xbf16> to vector<4x8xbf16>
    %cst_63 = arith.constant dense<0.000000e+00> : vector<108x8xf32>
    %69 = tpu.matmul %65, %68, %cst_63 {dimension_numbers = #tpu.dot_dimension_numbers<[1], [0], [0], [1], [0, 0, 1, 1], [], []>} : vector<108x4xbf16>, vector<4x8xbf16>, vector<108x8xf32> -> vector<108x8xf32>
    %70 = arith.addf %66, %69 : vector<108x8xf32>
    %c0_64 = arith.constant 0 : index
    %c0_65 = arith.constant 0 : index
    %71 = vector.load %arg11[%c0_64, %c0_65] : memref<108x8xf32, #tpu.memory_space<vmem>>, vector<108x8xf32>
    tpu.vector_store %arg11[%c0_64, %c0_65], %70 {strides = array<i32>} : memref<108x8xf32, #tpu.memory_space<vmem>>, vector<108x8xf32>,
    %72 = vector.extract_strided_slice %5 {offsets = [2, 2, 0], sizes = [6, 18, 4], strides = [1, 1, 1]} : vector<8x20x4xbf16> to vector<6x18x4xbf16>
    %73 = vector.shape_cast %72 : vector<6x18x4xbf16> to vector<108x4xbf16>
    %c0_66 = arith.constant 0 : index
    %c0_67 = arith.constant 0 : index
    %74 = vector.load %arg11[%c0_66, %c0_67] : memref<108x8xf32, #tpu.memory_space<vmem>>, vector<108x8xf32>
    %c8 = arith.constant 8 : index
    %c0_68 = arith.constant 0 : index
    %c0_69 = arith.constant 0 : index
    %75 = vector.load %arg4[%c8, %c0_68, %c0_69] : memref<9x4x8xbf16, #tpu.memory_space<vmem>>, vector<1x4x8xbf16>
    %76 = vector.shape_cast %75 : vector<1x4x8xbf16> to vector<4x8xbf16>
    %cst_70 = arith.constant dense<0.000000e+00> : vector<108x8xf32>
    %77 = tpu.matmul %73, %76, %cst_70 {dimension_numbers = #tpu.dot_dimension_numbers<[1], [0], [0], [1], [0, 0, 1, 1], [], []>} : vector<108x4xbf16>, vector<4x8xbf16>, vector<108x8xf32> -> vector<108x8xf32>
    %78 = arith.addf %74, %77 : vector<108x8xf32>
    %c0_71 = arith.constant 0 : index
    %c0_72 = arith.constant 0 : index
    %79 = vector.load %arg11[%c0_71, %c0_72] : memref<108x8xf32, #tpu.memory_space<vmem>>, vector<108x8xf32>
    tpu.vector_store %arg11[%c0_71, %c0_72], %78 {strides = array<i32>} : memref<108x8xf32, #tpu.memory_space<vmem>>, vector<108x8xf32>,
    %c0_73 = arith.constant 0 : index
    %c0_74 = arith.constant 0 : index
    %80 = vector.load %arg11[%c0_73, %c0_74] : memref<108x8xf32, #tpu.memory_space<vmem>>, vector<108x8xf32>
    %c0_75 = arith.constant 0 : index
    %c0_76 = arith.constant 0 : index
    %81 = vector.load %arg6[%c0_75, %c0_76] : memref<1x8xf32, #tpu.memory_space<vmem>>, vector<1x8xf32>
    %82 = vector.broadcast %81 : vector<1x8xf32> to vector<108x8xf32>
    %83 = arith.mulf %80, %82 : vector<108x8xf32>
    %c0_77 = arith.constant 0 : index
    %c0_78 = arith.constant 0 : index
    %84 = vector.load %arg7[%c0_77, %c0_78] : memref<1x8xf32, #tpu.memory_space<vmem>>, vector<1x8xf32>
    %85 = vector.broadcast %84 : vector<1x8xf32> to vector<108x8xf32>
    %86 = arith.addf %83, %85 : vector<108x8xf32>
    %cst_79 = arith.constant 0.000000e+00 : f32
    %87 = vector.broadcast %cst_79 : f32 to vector<108x8xf32>
    %88 = arith.maximumf %86, %87 : vector<108x8xf32>
    %89 = vector.shape_cast %88 : vector<108x8xf32> to vector<6x18x8xf32>
    %90 = tpu.iota {dimensions = array<i32: 0>} : vector<6x18x8xi32>
    %c1_i32 = arith.constant 1 : i32
    %91 = arith.subi %0, %c1_i32 : i32
    %92 = vector.broadcast %91 : i32 to vector<6x18x8xi32>
    %93 = arith.addi %90, %92 : vector<6x18x8xi32>
    %94 = tpu.iota {dimensions = array<i32: 1>} : vector<6x18x8xi32>
    %c0_i32 = arith.constant 0 : i32
    %95 = vector.broadcast %c0_i32 : i32 to vector<6x18x8xi32>
    %96 = arith.cmpi sge, %93, %95 : vector<6x18x8xi32>
    %c16_i32 = arith.constant 16 : i32
    %97 = vector.broadcast %c16_i32 : i32 to vector<6x18x8xi32>
    %98 = arith.cmpi slt, %93, %97 : vector<6x18x8xi32>
    %99 = arith.andi %96, %98 : vector<6x18x8xi1>
    %c1_i32_80 = arith.constant 1 : i32
    %100 = vector.broadcast %c1_i32_80 : i32 to vector<6x18x8xi32>
    %101 = arith.cmpi sge, %94, %100 : vector<6x18x8xi32>
    %102 = arith.andi %99, %101 : vector<6x18x8xi1>
    %c16_i32_81 = arith.constant 16 : i32
    %103 = vector.broadcast %c16_i32_81 : i32 to vector<6x18x8xi32>
    %104 = arith.cmpi sle, %94, %103 : vector<6x18x8xi32>
    %105 = arith.andi %102, %104 : vector<6x18x8xi1>
    %cst_82 = arith.constant 0.000000e+00 : f32
    %106 = vector.broadcast %cst_82 : f32 to vector<6x18x8xf32>
    %107 = arith.select %105, %89, %106 : vector<6x18x8xi1>, vector<6x18x8xf32>
    %108 = arith.truncf %107 : vector<6x18x8xf32> to vector<6x18x8xbf16>
    %cst_83 = arith.constant 0.000000e+00 : f32
    %109 = vector.broadcast %cst_83 : f32 to vector<64x8xf32>
    %c0_84 = arith.constant 0 : index
    %c0_85 = arith.constant 0 : index
    %110 = vector.load %arg12[%c0_84, %c0_85] : memref<64x8xf32, #tpu.memory_space<vmem>>, vector<64x8xf32>
    tpu.vector_store %arg12[%c0_84, %c0_85], %109 {strides = array<i32>} : memref<64x8xf32, #tpu.memory_space<vmem>>, vector<64x8xf32>,
    %111 = vector.extract_strided_slice %108 {offsets = [0, 0, 0], sizes = [4, 16, 8], strides = [1, 1, 1]} : vector<6x18x8xbf16> to vector<4x16x8xbf16>
    %112 = vector.shape_cast %111 : vector<4x16x8xbf16> to vector<64x8xbf16>
    %c0_86 = arith.constant 0 : index
    %c0_87 = arith.constant 0 : index
    %113 = vector.load %arg12[%c0_86, %c0_87] : memref<64x8xf32, #tpu.memory_space<vmem>>, vector<64x8xf32>
    %c0_88 = arith.constant 0 : index
    %c0_89 = arith.constant 0 : index
    %c0_90 = arith.constant 0 : index
    %114 = vector.load %arg5[%c0_88, %c0_89, %c0_90] : memref<9x8x8xbf16, #tpu.memory_space<vmem>>, vector<1x8x8xbf16>
    %115 = vector.shape_cast %114 : vector<1x8x8xbf16> to vector<8x8xbf16>
    %cst_91 = arith.constant dense<0.000000e+00> : vector<64x8xf32>
    %116 = tpu.matmul %112, %115, %cst_91 {dimension_numbers = #tpu.dot_dimension_numbers<[1], [0], [0], [1], [0, 0, 1, 1], [], []>} : vector<64x8xbf16>, vector<8x8xbf16>, vector<64x8xf32> -> vector<64x8xf32>
    %117 = arith.addf %113, %116 : vector<64x8xf32>
    %c0_92 = arith.constant 0 : index
    %c0_93 = arith.constant 0 : index
    %118 = vector.load %arg12[%c0_92, %c0_93] : memref<64x8xf32, #tpu.memory_space<vmem>>, vector<64x8xf32>
    tpu.vector_store %arg12[%c0_92, %c0_93], %117 {strides = array<i32>} : memref<64x8xf32, #tpu.memory_space<vmem>>, vector<64x8xf32>,
    %119 = vector.extract_strided_slice %108 {offsets = [0, 1, 0], sizes = [4, 16, 8], strides = [1, 1, 1]} : vector<6x18x8xbf16> to vector<4x16x8xbf16>
    %120 = vector.shape_cast %119 : vector<4x16x8xbf16> to vector<64x8xbf16>
    %c0_94 = arith.constant 0 : index
    %c0_95 = arith.constant 0 : index
    %121 = vector.load %arg12[%c0_94, %c0_95] : memref<64x8xf32, #tpu.memory_space<vmem>>, vector<64x8xf32>
    %c1_96 = arith.constant 1 : index
    %c0_97 = arith.constant 0 : index
    %c0_98 = arith.constant 0 : index
    %122 = vector.load %arg5[%c1_96, %c0_97, %c0_98] : memref<9x8x8xbf16, #tpu.memory_space<vmem>>, vector<1x8x8xbf16>
    %123 = vector.shape_cast %122 : vector<1x8x8xbf16> to vector<8x8xbf16>
    %cst_99 = arith.constant dense<0.000000e+00> : vector<64x8xf32>
    %124 = tpu.matmul %120, %123, %cst_99 {dimension_numbers = #tpu.dot_dimension_numbers<[1], [0], [0], [1], [0, 0, 1, 1], [], []>} : vector<64x8xbf16>, vector<8x8xbf16>, vector<64x8xf32> -> vector<64x8xf32>
    %125 = arith.addf %121, %124 : vector<64x8xf32>
    %c0_100 = arith.constant 0 : index
    %c0_101 = arith.constant 0 : index
    %126 = vector.load %arg12[%c0_100, %c0_101] : memref<64x8xf32, #tpu.memory_space<vmem>>, vector<64x8xf32>
    tpu.vector_store %arg12[%c0_100, %c0_101], %125 {strides = array<i32>} : memref<64x8xf32, #tpu.memory_space<vmem>>, vector<64x8xf32>,
    %127 = vector.extract_strided_slice %108 {offsets = [0, 2, 0], sizes = [4, 16, 8], strides = [1, 1, 1]} : vector<6x18x8xbf16> to vector<4x16x8xbf16>
    %128 = vector.shape_cast %127 : vector<4x16x8xbf16> to vector<64x8xbf16>
    %c0_102 = arith.constant 0 : index
    %c0_103 = arith.constant 0 : index
    %129 = vector.load %arg12[%c0_102, %c0_103] : memref<64x8xf32, #tpu.memory_space<vmem>>, vector<64x8xf32>
    %c2_104 = arith.constant 2 : index
    %c0_105 = arith.constant 0 : index
    %c0_106 = arith.constant 0 : index
    %130 = vector.load %arg5[%c2_104, %c0_105, %c0_106] : memref<9x8x8xbf16, #tpu.memory_space<vmem>>, vector<1x8x8xbf16>
    %131 = vector.shape_cast %130 : vector<1x8x8xbf16> to vector<8x8xbf16>
    %cst_107 = arith.constant dense<0.000000e+00> : vector<64x8xf32>
    %132 = tpu.matmul %128, %131, %cst_107 {dimension_numbers = #tpu.dot_dimension_numbers<[1], [0], [0], [1], [0, 0, 1, 1], [], []>} : vector<64x8xbf16>, vector<8x8xbf16>, vector<64x8xf32> -> vector<64x8xf32>
    %133 = arith.addf %129, %132 : vector<64x8xf32>
    %c0_108 = arith.constant 0 : index
    %c0_109 = arith.constant 0 : index
    %134 = vector.load %arg12[%c0_108, %c0_109] : memref<64x8xf32, #tpu.memory_space<vmem>>, vector<64x8xf32>
    tpu.vector_store %arg12[%c0_108, %c0_109], %133 {strides = array<i32>} : memref<64x8xf32, #tpu.memory_space<vmem>>, vector<64x8xf32>,
    %135 = vector.extract_strided_slice %108 {offsets = [1, 0, 0], sizes = [4, 16, 8], strides = [1, 1, 1]} : vector<6x18x8xbf16> to vector<4x16x8xbf16>
    %136 = vector.shape_cast %135 : vector<4x16x8xbf16> to vector<64x8xbf16>
    %c0_110 = arith.constant 0 : index
    %c0_111 = arith.constant 0 : index
    %137 = vector.load %arg12[%c0_110, %c0_111] : memref<64x8xf32, #tpu.memory_space<vmem>>, vector<64x8xf32>
    %c3_112 = arith.constant 3 : index
    %c0_113 = arith.constant 0 : index
    %c0_114 = arith.constant 0 : index
    %138 = vector.load %arg5[%c3_112, %c0_113, %c0_114] : memref<9x8x8xbf16, #tpu.memory_space<vmem>>, vector<1x8x8xbf16>
    %139 = vector.shape_cast %138 : vector<1x8x8xbf16> to vector<8x8xbf16>
    %cst_115 = arith.constant dense<0.000000e+00> : vector<64x8xf32>
    %140 = tpu.matmul %136, %139, %cst_115 {dimension_numbers = #tpu.dot_dimension_numbers<[1], [0], [0], [1], [0, 0, 1, 1], [], []>} : vector<64x8xbf16>, vector<8x8xbf16>, vector<64x8xf32> -> vector<64x8xf32>
    %141 = arith.addf %137, %140 : vector<64x8xf32>
    %c0_116 = arith.constant 0 : index
    %c0_117 = arith.constant 0 : index
    %142 = vector.load %arg12[%c0_116, %c0_117] : memref<64x8xf32, #tpu.memory_space<vmem>>, vector<64x8xf32>
    tpu.vector_store %arg12[%c0_116, %c0_117], %141 {strides = array<i32>} : memref<64x8xf32, #tpu.memory_space<vmem>>, vector<64x8xf32>,
    %143 = vector.extract_strided_slice %108 {offsets = [1, 1, 0], sizes = [4, 16, 8], strides = [1, 1, 1]} : vector<6x18x8xbf16> to vector<4x16x8xbf16>
    %144 = vector.shape_cast %143 : vector<4x16x8xbf16> to vector<64x8xbf16>
    %c0_118 = arith.constant 0 : index
    %c0_119 = arith.constant 0 : index
    %145 = vector.load %arg12[%c0_118, %c0_119] : memref<64x8xf32, #tpu.memory_space<vmem>>, vector<64x8xf32>
    %c4_120 = arith.constant 4 : index
    %c0_121 = arith.constant 0 : index
    %c0_122 = arith.constant 0 : index
    %146 = vector.load %arg5[%c4_120, %c0_121, %c0_122] : memref<9x8x8xbf16, #tpu.memory_space<vmem>>, vector<1x8x8xbf16>
    %147 = vector.shape_cast %146 : vector<1x8x8xbf16> to vector<8x8xbf16>
    %cst_123 = arith.constant dense<0.000000e+00> : vector<64x8xf32>
    %148 = tpu.matmul %144, %147, %cst_123 {dimension_numbers = #tpu.dot_dimension_numbers<[1], [0], [0], [1], [0, 0, 1, 1], [], []>} : vector<64x8xbf16>, vector<8x8xbf16>, vector<64x8xf32> -> vector<64x8xf32>
    %149 = arith.addf %145, %148 : vector<64x8xf32>
    %c0_124 = arith.constant 0 : index
    %c0_125 = arith.constant 0 : index
    %150 = vector.load %arg12[%c0_124, %c0_125] : memref<64x8xf32, #tpu.memory_space<vmem>>, vector<64x8xf32>
    tpu.vector_store %arg12[%c0_124, %c0_125], %149 {strides = array<i32>} : memref<64x8xf32, #tpu.memory_space<vmem>>, vector<64x8xf32>,
    %151 = vector.extract_strided_slice %108 {offsets = [1, 2, 0], sizes = [4, 16, 8], strides = [1, 1, 1]} : vector<6x18x8xbf16> to vector<4x16x8xbf16>
    %152 = vector.shape_cast %151 : vector<4x16x8xbf16> to vector<64x8xbf16>
    %c0_126 = arith.constant 0 : index
    %c0_127 = arith.constant 0 : index
    %153 = vector.load %arg12[%c0_126, %c0_127] : memref<64x8xf32, #tpu.memory_space<vmem>>, vector<64x8xf32>
    %c5_128 = arith.constant 5 : index
    %c0_129 = arith.constant 0 : index
    %c0_130 = arith.constant 0 : index
    %154 = vector.load %arg5[%c5_128, %c0_129, %c0_130] : memref<9x8x8xbf16, #tpu.memory_space<vmem>>, vector<1x8x8xbf16>
    %155 = vector.shape_cast %154 : vector<1x8x8xbf16> to vector<8x8xbf16>
    %cst_131 = arith.constant dense<0.000000e+00> : vector<64x8xf32>
    %156 = tpu.matmul %152, %155, %cst_131 {dimension_numbers = #tpu.dot_dimension_numbers<[1], [0], [0], [1], [0, 0, 1, 1], [], []>} : vector<64x8xbf16>, vector<8x8xbf16>, vector<64x8xf32> -> vector<64x8xf32>
    %157 = arith.addf %153, %156 : vector<64x8xf32>
    %c0_132 = arith.constant 0 : index
    %c0_133 = arith.constant 0 : index
    %158 = vector.load %arg12[%c0_132, %c0_133] : memref<64x8xf32, #tpu.memory_space<vmem>>, vector<64x8xf32>
    tpu.vector_store %arg12[%c0_132, %c0_133], %157 {strides = array<i32>} : memref<64x8xf32, #tpu.memory_space<vmem>>, vector<64x8xf32>,
    %159 = vector.extract_strided_slice %108 {offsets = [2, 0, 0], sizes = [4, 16, 8], strides = [1, 1, 1]} : vector<6x18x8xbf16> to vector<4x16x8xbf16>
    %160 = vector.shape_cast %159 : vector<4x16x8xbf16> to vector<64x8xbf16>
    %c0_134 = arith.constant 0 : index
    %c0_135 = arith.constant 0 : index
    %161 = vector.load %arg12[%c0_134, %c0_135] : memref<64x8xf32, #tpu.memory_space<vmem>>, vector<64x8xf32>
    %c6_136 = arith.constant 6 : index
    %c0_137 = arith.constant 0 : index
    %c0_138 = arith.constant 0 : index
    %162 = vector.load %arg5[%c6_136, %c0_137, %c0_138] : memref<9x8x8xbf16, #tpu.memory_space<vmem>>, vector<1x8x8xbf16>
    %163 = vector.shape_cast %162 : vector<1x8x8xbf16> to vector<8x8xbf16>
    %cst_139 = arith.constant dense<0.000000e+00> : vector<64x8xf32>
    %164 = tpu.matmul %160, %163, %cst_139 {dimension_numbers = #tpu.dot_dimension_numbers<[1], [0], [0], [1], [0, 0, 1, 1], [], []>} : vector<64x8xbf16>, vector<8x8xbf16>, vector<64x8xf32> -> vector<64x8xf32>
    %165 = arith.addf %161, %164 : vector<64x8xf32>
    %c0_140 = arith.constant 0 : index
    %c0_141 = arith.constant 0 : index
    %166 = vector.load %arg12[%c0_140, %c0_141] : memref<64x8xf32, #tpu.memory_space<vmem>>, vector<64x8xf32>
    tpu.vector_store %arg12[%c0_140, %c0_141], %165 {strides = array<i32>} : memref<64x8xf32, #tpu.memory_space<vmem>>, vector<64x8xf32>,
    %167 = vector.extract_strided_slice %108 {offsets = [2, 1, 0], sizes = [4, 16, 8], strides = [1, 1, 1]} : vector<6x18x8xbf16> to vector<4x16x8xbf16>
    %168 = vector.shape_cast %167 : vector<4x16x8xbf16> to vector<64x8xbf16>
    %c0_142 = arith.constant 0 : index
    %c0_143 = arith.constant 0 : index
    %169 = vector.load %arg12[%c0_142, %c0_143] : memref<64x8xf32, #tpu.memory_space<vmem>>, vector<64x8xf32>
    %c7_144 = arith.constant 7 : index
    %c0_145 = arith.constant 0 : index
    %c0_146 = arith.constant 0 : index
    %170 = vector.load %arg5[%c7_144, %c0_145, %c0_146] : memref<9x8x8xbf16, #tpu.memory_space<vmem>>, vector<1x8x8xbf16>
    %171 = vector.shape_cast %170 : vector<1x8x8xbf16> to vector<8x8xbf16>
    %cst_147 = arith.constant dense<0.000000e+00> : vector<64x8xf32>
    %172 = tpu.matmul %168, %171, %cst_147 {dimension_numbers = #tpu.dot_dimension_numbers<[1], [0], [0], [1], [0, 0, 1, 1], [], []>} : vector<64x8xbf16>, vector<8x8xbf16>, vector<64x8xf32> -> vector<64x8xf32>
    %173 = arith.addf %169, %172 : vector<64x8xf32>
    %c0_148 = arith.constant 0 : index
    %c0_149 = arith.constant 0 : index
    %174 = vector.load %arg12[%c0_148, %c0_149] : memref<64x8xf32, #tpu.memory_space<vmem>>, vector<64x8xf32>
    tpu.vector_store %arg12[%c0_148, %c0_149], %173 {strides = array<i32>} : memref<64x8xf32, #tpu.memory_space<vmem>>, vector<64x8xf32>,
    %175 = vector.extract_strided_slice %108 {offsets = [2, 2, 0], sizes = [4, 16, 8], strides = [1, 1, 1]} : vector<6x18x8xbf16> to vector<4x16x8xbf16>
    %176 = vector.shape_cast %175 : vector<4x16x8xbf16> to vector<64x8xbf16>
    %c0_150 = arith.constant 0 : index
    %c0_151 = arith.constant 0 : index
    %177 = vector.load %arg12[%c0_150, %c0_151] : memref<64x8xf32, #tpu.memory_space<vmem>>, vector<64x8xf32>
    %c8_152 = arith.constant 8 : index
    %c0_153 = arith.constant 0 : index
    %c0_154 = arith.constant 0 : index
    %178 = vector.load %arg5[%c8_152, %c0_153, %c0_154] : memref<9x8x8xbf16, #tpu.memory_space<vmem>>, vector<1x8x8xbf16>
    %179 = vector.shape_cast %178 : vector<1x8x8xbf16> to vector<8x8xbf16>
    %cst_155 = arith.constant dense<0.000000e+00> : vector<64x8xf32>
    %180 = tpu.matmul %176, %179, %cst_155 {dimension_numbers = #tpu.dot_dimension_numbers<[1], [0], [0], [1], [0, 0, 1, 1], [], []>} : vector<64x8xbf16>, vector<8x8xbf16>, vector<64x8xf32> -> vector<64x8xf32>
    %181 = arith.addf %177, %180 : vector<64x8xf32>
    %c0_156 = arith.constant 0 : index
    %c0_157 = arith.constant 0 : index
    %182 = vector.load %arg12[%c0_156, %c0_157] : memref<64x8xf32, #tpu.memory_space<vmem>>, vector<64x8xf32>
    tpu.vector_store %arg12[%c0_156, %c0_157], %181 {strides = array<i32>} : memref<64x8xf32, #tpu.memory_space<vmem>>, vector<64x8xf32>,
    %c0_158 = arith.constant 0 : index
    %c0_159 = arith.constant 0 : index
    %183 = vector.load %arg12[%c0_158, %c0_159] : memref<64x8xf32, #tpu.memory_space<vmem>>, vector<64x8xf32>
    %c0_160 = arith.constant 0 : index
    %c0_161 = arith.constant 0 : index
    %184 = vector.load %arg8[%c0_160, %c0_161] : memref<1x8xf32, #tpu.memory_space<vmem>>, vector<1x8xf32>
    %185 = vector.broadcast %184 : vector<1x8xf32> to vector<64x8xf32>
    %186 = arith.mulf %183, %185 : vector<64x8xf32>
    %c0_162 = arith.constant 0 : index
    %c0_163 = arith.constant 0 : index
    %187 = vector.load %arg9[%c0_162, %c0_163] : memref<1x8xf32, #tpu.memory_space<vmem>>, vector<1x8xf32>
    %188 = vector.broadcast %187 : vector<1x8xf32> to vector<64x8xf32>
    %189 = arith.addf %186, %188 : vector<64x8xf32>
    %cst_164 = arith.constant 0.000000e+00 : f32
    %190 = vector.broadcast %cst_164 : f32 to vector<64x8xf32>
    %191 = arith.maximumf %189, %190 : vector<64x8xf32>
    %192 = vector.shape_cast %191 : vector<64x8xf32> to vector<1x4x16x8xf32>
    %c0_165 = arith.constant 0 : index
    %c0_166 = arith.constant 0 : index
    %c0_167 = arith.constant 0 : index
    %c0_168 = arith.constant 0 : index
    %193 = vector.load %arg10[%c0_165, %c0_166, %c0_167, %c0_168] : memref<1x4x16x8xf32, #tpu.memory_space<vmem>>, vector<1x4x16x8xf32>
    tpu.vector_store %arg10[%c0_165, %c0_166, %c0_167, %c0_168], %192 {strides = array<i32>} : memref<1x4x16x8xf32, #tpu.memory_space<vmem>>, vector<1x4x16x8xf32>,
    return
  }
  func.func @transform_0(%arg0: i32, %arg1: i32) -> (i32, i32, i32, i32) {
    %c0_i32 = arith.constant 0 : i32
    %c0_i32_0 = arith.constant 0 : i32
    %c0_i32_1 = arith.constant 0 : i32
    return %arg0, %arg1, %c0_i32, %c0_i32_0 : i32, i32, i32, i32
  }
  func.func @transform_1(%arg0: i32, %arg1: i32) -> (i32, i32, i32, i32) {
    %c1_i32 = arith.constant 1 : i32
    %0 = arith.addi %arg1, %c1_i32 : i32
    %c1_i32_0 = arith.constant 1 : i32
    %1 = arith.muli %0, %c1_i32_0 : i32
    %c0_i32 = arith.constant 0 : i32
    %c0_i32_1 = arith.constant 0 : i32
    %c0_i32_2 = arith.constant 0 : i32
    return %arg0, %1, %c0_i32, %c0_i32_1 : i32, i32, i32, i32
  }
  func.func @transform_2(%arg0: i32, %arg1: i32) -> (i32, i32, i32) {
    %c0_i32 = arith.constant 0 : i32
    %c0_i32_0 = arith.constant 0 : i32
    %c0_i32_1 = arith.constant 0 : i32
    %c0_i32_2 = arith.constant 0 : i32
    return %c0_i32, %c0_i32_0, %c0_i32_1 : i32, i32, i32
  }
  func.func @transform_3(%arg0: i32, %arg1: i32) -> (i32, i32, i32) {
    %c0_i32 = arith.constant 0 : i32
    %c0_i32_0 = arith.constant 0 : i32
    %c0_i32_1 = arith.constant 0 : i32
    %c0_i32_2 = arith.constant 0 : i32
    return %c0_i32, %c0_i32_0, %c0_i32_1 : i32, i32, i32
  }
  func.func @transform_4(%arg0: i32, %arg1: i32) -> (i32, i32) {
    %c0_i32 = arith.constant 0 : i32
    %c0_i32_0 = arith.constant 0 : i32
    %c0_i32_1 = arith.constant 0 : i32
    return %c0_i32, %c0_i32_0 : i32, i32
  }
  func.func @transform_5(%arg0: i32, %arg1: i32) -> (i32, i32) {
    %c0_i32 = arith.constant 0 : i32
    %c0_i32_0 = arith.constant 0 : i32
    %c0_i32_1 = arith.constant 0 : i32
    return %c0_i32, %c0_i32_0 : i32, i32
  }
  func.func @transform_6(%arg0: i32, %arg1: i32) -> (i32, i32) {
    %c0_i32 = arith.constant 0 : i32
    %c0_i32_0 = arith.constant 0 : i32
    %c0_i32_1 = arith.constant 0 : i32
    return %c0_i32, %c0_i32_0 : i32, i32
  }
  func.func @transform_7(%arg0: i32, %arg1: i32) -> (i32, i32) {
    %c0_i32 = arith.constant 0 : i32
    %c0_i32_0 = arith.constant 0 : i32
    %c0_i32_1 = arith.constant 0 : i32
    return %c0_i32, %c0_i32_0 : i32, i32
  }
  func.func @transform_8(%arg0: i32, %arg1: i32) -> (i32, i32, i32, i32) {
    %c0_i32 = arith.constant 0 : i32
    %c0_i32_0 = arith.constant 0 : i32
    %c0_i32_1 = arith.constant 0 : i32
    return %arg0, %arg1, %c0_i32, %c0_i32_0 : i32, i32, i32, i32
  }
}

</mosaic_0001>

<bundles_post_ra>
// kernel: double_conv_forward.1
= control target key start
LH: loop header
LB: loop body
LE: loop exit
PB: predicated region body
PF: predicated region fallthrough
CT: control target
= control target key end

     0   :  { %s7907_s27 = smov 0   ;;  %s7909_s28 = smov 0   ;;  %s10768_s0 = inlined_call_operand.vmem [shape: bf16[2,20,20,4], index: 0, kind: input, shape index: {}, may-alias: {0,1}]   ;;  %s10769_s1 = inlined_call_operand.vmem [shape: bf16[2,20,20,4], index: 1, kind: input, shape index: {}, may-alias: {0,1}]   ;;  %s10770_s2 = inlined_call_operand.vmem [shape: bf16[9,4,8], index: 2, kind: input, shape index: {}]   ;;  %s10771_s3 = inlined_call_operand.vmem [shape: bf16[9,8,8], index: 3, kind: input, shape index: {}]   ;;  %s10772_s4 = inlined_call_operand.vmem [shape: f32[1,8], index: 4, kind: input, shape index: {}]   ;;  %s10773_s5 = inlined_call_operand.vmem [shape: f32[1,8], index: 5, kind: input, shape index: {}]   ;;  %s10774_s6 = inlined_call_operand.vmem [shape: f32[1,8], index: 6, kind: input, shape index: {}]   ;;  %s10775_s7 = inlined_call_operand.vmem [shape: f32[1,8], index: 7, kind: input, shape index: {}]   ;;  %s10776_s8 = inlined_call_operand.vmem [shape: f32[2,16,16,8], index: 8, kind: output, shape index: {}]  }
   0x1   :  { %s7911_s29 = smov 0   ;;  %s7913_s30 = smov 0  }
   0x2   :  { %s7915_s9 = smov 0  }
   0x3 LB: > { %s27_s10 = sadd.s32 1, %s7848_s29  ;;  %s30_s11 = sadd.s32 1, %s7852_s30  ;;  %s7856_s9 = sphi %s7915_s9, %s18_s9   ;;  %s7852_s30 = sphi %s7913_s30, %s11117_s30   ;;  %s7848_s29 = sphi %s7911_s29, %s11116_s29   ;;  %s7844_s28 = sphi %s7909_s28, %s11115_s28   ;;  %s7840_s27 = sphi %s7907_s27, %s11114_s27  }
   0x4   : > { %p28_p0 = scmp.ge.s32.totalorder %s27_s10, 4  ;;  %p7039_p1 = scmp.ge.s32.totalorder %s7856_s9, 1 }
   0x5   : > { %p306_p2 = scmp.lt.s32.totalorder %s7856_s9, 9 }
   0x6   : > { %s11119_s10 = smov (%p28_p0, %s27_s10), 0  ;;  %s11121_s11 = smov (!%p28_p0, %s30_s11), %s7852_s30 }
   0x7   : > { %p307_p3 = pnand %p7039_p1, %p306_p2  ;;  %p32_p4 = scmp.ge.s32.totalorder %s11121_s11, 2 }
   0x9   : > { %s11123_s11 = smov (%p32_p4, %s11121_s11), 0  ;;  %310 = sbr.rel (%p307_p3) target bundleno = 883 (0x373), region = 52 }
   0xe   : > { %v842_v0 = vld [vmem:[%s10770_s2] sm:$0x3]  ;;  %vm1199_vm0 = vcmask 1041408   ;;  %s7942_s14 = sshll.u32 %s7840_s27, 2  ;;  %v467_v1 = vlaneseq  ;;  %v10777_v2 = vmov 0.0   ;;  %vm7859_vm1 = vmmov 0  }
   0xf   : > { %7402 = vmatprep.subr.bf16.mxu0 %v10777_v2  ;;  %v1201_v3 = vsel %vm1199_vm0, %v842_v0, 0  ;;  %7404 = vmatprep.mubr.msk.bf16.mxu0 %vm7859_vm1, %v10777_v2  ;;  %p362_p5 = scmp.lt.s32.totalorder %s7844_s28, 1  ;;  %p364_p6 = scmp.lt.s32.totalorder %s7942_s14, 19  ;;  %v7860_v4 = vmov 1966171168   ;;  %vm1177_vm14 = vcmask 31744  }
  0x10   : > { %7403 = vmatpush3.bf16.msra.mxu0 %v1201_v3  ;;  %v465_v5 = vunpack.c.l.s4 %v7860_v4  ;;  %7432 = vmatprep.subr.bf16.mxu1 %v10777_v2  ;;  %v7134_v6 = vld [vmem:[%s10770_s2 + $0x2] sm:$0x3]  ;;  %vm1368_vm2 = vsmask.f32 256  ;;  %v7962_v9 = vshrl.u32 %v467_v1, 7  ;;  %s7284_s13 = sadd.s32 4, %s7942_s14 }
  0x11   : > { %7462 = vmatprep.subr.bf16.mxu0 %v10777_v2  ;;  %s11125_s28 = smov (!%p362_p5, %s7844_s28), 1  ;;  %v2193_v7 = vsel %vm1199_vm0, %v7134_v6, 0  ;;  %7434 = vmatprep.mubr.msk.bf16.mxu1 %vm7859_vm1, %v10777_v2  ;;  %vm1369_vm3 = vsmask.f32 1284  ;;  %vm1371_vm4 = vsmask.f32 2312 }
  0x12   : > { %s365_s17 = scalar_select %p364_p6, %s7942_s14, 19  ;;  %v466_v8 = vunpack.c.0.s8 %v465_v5  ;;  %10878 = vst [vmem:[#allocation4_spill] sm:$0xff] %v7962_v9  ;;  %7433 = vmatpush3.bf16.msra.mxu1 %v2193_v7  ;;  %vm1370_vm5 = vmor %vm1368_vm2, %vm1369_vm3  ;;  %vm1373_vm7 = vsmask.f32 3340  ;;  %v7142_v11 = vld [vmem:[%s10770_s2 + $0x4] sm:$0x3] }
  0x13   : > { %s7772_s18 = smul.u32 60, %s11125_s28  ;;  %7492 = vmatprep.subr.bf16.mxu1 %v10777_v2  ;;  %vm1372_vm6 = vmor %vm1370_vm5, %vm1371_vm4  ;;  %vm1375_vm9 = vsmask.f32 4368  ;;  %v7981_v13 = vsel %vm1199_vm0, %v7142_v11, 0  ;;  %vm1377_vm10 = vsmask.f32 5396 }
  0x14   : > { %s7771_s19 = smul.u32 3, %s365_s17  ;;  %v7969_v10 = vsub.s32 %v466_v8, %v7962_v9  ;;  %vm1374_vm8 = vmor %vm1372_vm6, %vm1373_vm7  ;;  %vm1379_vm12 = vsmask.f32 6424  ;;  %vm1381_vm13 = vsmask.f32 7452  ;;  %p8207_p7 = scmp.lt.s32.totalorder %s7284_s13, 19 }
  0x15   : > { %vm7991_vm11 = vmor %vm1374_vm8, %vm1375_vm9  ;;  %vm422_vm4 = vcmask 64512   ;;  %vm436_vm5 = vcmask 60416   ;;  %p388_p8 = scmp.lt.s32.totalorder %s7942_s14, 15 }
  0x16   : > { %s368_s20 = sadd.s32 %s7772_s18, %s7771_s19  ;;  %vm1378_vm15 = vmor %vm7991_vm11, %vm1377_vm10  ;;  %s11127_s13 = smov (!%p8207_p7, %s7284_s13), 19 }
  0x17   : > { %s7041_s23 = sshll.u32 %s368_s20, 2  ;;  %vm1380_vm2 = vmor %vm1378_vm15, %vm1379_vm12  ;;  %s7773_s19 = smul.u32 3, %s11127_s13 }
  0x18   : > { %s7977_s26 = scalar_lea.vmem %s10768_s0, %s7041_s23  ;;  %vm8072_vm3 = vmor %vm1380_vm2, %vm1381_vm13 }
  0x19   : > { %v7049_v12 = vld.sshfl [vmem:[%s7977_s26] sm:$0x33 pattern:$0x75316420]  ;;  %s8346_s20 = sadd.s32 %s7773_s19, %s7772_s18 }
  0x1a   : > { %v7050_v14 = vld.sshfl [vmem:[%s7977_s26 + $0x4] sm:$0x33 pattern:$0x75316420]  ;;  %v463_v15 = vcombine.high %v7049_v12, %v7049_v12  ;;  %v470_v16 = vrot.slane %v7049_v12, %v7969_v10  ;;  %s7043_s18 = sshll.u32 %s8346_s20, 2 }
  0x1b   : > { %v487_v17 = vcombine.high %v7050_v14, %v7050_v14  ;;  %v7986_v18 = vrot.slane %v7050_v14, %v7969_v10  ;;  %v7989_v19 = vld.sshfl [vmem:[%s7977_s26 + $0x8] sm:$0x11 pattern:$0x75316420]  ;;  %s8409_s23 = scalar_lea.vmem %s10769_s1, %s7043_s18 }
  0x1c   : > { %v7996_v21 = vrot.slane %v463_v15, %v7969_v10  ;;  %v7052_v22 = vld.sshfl [vmem:[%s7977_s26 + $0xc] sm:$0x33 pattern:$0x75316420]  ;;  %v8001_v23 = vrot.slane %v7989_v19, %v7969_v10  ;;  %v8003_v24 = vcombine.high %v470_v16, %v470_v16  ;;  %v1384_v29 = vshrl.u32 %v470_v16, 16 }
  0x1d   : > { %v8006_v25 = vrot.slane %v487_v17, %v7969_v10  ;;  %v7053_v26 = vld.sshfl [vmem:[%s7977_s26 + $0x10] sm:$0x33 pattern:$0x75316420]  ;;  %v525_v27 = vcombine.high %v7052_v22, %v7052_v22  ;;  %v8010_v28 = vrot.slane %v7052_v22, %v7969_v10  ;;  %v8062_v53 = vcombine.high %v7986_v18, %v7986_v18 }
  0x1e   : > { %v843_v30 = vcombine.low %v470_v16, %v7996_v21  ;;  %v7067_v31 = vcombine.high %v470_v16, %v7996_v21  ;;  %v549_v32 = vcombine.high %v7053_v26, %v7053_v26  ;;  %v8015_v33 = vrot.slane %v7053_v26, %v7969_v10  ;;  %v8108_v22 = vld.sshfl [vmem:[%s7977_s26 + $0x14] sm:$0x11 pattern:$0x75316420] }
  0x1f   : > { %v845_v34 = vcombine.low %v7986_v18, %v8006_v25  ;;  %v7068_v35 = vcombine.high %v7986_v18, %v8006_v25  ;;  %v8025_v36 = vrot.slane %v525_v27, %v7969_v10  ;;  %v8029_v37 = vcombine.high %v8010_v28, %v8010_v28 }
  0x20   : > { %v853_v38 = vrot.slane %v843_v30, %v7969_v10  ;;  %v860_v39 = vrot.slane %v7067_v31, %v7969_v10  ;;  %v8034_v40 = vrot.slane %v549_v32, %v7969_v10  ;;  %v8038_v41 = vcombine.high %v8015_v33, %v8015_v33 }
  0x21   : > { %v867_v42 = vrot.slane %v845_v34, %v7969_v10  ;;  %v874_v43 = vrot.slane %v7068_v35, %v7969_v10  ;;  %v8044_v44 = vcombine.high %v8025_v36, %v8025_v36  ;;  %v892_v45 = vcombine.low %v8001_v23, %v8010_v28  ;;  %v7055_v35 = vld.sshfl [vmem:[%s7977_s26 + $0x18] sm:$0x33 pattern:$0x75316420] }
  0x22   : > { %v875_v46 = vcombine.low %v853_v38, %v860_v39  ;;  %v893_v47 = vcombine.low %v8025_v36, %v8029_v37  ;;  %v895_v48 = vcombine.low %v8034_v40, %v8038_v41  ;;  %v8055_v49 = vcombine.high %v7996_v21, %v7996_v21 }
  0x23   : > { %v876_v50 = vcombine.low %v867_v42, %v874_v43  ;;  %v894_v51 = vcombine.low %v8044_v44, %v8015_v33  ;;  %v902_v52 = vrot.slane %v892_v45, %v7969_v10  ;;  %v1389_v58 = vshll.u32 %v7996_v21, 16  ;;  %v7056_v45 = vld.sshfl [vmem:[%s7977_s26 + $0x1c] sm:$0x33 pattern:$0x75316420] }
  0x24   : > { %v883_v54 = vrot.slane %v875_v46, %v7969_v10  ;;  %v8066_v55 = vrot.slane %v893_v47, %v7969_v10  ;;  %v8069_v56 = vrot.slane %v895_v48, %v7969_v10  ;;  %v1392_v61 = vshrl.u32 %v7996_v21, 16 }
  0x25   : > { %v890_v59 = vrot.slane %v876_v50, %v7969_v10  ;;  %v8079_v60 = vrot.slane %v894_v51, %v7969_v10  ;;  %v1397_v62 = vshll.u32 %v8003_v24, 16  ;;  %v8086_v0 = vcombine.high %v8006_v25, %v8006_v25 }
  0x26   : > { %v924_v63 = vcombine.low %v902_v52, %v8066_v55  ;;  %v1400_v1 = vshrl.u32 %v8003_v24, 16  ;;  %v1405_v3 = vshll.u32 %v8055_v49, 16  ;;  %v1391_v7 = vsel %vm8072_vm3, %v1384_v29, %v1389_v58 }
  0x27   : > { %v891_v4 = vcombine.low %v883_v54, %v890_v59  ;;  %v925_v5 = vcombine.low %v8079_v60, %v8069_v56  ;;  %v3763_v6 = vcombine.low %v8066_v55, %v8079_v60  ;;  %v1399_v11 = vsel %vm8072_vm3, %v1392_v61, %v1397_v62 }
  0x28   : > { %v932_v8 = vrot.slane %v924_v63, %v7969_v10  ;;  %v1408_v12 = vshrl.u32 %v8055_v49, 16  ;;  %v1413_v14 = vshll.u32 %v7986_v18, 16  ;;  %v1407_v16 = vsel %vm8072_vm3, %v1400_v1, %v1405_v3 }
  0x29   : > { %7405 = vmatmul.mubr.msk.bf16.vlgmr.msra.gmra.mxu0 %vm1177_vm14, %v891_v4  ;;  %v939_v15 = vrot.slane %v925_v5, %v7969_v10  ;;  %v1416_v17 = vshrl.u32 %v7986_v18, 16  ;;  %v1421_v20 = vshll.u32 %v8006_v25, 16  ;;  %v1424_v27 = vshrl.u32 %v8006_v25, 16 }
  0x2a   : > { %7463 = vmatpush3.bf16.msra.mxu0 %v7981_v13  ;;  %7408 = vmatprep.mubr.msk.bf16.mxu0 %vm7859_vm1, %v10777_v2  ;;  %v1415_v26 = vsel %vm8072_vm3, %v1408_v12, %v1413_v14  ;;  %v1429_v29 = vshll.u32 %v8062_v53, 16  ;;  %v1432_v30 = vshrl.u32 %v8062_v53, 16  ;;  %v1437_v34 = vshll.u32 %v8086_v0, 16 }
  0x2b   : > { %v940_v31 = vcombine.low %v932_v8, %v939_v15  ;;  %v1423_v32 = vsel %vm8072_vm3, %v1416_v17, %v1421_v20  ;;  %v1440_v13 = vshrl.u32 %v8086_v0, 16  ;;  %7522 = vmatprep.subr.bf16.mxu0 %v10777_v2  ;;  %v1445_v39 = vshll.u32 %v8001_v23, 16 }
  0x2c   : > { %v1431_v38 = vsel %vm8072_vm3, %v1424_v27, %v1429_v29  ;;  %v1837_v42 = vcombine.low %v1391_v7, %v1399_v11  ;;  %v1838_v43 = vcombine.low %v1407_v16, %v1415_v26  ;;  %v1439_v46 = vsel %vm8072_vm3, %v1432_v30, %v1437_v34  ;;  %v7159_v29 = vld [vmem:[%s10770_s2 + $0x6] sm:$0x3] }
  0x2d   : > { %v1839_v47 = vcombine.low %v1423_v32, %v1431_v38  ;;  %v8132_v48 = vcombine.high %v8034_v40, %v8034_v40  ;;  %v8136_v50 = vrot.slane %v8108_v22, %v7969_v10  ;;  %v1447_v51 = vsel %vm8072_vm3, %v1440_v13, %v1445_v39 }
  0x2e   : > { %v1847_v52 = vrot.slane %v1837_v42, %v7969_v10  ;;  %v1854_v54 = vrot.slane %v1838_v43, %v7969_v10  ;;  %v587_v58 = vcombine.high %v7055_v35, %v7055_v35  ;;  %v1840_v59 = vcombine.low %v1439_v46, %v1447_v51 }
  0x2f   : > { %v1861_v61 = vrot.slane %v1839_v47, %v7969_v10  ;;  %v8144_v62 = vrot.slane %v7055_v35, %v7969_v10  ;;  %v611_v63 = vcombine.high %v7056_v45, %v7056_v45  ;;  %v8150_v4 = vrot.slane %v7056_v45, %v7969_v10 }
  0x30   : > { %v1869_v1 = vcombine.low %v1847_v52, %v1854_v54  ;;  %v8147_v3 = vrot.slane %v587_v58, %v7969_v10  ;;  %v941_v5 = vcombine.low %v8132_v48, %v8136_v50  ;;  %v1868_v7 = vrot.slane %v1840_v59, %v7969_v10 }
  0x31   : > { %7409 = vmatmul.mubr.msk.bf16.gmra.mxu0 %vm1177_vm14, %v940_v31  ;;  %v8157_v8 = vrot.slane %v611_v63, %v7969_v10  ;;  %v1320_v11 = vcombine.high %v7989_v19, %v7989_v19  ;;  %v1448_v12 = vshrl.u32 %v8001_v23, 16  ;;  %v1457_v27 = vshrl.u32 %v8010_v28, 16 }
  0x32   : > { %v1877_v14 = vrot.slane %v1869_v1, %v7969_v10  ;;  %7412 = vmatprep.mubr.msk.bf16.mxu0 %vm7859_vm1, %v10777_v2  ;;  %v942_v15 = vcombine.low %v8144_v62, %v8147_v3  ;;  %v7069_v16 = vcombine.high %v8144_v62, %v8147_v3  ;;  %v8170_v17 = vrot.slane %v941_v5, %v7969_v10 }
  0x33   : > { %v1870_v20 = vcombine.low %v1861_v61, %v1868_v7  ;;  %v944_v19 = vcombine.low %v8150_v4, %v8157_v8  ;;  %v8175_v26 = vrot.slane %v1320_v11, %v7969_v10  ;;  %v1462_v34 = vshll.u32 %v8025_v36, 16 }
  0x34   : > { %v8183_v30 = vrot.slane %v942_v15, %v7969_v10  ;;  %v8186_v31 = vrot.slane %v7069_v16, %v7969_v10  ;;  %v3764_v32 = vcombine.low %v8069_v56, %v8170_v17  ;;  %v1465_v39 = vshrl.u32 %v8025_v36, 16 }
  0x35   : > { %v1884_v13 = vrot.slane %v1870_v20, %v7969_v10  ;;  %v8193_v35 = vrot.slane %v944_v19, %v7969_v10  ;;  %v1453_v38 = vshll.u32 %v8175_v26, 16  ;;  %v8201_v43 = vsel %vm8072_vm3, %v1457_v27, %v1462_v34  ;;  %v7176_v34 = vld [vmem:[%s10770_s2 + $0x8] sm:$0x3] }
  0x36   : > { %10883 = vst [vmem:[#allocation5_spill] sm:$0xff] %v8183_v30  ;;  %10884 = vst [vmem:[#allocation6_spill] sm:$0xff] %v8186_v31  ;;  %v973_v42 = vcombine.low %v8170_v17, %v8183_v30  ;;  %v1470_v56 = vshll.u32 %v8029_v37, 16  ;;  %v3056_v45 = vsel %vm1199_vm0, %v7159_v29, 0  ;;  %v1473_v52 = vshrl.u32 %v8029_v37, 16 }
  0x37   : > { %10885 = vst [vmem:[#allocation7_spill] sm:$0xff] %v8193_v35  ;;  %v1885_v46 = vcombine.low %v1877_v14, %v1884_v13  ;;  %v974_v47 = vcombine.low %v8186_v31, %v8193_v35  ;;  %v1455_v51 = vsel %vm8072_vm3, %v1448_v12, %v1453_v38  ;;  %v1478_v59 = vshll.u32 %v8044_v44, 16  ;;  %v8263_v29 = vld.sshfl [vmem:[%s7977_s26 + $0x20] sm:$0x11 pattern:$0x75316420] }
  0x38   : > { %v981_v54 = vrot.slane %v973_v42, %v7969_v10  ;;  %v8219_v58 = vsel %vm8072_vm3, %v1465_v39, %v1470_v56  ;;  %v1481_v61 = vshrl.u32 %v8044_v44, 16  ;;  %v1486_v1 = vshll.u32 %v8015_v33, 16  ;;  %v7058_v56 = vld.sshfl [vmem:[%s7977_s26 + $0x24] sm:$0x33 pattern:$0x75316420] }
  0x39   : > { %7435 = vmatmul.mubr.msk.bf16.vlgmr.msra.gmra.mxu1 %vm1177_vm14, %v1885_v46  ;;  %v988_v63 = vrot.slane %v974_v47, %v7969_v10  ;;  %v1489_v37 = vshrl.u32 %v8015_v33, 16  ;;  %v1494_v5 = vshll.u32 %v8034_v40, 16  ;;  %v8232_v7 = vsel %vm8072_vm3, %v1473_v52, %v1478_v59  ;;  %v8288_v52 = vld.sshfl [vmem:[%s7977_s26 + $0x28] sm:$0x33 pattern:$0x75316420] }
  0x3a   : > { %7438 = vmatprep.mubr.msk.bf16.mxu1 %vm7859_vm1, %v10777_v2  ;;  %v1497_v44 = vshrl.u32 %v8034_v40, 16  ;;  %v1502_v11 = vshll.u32 %v8038_v41, 16  ;;  %v1505_v12 = vshrl.u32 %v8038_v41, 16  ;;  %7493 = vmatpush3.bf16.msra.mxu1 %v3056_v45  ;;  %v8245_v15 = vsel %vm8072_vm3, %v1481_v61, %v1486_v1 }
  0x3b   : > { %v989_v14 = vcombine.low %v981_v54, %v988_v63  ;;  %v8249_v16 = vsel %vm8072_vm3, %v1489_v37, %v1494_v5  ;;  %v1510_v17 = vshll.u32 %v8132_v48, 16  ;;  %7552 = vmatprep.subr.bf16.mxu1 %v10777_v2  ;;  %v1886_v20 = vcombine.low %v1455_v51, %v8201_v43  ;;  %v8427_v35 = vld.sshfl [vmem:[%s7977_s26 + $0x2c] sm:$0x11 pattern:$0x75316420]  ;;  %s7046_s26 = sshll.u32 %s11125_s28, 5 }
  0x3c   : > { %v8255_v41 = vsel %vm8072_vm3, %v1497_v44, %v1502_v11  ;;  %v1887_v19 = vcombine.low %v8219_v58, %v8232_v7  ;;  %v1888_v27 = vcombine.low %v8245_v15, %v8249_v16  ;;  %v8294_v54 = vrot.slane %v3763_v6, %v7969_v10 }
  0x3d   : > { %7413 = vmatmul.mubr.msk.bf16.gmra.mxu0 %vm1177_vm14, %v989_v14  ;;  %v8271_v13 = vsel %vm8072_vm3, %v1505_v12, %v1510_v17  ;;  %v1896_v46 = vrot.slane %v1886_v20, %v7969_v10  ;;  %v8297_v59 = vrot.slane %v3764_v32, %v7969_v10  ;;  %v8301_v61 = vrot.slane %v8263_v29, %v7969_v10 }
  0x3e   : > { %v1889_v45 = vcombine.low %v8255_v41, %v8271_v13  ;;  %v1903_v47 = vrot.slane %v1887_v19, %v7969_v10  ;;  %v1910_v51 = vrot.slane %v1888_v27, %v7969_v10  ;;  %7416 = vmatprep.mubr.msk.bf16.mxu0 %vm7859_vm1, %v10777_v2  ;;  %10887 = vst [vmem:[#allocation8_spill] sm:$0xff] %v8294_v54  ;;  %v8304_v63 = vsel %vm1199_vm0, %v7176_v34, 0 }
  0x3f   : > { %10888 = vst [vmem:[#allocation9_spill] sm:$0xff] %v8297_v59  ;;  %v649_v5 = vcombine.high %v7058_v56, %v7058_v56  ;;  %v8309_v55 = vrot.slane %v7058_v56, %v7969_v10  ;;  %v8313_v60 = vrot.slane %v8288_v52, %v7969_v10  ;;  %v7070_v6 = vcombine.high %v8150_v4, %v8157_v8 }
  0x40   : > { %v1917_v1 = vrot.slane %v1889_v45, %v7969_v10  ;;  %v1918_v37 = vcombine.low %v1896_v46, %v1903_v47  ;;  %v8319_v32 = vcombine.high %v8144_v62, %v8144_v62  ;;  %v8323_v44 = vcombine.high %v8147_v3, %v8147_v3 }
  0x41   : > { %10889 = vst [vmem:[#allocation10_spill] sm:$0xff] %v8309_v55  ;;  %10890 = vst [vmem:[#allocation11_spill] sm:$0xff] %v8313_v60  ;;  %v8327_v14 = vrot.slane %v649_v5, %v7969_v10  ;;  %v8331_v17 = vcombine.high %v8309_v55, %v8309_v55  ;;  %v991_v20 = vcombine.low %v8301_v61, %v8309_v55  ;;  %v1513_v47 = vshrl.u32 %v8132_v48, 16 }
  0x42   : > { %v1919_v11 = vcombine.low %v1910_v51, %v1917_v1  ;;  %v1926_v12 = vrot.slane %v1918_v37, %v7969_v10  ;;  %v8336_v19 = vrot.slane %v7070_v6, %v7969_v10  ;;  %v8340_v27 = vcombine.high %v8150_v4, %v8150_v4 }
  0x43   : > { %v1328_v34 = vcombine.high %v8108_v22, %v8108_v22  ;;  %v8351_v45 = vcombine.high %v8327_v14, %v8327_v14  ;;  %v992_v46 = vcombine.low %v8327_v14, %v8331_v17  ;;  %v8357_v51 = vrot.slane %v991_v20, %v7969_v10 }
  0x44   : > { %10891 = vst [vmem:[#allocation12_spill] sm:$0xff] %v8336_v19  ;;  %v1933_v56 = vrot.slane %v1919_v11, %v7969_v10  ;;  %v1518_v1 = vshll.u32 %v8136_v50, 16  ;;  %v1521_v37 = vshrl.u32 %v8136_v50, 16  ;;  %v1530_v42 = vshrl.u32 %v8144_v62, 16 }
  0x45   : > { %10892 = vst [vmem:[#allocation13_spill] sm:$0xff] %v8357_v51  ;;  %v8360_v22 = vrot.slane %v1328_v34, %v7969_v10  ;;  %v993_v6 = vcombine.low %v8351_v45, %v8313_v60  ;;  %v8367_v11 = vrot.slane %v992_v46, %v7969_v10  ;;  %v1022_v48 = vcombine.low %v8336_v19, %v8357_v51 }
  0x46   : > { %v1934_v5 = vcombine.low %v1926_v12, %v1933_v56  ;;  %v8374_v20 = vsel %vm8072_vm3, %v1513_v47, %v1518_v1  ;;  %v1535_v39 = vshll.u32 %v8147_v3, 16  ;;  %v1538_v56 = vshrl.u32 %v8147_v3, 16 }
  0x47   : > { %10893 = vst [vmem:[#allocation14_spill] sm:$0xff] %v8367_v11  ;;  %v1526_v34 = vshll.u32 %v8360_v22, 16  ;;  %v8381_v12 = vrot.slane %v993_v6, %v7969_v10  ;;  %v1543_v46 = vshll.u32 %v8319_v32, 16  ;;  %v1546_v38 = vshrl.u32 %v8319_v32, 16 }
  0x48   : > { %7439 = vmatmul.mubr.msk.bf16.gmra.mxu1 %vm1177_vm14, %v1934_v5  ;;  %v1030_v2 = vrot.slane %v1022_v48, %v7969_v10  ;;  %v10895_v47 = vmov 0.0   ;;  %v8395_v5 = vsel %vm8072_vm3, %v1530_v42, %v1535_v39  ;;  %v1551_v6 = vshll.u32 %v8323_v44, 16 }
  0x49   : > { %10894 = vst [vmem:[#allocation15_spill] sm:$0xff] %v8381_v12  ;;  %7442 = vmatprep.mubr.msk.bf16.mxu1 %vm7859_vm1, %v10895_v47  ;;  %v8391_v1 = vsel %vm8072_vm3, %v1521_v37, %v1526_v34  ;;  %10897 = vst [vmem:[#allocation17_spill] sm:$0xff] %v8395_v5  ;;  %v1023_v9 = vcombine.low %v8367_v11, %v8381_v12  ;;  %v8402_v48 = vsel %vm8072_vm3, %v1538_v56, %v1543_v46 }
  0x4a   : > { %10896 = vst [vmem:[#allocation16_spill] sm:$0xff] %v8391_v1  ;;  %10898 = vst [vmem:[#allocation18_spill] sm:$0xff] %v8402_v48  ;;  %v1554_v51 = vshrl.u32 %v8323_v44, 16  ;;  %v1559_v30 = vshll.u32 %v8150_v4, 16  ;;  %v8413_v39 = vsel %vm8072_vm3, %v1546_v38, %v1551_v6  ;;  %v1562_v42 = vshrl.u32 %v8150_v4, 16 }
  0x4b   : > { %10899 = vst [vmem:[#allocation19_spill] sm:$0xff] %v8413_v39  ;;  %v1567_v37 = vshll.u32 %v8157_v8, 16  ;;  %v1570_v34 = vshrl.u32 %v8157_v8, 16  ;;  %v1037_v56 = vrot.slane %v1023_v9, %v7969_v10  ;;  %v1575_v12 = vshll.u32 %v8340_v27, 16  ;;  %423 = vst.msk [vmem:[#allocation2] sm:$0xff] %vm422_vm4, %v10895_v47 }
  0x4c   : > { %v8421_v46 = vsel %vm8072_vm3, %v1554_v51, %v1559_v30  ;;  %v1935_v11 = vcombine.low %v8374_v20, %v8391_v1  ;;  %v1936_v6 = vcombine.low %v8395_v5, %v8402_v48  ;;  %v7061_v51 = vld.sshfl [vmem:[%s8409_s23] sm:$0x33 pattern:$0x75316420]  ;;  %v1594_v5 = vshrl.u32 %v8301_v61, 16  ;;  %424 = vst.msk [vmem:[#allocation2 + $0x8] sm:$0xff] %vm422_vm4, %v10895_v47 }
  0x4d   : > { %10900 = vst [vmem:[#allocation20_spill] sm:$0xff] %v8421_v46  ;;  %v8431_v38 = vsel %vm8072_vm3, %v1562_v42, %v1567_v37  ;;  %v1937_v9 = vcombine.low %v8413_v39, %v8421_v46  ;;  %v1038_v19 = vcombine.low %v1030_v2, %v1037_v56  ;;  %v8442_v31 = vsel %vm8072_vm3, %v1570_v34, %v1575_v12 }
  0x4e   : > { %10901 = vst [vmem:[#allocation21_spill] sm:$0xff] %v8431_v38  ;;  %10902 = vst [vmem:[#allocation22_spill] sm:$0xff] %v8442_v31  ;;  %v1945_v54 = vrot.slane %v1935_v11, %v7969_v10  ;;  %v673_v42 = vcombine.high %v8288_v52, %v8288_v52  ;;  %v10903_v37 = vcombine.low %v8201_v43, %v8219_v58 }
  0x4f   : > { %v1938_v30 = vcombine.low %v8431_v38, %v8442_v31  ;;  %v8456_v2 = vrot.slane %v1936_v6, %v7969_v10  ;;  %v8459_v12 = vrot.slane %v1937_v9, %v7969_v10  ;;  %7417 = vmatmul.mubr.msk.bf16.gmra.mxu0 %vm1177_vm14, %v1038_v19  ;;  %v8467_v52 = vcombine.high %v8313_v60, %v8313_v60 }
  0x50   : > { %v8451_v59 = vrot.slane %v10903_v37, %v7969_v10  ;;  %v8463_v11 = vrot.slane %v673_v42, %v7969_v10  ;;  %v8471_v43 = vrot.slane %v8427_v35, %v7969_v10  ;;  %v711_v58 = vcombine.high %v7061_v51, %v7061_v51  ;;  %7420 = vmatprep.mubr.msk.bf16.mxu0 %vm7859_vm1, %v10895_v47 }
  0x51   : > { %10905 = vst [vmem:[#allocation24_spill] sm:$0xff] %v8456_v2  ;;  %10906 = vst [vmem:[#allocation25_spill] sm:$0xff] %v8459_v12  ;;  %v8474_v34 = vrot.slane %v1938_v30, %v7969_v10  ;;  %v1967_v56 = vcombine.low %v1945_v54, %v8456_v2  ;;  %v8482_v6 = vrot.slane %v7061_v51, %v7969_v10 }
  0x52   : > { %10904 = vst [vmem:[#allocation23_spill] sm:$0xff] %v8451_v59  ;;  %10907 = vst [vmem:[#allocation26_spill] sm:$0xff] %v8471_v43  ;;  %v8486_v9 = vcombine.high %v8463_v11, %v8463_v11  ;;  %v8489_v42 = vrot.slane %v711_v58, %v7969_v10  ;;  %v1039_v30 = vcombine.low %v8463_v11, %v8467_v52  ;;  %v1603_v59 = vshrl.u32 %v8309_v55, 16 }
  0x53   : > { %10908 = vst [vmem:[#allocation27_spill] sm:$0xff] %v8474_v34  ;;  %10909 = vst [vmem:[#allocation28_spill] sm:$0xff] %v8482_v6  ;;  %v8495_v54 = vcombine.high %v8157_v8, %v8157_v8  ;;  %v10911_v37 = vcombine.low %v8232_v7, %v8245_v15  ;;  %v1968_v19 = vcombine.low %v8459_v12, %v8474_v34 }
  0x54   : > { %10910 = vst [vmem:[#allocation29_spill] sm:$0xff] %v8489_v42  ;;  %v1975_v2 = vrot.slane %v1967_v56, %v7969_v10  ;;  %v1336_v58 = vcombine.high %v8263_v29, %v8263_v29  ;;  %v1040_v31 = vcombine.low %v8486_v9, %v8471_v43  ;;  %v1041_v46 = vcombine.low %v8482_v6, %v8489_v42 }
  0x55   : > { %v8501_v51 = vrot.slane %v10911_v37, %v7969_v10  ;;  %v7071_v38 = vcombine.high %v8482_v6, %v8489_v42  ;;  %v8515_v7 = vrot.slane %v1039_v30, %v7969_v10  ;;  %v1982_v15 = vrot.slane %v1968_v19, %v7969_v10  ;;  %425 = vst.msk [vmem:[#allocation2 + $0x10] sm:$0xff] %vm422_vm4, %v10895_v47 }
  0x56   : > { %v8519_v37 = vrot.slane %v1336_v58, %v7969_v10  ;;  %v1578_v56 = vshrl.u32 %v8340_v27, 16  ;;  %v1583_v29 = vshll.u32 %v8495_v54, 16  ;;  %v8524_v12 = vrot.slane %v1040_v31, %v7969_v10  ;;  %426 = vst.msk [vmem:[#allocation2 + $0x18] sm:$0xff] %vm422_vm4, %v10895_v47  ;;  %427 = vst.msk [vmem:[#allocation2 + $0x20] sm:$0xff] %vm422_vm4, %v10895_v47 }
  0x57   : > { %10912 = vst [vmem:[#allocation30_spill] sm:$0xff] %v8501_v51  ;;  %10913 = vst [vmem:[#allocation31_spill] sm:$0xff] %v8515_v7  ;;  %v8527_v48 = vrot.slane %v1041_v46, %v7969_v10  ;;  %v8530_v39 = vrot.slane %v7071_v38, %v7969_v10  ;;  %v1586_v30 = vshrl.u32 %v8495_v54, 16  ;;  %v1983_v1 = vcombine.low %v1975_v2, %v1982_v15 }
  0x58   : > { %10914 = vst [vmem:[#allocation32_spill] sm:$0xff] %v8524_v12  ;;  %v8535_v19 = vsel %vm8072_vm3, %v1578_v56, %v1583_v29  ;;  %v1591_v58 = vshll.u32 %v8301_v61, 16  ;;  %v1071_v31 = vcombine.low %v8515_v7, %v8524_v12  ;;  %v1599_v38 = vshll.u32 %v8519_v37, 16  ;;  %428 = vst.msk [vmem:[#allocation2 + $0x28] sm:$0xff] %vm422_vm4, %v10895_v47 }
  0x59   : > { %10915 = vst [vmem:[#allocation33_spill] sm:$0xff] %v8527_v48  ;;  %10916 = vst [vmem:[#allocation34_spill] sm:$0xff] %v8530_v39  ;;  %v1072_v46 = vcombine.low %v8527_v48, %v8530_v39  ;;  %7443 = vmatmul.mubr.msk.bf16.gmra.mxu1 %vm1177_vm14, %v1983_v1  ;;  %v1608_v15 = vshll.u32 %v8327_v14, 16  ;;  %v1611_v56 = vshrl.u32 %v8327_v14, 16  ;;  %v1616_v29 = vshll.u32 %v8331_v17, 16 }
  0x5a   : > { %10917 = vst [vmem:[#allocation35_spill] sm:$0xff] %v8535_v19  ;;  %v8548_v2 = vsel %vm8072_vm3, %v1586_v30, %v1591_v58  ;;  %v1079_v12 = vrot.slane %v1071_v31, %v7969_v10  ;;  %7446 = vmatprep.mubr.msk.bf16.mxu1 %vm7859_vm1, %v10895_v47  ;;  %v8559_v1 = vsel %vm8072_vm3, %v1594_v5, %v1599_v38  ;;  %v1619_v30 = vshrl.u32 %v8331_v17, 16  ;;  %v7062_v58 = vld.sshfl [vmem:[%s8409_s23 + $0x4] sm:$0x33 pattern:$0x75316420] }
  0x5b   : > { %10918 = vst [vmem:[#allocation36_spill] sm:$0xff] %v8548_v2  ;;  %v1086_v48 = vrot.slane %v1072_v46, %v7969_v10  ;;  %10919 = vst [vmem:[#allocation37_spill] sm:$0xff] %v8559_v1  ;;  %v8565_v39 = vsel %vm8072_vm3, %v1603_v59, %v1608_v15  ;;  %v8569_v31 = vsel %vm8072_vm3, %v1611_v56, %v1616_v29  ;;  %v1624_v46 = vshll.u32 %v8351_v45, 16 }
  0x5c   : > { %10920 = vst [vmem:[#allocation38_spill] sm:$0xff] %v8565_v39  ;;  %10921 = vst [vmem:[#allocation39_spill] sm:$0xff] %v8569_v31  ;;  %v1627_v7 = vshrl.u32 %v8351_v45, 16  ;;  %v1632_v5 = vshll.u32 %v8313_v60, 16  ;;  %v1635_v17 = vshrl.u32 %v8313_v60, 16  ;;  %v1640_v38 = vshll.u32 %v8463_v11, 16 }
  0x5d   : > { %v8574_v51 = vld.sshfl [vmem:[%s8409_s23 + $0x8] sm:$0x11 pattern:$0x75316420]  ;;  %v1087_v55 = vcombine.low %v1079_v12, %v1086_v48  ;;  %v8581_v59 = vsel %vm8072_vm3, %v1619_v30, %v1624_v46  ;;  %v1984_v15 = vcombine.low %v8535_v19, %v8548_v2  ;;  %v1985_v56 = vcombine.low %v8559_v1, %v8565_v39  ;;  %429 = vst.msk [vmem:[#allocation2 + $0x30] sm:$0xff] %vm422_vm4, %v10895_v47 }
  0x5e   : > { %10922 = vst [vmem:[#allocation40_spill] sm:$0xff] %v8581_v59  ;;  %v7064_v45 = vld.sshfl [vmem:[%s8409_s23 + $0xc] sm:$0x33 pattern:$0x75316420]  ;;  %v735_v29 = vcombine.high %v7062_v58, %v7062_v58  ;;  %v8591_v48 = vsel %vm8072_vm3, %v1627_v7, %v1632_v5  ;;  %v8595_v12 = vsel %vm8072_vm3, %v1635_v17, %v1640_v38  ;;  %v1986_v30 = vcombine.low %v8569_v31, %v8581_v59 }
  0x5f   : > { %7421 = vmatmul.mubr.msk.bf16.gmra.mxu0 %vm1177_vm14, %v1087_v55  ;;  %10923 = vst [vmem:[#allocation41_spill] sm:$0xff] %v8591_v48  ;;  %10924 = vst [vmem:[#allocation42_spill] sm:$0xff] %v8595_v12  ;;  %v8600_v46 = vrot.slane %v7062_v58, %v7969_v10  ;;  %v1987_v39 = vcombine.low %v8591_v48, %v8595_v12  ;;  %v8605_v2 = vrot.slane %v1984_v15, %v7969_v10 }
  0x60   : > { %v8608_v55 = vrot.slane %v1985_v56, %v7969_v10  ;;  %7424 = vmatprep.mubr.msk.bf16.mxu0 %vm7859_vm1, %v10895_v47  ;;  %v8613_v7 = vrot.slane %v735_v29, %v7969_v10  ;;  %v8616_v5 = vrot.slane %v1986_v30, %v7969_v10  ;;  %v8620_v58 = vrot.slane %v8574_v51, %v7969_v10 }
  0x61   : > { %10925 = vst [vmem:[#allocation43_spill] sm:$0xff] %v8600_v46  ;;  %10926 = vst [vmem:[#allocation44_spill] sm:$0xff] %v8605_v2  ;;  %v773_v17 = vcombine.high %v7064_v45, %v7064_v45  ;;  %v8623_v38 = vrot.slane %v7064_v45, %v7969_v10  ;;  %v8626_v15 = vrot.slane %v1987_v39, %v7969_v10 }
  0x62   : > { %10927 = vst [vmem:[#allocation45_spill] sm:$0xff] %v8608_v55  ;;  %10928 = vst [vmem:[#allocation46_spill] sm:$0xff] %v8613_v7  ;;  %v2016_v56 = vcombine.low %v8605_v2, %v8608_v55  ;;  %v1088_v30 = vcombine.low %v8600_v46, %v8613_v7  ;;  %v7072_v39 = vcombine.high %v8600_v46, %v8613_v7 }
  0x63   : > { %10929 = vst [vmem:[#allocation47_spill] sm:$0xff] %v8616_v5  ;;  %10930 = vst [vmem:[#allocation48_spill] sm:$0xff] %v8626_v15  ;;  %v8635_v12 = vrot.slane %v773_v17, %v7969_v10  ;;  %v8639_v59 = vcombine.high %v8623_v38, %v8623_v38  ;;  %v1090_v45 = vcombine.low %v8620_v58, %v8623_v38 }
  0x64   : > { %v10931_v29 = vcombine.low %v8249_v16, %v8255_v41  ;;  %v2017_v17 = vcombine.low %v8616_v5, %v8626_v15  ;;  %v2024_v2 = vrot.slane %v2016_v56, %v7969_v10  ;;  %v8655_v34 = vrot.slane %v1088_v30, %v7969_v10  ;;  %430 = vst.msk [vmem:[#allocation2 + $0x38] sm:$0xff] %vm422_vm4, %v10895_v47 }
  0x65   : > { %v1091_v48 = vcombine.low %v8635_v12, %v8639_v59  ;;  %v8660_v31 = vrot.slane %v7072_v39, %v7969_v10  ;;  %v8663_v1 = vrot.slane %v1090_v45, %v7969_v10  ;;  %v8667_v16 = vcombine.high %v8482_v6, %v8482_v6  ;;  %431 = vst.msk [vmem:[#allocation2 + $0x40] sm:$0xff] %vm422_vm4, %v10895_v47 }
  0x66   : > { %v8649_v55 = vrot.slane %v10931_v29, %v7969_v10  ;;  %10933 = vst [vmem:[#allocation50_spill] sm:$0xff] %v8655_v34  ;;  %v2031_v41 = vrot.slane %v2017_v17, %v7969_v10  ;;  %v8672_v56 = vcombine.high %v8489_v42, %v8489_v42  ;;  %v1344_v29 = vcombine.high %v8427_v35, %v8427_v35 }
  0x67   : > { %10934 = vst [vmem:[#allocation51_spill] sm:$0xff] %v8660_v31  ;;  %10935 = vst [vmem:[#allocation52_spill] sm:$0xff] %v8663_v1  ;;  %v1643_v30 = vshrl.u32 %v8463_v11, 16  ;;  %v8678_v39 = vrot.slane %v1091_v48, %v7969_v10  ;;  %v1120_v45 = vcombine.low %v8655_v34, %v8660_v31  ;;  %v1648_v15 = vshll.u32 %v8467_v52, 16 }
  0x68   : > { %10932 = vst [vmem:[#allocation49_spill] sm:$0xff] %v8649_v55  ;;  %10936 = vst [vmem:[#allocation53_spill] sm:$0xff] %v8667_v16  ;;  %v1651_v5 = vshrl.u32 %v8467_v52, 16  ;;  %v2032_v17 = vcombine.low %v2024_v2, %v2031_v41  ;;  %v8685_v19 = vrot.slane %v1344_v29, %v7969_v10  ;;  %v1656_v55 = vshll.u32 %v8486_v9, 16 }
  0x69   : > { %10937 = vst [vmem:[#allocation54_spill] sm:$0xff] %v8672_v56  ;;  %10938 = vst [vmem:[#allocation55_spill] sm:$0xff] %v8678_v39  ;;  %v1659_v35 = vshrl.u32 %v8486_v9, 16  ;;  %v1121_v48 = vcombine.low %v8663_v1, %v8678_v39  ;;  %v1128_v60 = vrot.slane %v1120_v45, %v7969_v10  ;;  %v8694_v31 = vsel %vm8072_vm3, %v1643_v30, %v1648_v15 }
  0x6a   : > { %10939 = vst [vmem:[#allocation56_spill] sm:$0xff] %v8685_v19  ;;  %10940 = vst [vmem:[#allocation57_spill] sm:$0xff] %v8694_v31  ;;  %v1664_v52 = vshll.u32 %v8471_v43, 16  ;;  %7447 = vmatmul.mubr.msk.bf16.gmra.mxu1 %vm1177_vm14, %v2032_v17  ;;  %v8700_v2 = vsel %vm8072_vm3, %v1651_v5, %v1656_v55  ;;  %v1667_v41 = vshrl.u32 %v8471_v43, 16  ;;  %v1672_v9 = vshll.u32 %v8685_v19, 16 }
  0x6b   : > { %10941 = vst [vmem:[#allocation58_spill] sm:$0xff] %v8700_v2  ;;  %v1676_v29 = vshrl.u32 %v8482_v6, 16  ;;  %v1135_v45 = vrot.slane %v1121_v48, %v7969_v10  ;;  %7450 = vmatprep.mubr.msk.bf16.mxu1 %vm7859_vm1, %v10895_v47  ;;  %v1681_v30 = vshll.u32 %v8489_v42, 16  ;;  %v1684_v55 = vshrl.u32 %v8489_v42, 16  ;;  %432 = vst.msk [vmem:[#allocation2 + $0x48] sm:$0xff] %vm422_vm4, %v10895_v47 }
  0x6c   : > { %v8710_v15 = vsel %vm8072_vm3, %v1659_v35, %v1664_v52  ;;  %v7065_v5 = vld.sshfl [vmem:[%s8409_s23 + $0x10] sm:$0x33 pattern:$0x75316420]  ;;  %v8717_v17 = vsel %vm8072_vm3, %v1667_v41, %v1672_v9  ;;  %v1689_v1 = vshll.u32 %v8667_v16, 16  ;;  %v1692_v48 = vshrl.u32 %v8667_v16, 16 }
  0x6d   : > { %10942 = vst [vmem:[#allocation59_spill] sm:$0xff] %v8710_v15  ;;  %10943 = vst [vmem:[#allocation60_spill] sm:$0xff] %v8717_v17  ;;  %v1697_v39 = vshll.u32 %v8672_v56, 16  ;;  %v1136_v34 = vcombine.low %v1128_v60, %v1135_v45  ;;  %v8724_v35 = vsel %vm8072_vm3, %v1676_v29, %v1681_v30  ;;  %v1700_v52 = vshrl.u32 %v8672_v56, 16 }
  0x6e   : > { %10944 = vst [vmem:[#allocation61_spill] sm:$0xff] %v8724_v35  ;;  %v1705_v6 = vshll.u32 %v8600_v46, 16  ;;  %v8730_v42 = vsel %vm8072_vm3, %v1684_v55, %v1689_v1  ;;  %v2033_v9 = vcombine.low %v8694_v31, %v8700_v2  ;;  %v2034_v60 = vcombine.low %v8710_v15, %v8717_v17  ;;  %v8741_v29 = vld.sshfl [vmem:[%s8409_s23 + $0x14] sm:$0x11 pattern:$0x75316420] }
  0x6f   : > { %10945 = vst [vmem:[#allocation62_spill] sm:$0xff] %v8730_v42  ;;  %v8734_v41 = vsel %vm8072_vm3, %v1692_v48, %v1697_v39  ;;  %7425 = vmatmul.mubr.msk.bf16.gmra.mxu0 %vm1177_vm14, %v1136_v34  ;;  %v2035_v1 = vcombine.low %v8724_v35, %v8730_v42  ;;  %v8752_v39 = vcombine.high %v8635_v12, %v8635_v12  ;;  %433 = vst.msk [vmem:[#allocation2 + $0x50] sm:$0xff] %vm422_vm4, %v10895_v47 }
  0x70   : > { %10946 = vst [vmem:[#allocation63_spill] sm:$0xff] %v8734_v41  ;;  %v8746_v45 = vsel %vm8072_vm3, %v1700_v52, %v1705_v6  ;;  %v797_v30 = vcombine.high %v7065_v5, %v7065_v5  ;;  %v8757_v48 = vrot.slane %v2033_v9, %v7969_v10  ;;  %v8760_v34 = vrot.slane %v2034_v60, %v7969_v10 }
  0x71   : > { %10947 = vst [vmem:[#allocation64_spill] sm:$0xff] %v8746_v45  ;;  %v2036_v55 = vcombine.low %v8734_v41, %v8746_v45  ;;  %7428 = vmatprep.mubr.msk.bf16.mxu0 %vm7859_vm1, %v10895_v47  ;;  %v8765_v6 = vrot.slane %v7065_v5, %v7969_v10  ;;  %v8768_v52 = vrot.slane %v2035_v1, %v7969_v10  ;;  %434 = vst.msk [vmem:[#allocation2 + $0x58] sm:$0xff] %vm422_vm4, %v10895_v47 }
  0x72   : > { %10948 = vst [vmem:[#allocation65_spill] sm:$0xff] %v8757_v48  ;;  %10949 = vst [vmem:[#allocation66_spill] sm:$0xff] %v8760_v34  ;;  %v8771_v42 = vrot.slane %v797_v30, %v7969_v10  ;;  %v8775_v45 = vrot.slane %v8741_v29, %v7969_v10  ;;  %v8779_v9 = vcombine.high %v8600_v46, %v8600_v46 }
  0x73   : > { %10950 = vst [vmem:[#allocation67_spill] sm:$0xff] %v8768_v52  ;;  %v8782_v60 = vrot.slane %v2036_v55, %v7969_v10  ;;  %v2065_v5 = vcombine.low %v8757_v48, %v8760_v34  ;;  %v8788_v1 = vcombine.high %v8765_v6, %v8765_v6  ;;  %v1137_v30 = vcombine.low %v8752_v39, %v8765_v6 }
  0x74   : > { %10951 = vst [vmem:[#allocation68_spill] sm:$0xff] %v8779_v9  ;;  %v8794_v41 = vcombine.high %v8771_v42, %v8771_v42  ;;  %v8798_v17 = vcombine.high %v8613_v7, %v8613_v7  ;;  %v1352_v55 = vcombine.high %v8574_v51, %v8574_v51  ;;  %v1708_v34 = vshrl.u32 %v8600_v46, 16  ;;  %435 = vst.msk [vmem:[#allocation2 + $0x60] sm:$0xff] %vm422_vm4, %v10895_v47 }
  0x75   : > { %10952 = vst [vmem:[#allocation69_spill] sm:$0xff] %v8782_v60  ;;  %v2066_v48 = vcombine.low %v8768_v52, %v8782_v60  ;;  %v2073_v35 = vrot.slane %v2065_v5, %v7969_v10  ;;  %v1138_v2 = vcombine.low %v8771_v42, %v8788_v1  ;;  %v8809_v15 = vrot.slane %v1137_v30, %v7969_v10 }
  0x76   : > { %v1139_v31 = vcombine.low %v8794_v41, %v8775_v45  ;;  %v8814_v56 = vrot.slane %v1352_v55, %v7969_v10  ;;  %v1713_v51 = vshll.u32 %v8613_v7, 16  ;;  %v1716_v46 = vshrl.u32 %v8613_v7, 16  ;;  %5855 = vst.msk [vmem:[#allocation3] sm:$0xff] %vm422_vm4, %v10895_v47  ;;  %5856 = vst.msk [vmem:[#allocation3 + $0x8] sm:$0xff] %vm422_vm4, %v10895_v47 }
  0x77   : > { %10953 = vst [vmem:[#allocation70_spill] sm:$0xff] %v8809_v15  ;;  %v2080_v60 = vrot.slane %v2066_v48, %v7969_v10  ;;  %v8820_v5 = vrot.slane %v1138_v2, %v7969_v10  ;;  %v1721_v52 = vshll.u32 %v8779_v9, 16  ;;  %v1724_v30 = vshrl.u32 %v8779_v9, 16  ;;  %5857 = vst.msk [vmem:[#allocation3 + $0x10] sm:$0xff] %vm422_vm4, %v10895_v47 }
  0x78   : > { %v8825_v16 = vrot.slane %v1139_v31, %v7969_v10  ;;  %v8829_v55 = vsel %vm8072_vm3, %v1708_v34, %v1713_v51  ;;  %v1729_v43 = vshll.u32 %v8798_v17, 16  ;;  %v1732_v7 = vshrl.u32 %v8798_v17, 16  ;;  %5858 = vst.msk [vmem:[#allocation3 + $0x18] sm:$0xff] %vm422_vm4, %v10895_v47  ;;  %5859 = vst.msk [vmem:[#allocation3 + $0x20] sm:$0xff] %vm422_vm4, %v10895_v47 }
  0x79   : > { %10954 = vst [vmem:[#allocation71_spill] sm:$0xff] %v8820_v5  ;;  %v2081_v19 = vcombine.low %v2073_v35, %v2080_v60  ;;  %v1161_v2 = vcombine.low %v8809_v15, %v8820_v5  ;;  %v8837_v48 = vsel %vm8072_vm3, %v1716_v46, %v1721_v52  ;;  %v1737_v9 = vshll.u32 %v8620_v58, 16  ;;  %5860 = vst.msk [vmem:[#allocation3 + $0x28] sm:$0xff] %vm422_vm4, %v10895_v47 }
  0x7a   : > { %10955 = vst [vmem:[#allocation72_spill] sm:$0xff] %v8825_v16  ;;  %v1175_v31 = vrot.slane %v8825_v16, %v7969_v10  ;;  %v8844_v34 = vsel %vm8072_vm3, %v1724_v30, %v1729_v43  ;;  %v1740_v51 = vshrl.u32 %v8620_v58, 16  ;;  %v1745_v35 = vshll.u32 %v8814_v56, 16  ;;  %5861 = vst.msk [vmem:[#allocation3 + $0x30] sm:$0xff] %vm422_vm4, %v10895_v47 }
  0x7b   : > { %7451 = vmatmul.mubr.msk.bf16.gmra.mxu1 %vm1177_vm14, %v2081_v19  ;;  %v1168_v60 = vrot.slane %v1161_v2, %v7969_v10  ;;  %v8852_v46 = vsel %vm8072_vm3, %v1732_v7, %v1737_v9  ;;  %v1749_v52 = vshrl.u32 %v8623_v38, 16  ;;  %v1754_v5 = vshll.u32 %v8635_v12, 16  ;;  %5862 = vst.msk [vmem:[#allocation3 + $0x38] sm:$0xff] %vm422_vm4, %v10895_v47 }
  0x7c   : > { %7454 = vmatprep.mubr.msk.bf16.mxu1 %vm7859_vm1, %v10895_v47  ;;  %v8860_v43 = vsel %vm8072_vm3, %v1740_v51, %v1745_v35  ;;  %v1757_v30 = vshrl.u32 %v8635_v12, 16  ;;  %v1762_v19 = vshll.u32 %v8639_v59, 16  ;;  %v1765_v2 = vshrl.u32 %v8639_v59, 16  ;;  %437 = vst.msk [vmem:[#allocation2 + $0x68] sm:$0xf] %vm436_vm5, %v10895_v47 }
  0x7d   : > { %v1176_v16 = vcombine.low %v1168_v60, %v1175_v31  ;;  %v8867_v7 = vsel %vm8072_vm3, %v1749_v52, %v1754_v5  ;;  %v1770_v9 = vshll.u32 %v8752_v39, 16  ;;  %v2082_v15 = vcombine.low %v8829_v55, %v8837_v48 }
  0x7e   : > { %v8874_v51 = vsel %vm8072_vm3, %v1757_v30, %v1762_v19  ;;  %v2083_v35 = vcombine.low %v8844_v34, %v8852_v46  ;;  %v2084_v59 = vcombine.low %v8860_v43, %v8867_v7  ;;  %v2328_v31 = vcombine.low %v7996_v21, %v8003_v24 }
  0x7f   : > { %7429 = vmatmul.mubr.msk.bf16.gmra.mxu0 %vm1177_vm14, %v1176_v16  ;;  %v8885_v5 = vsel %vm8072_vm3, %v1765_v2, %v1770_v9  ;;  %v8888_v60 = vrot.slane %v2082_v15, %v7969_v10  ;;  %v2329_v52 = vcombine.low %v8055_v49, %v7986_v18  ;;  %v2330_v30 = vcombine.low %v8006_v25, %v8062_v53 }
  0x80   : > { %v2085_v19 = vcombine.low %v8874_v51, %v8885_v5  ;;  %v8897_v21 = vrot.slane %v2083_v35, %v7969_v10  ;;  %v8900_v24 = vrot.slane %v2084_v59, %v7969_v10  ;;  %7464 = vmatprep.mubr.msk.bf16.mxu0 %vm7859_vm1, %v10895_v47  ;;  %v2331_v16 = vcombine.low %v8086_v0, %v8001_v23 }
  0x81   : > { %10956 = vst [vmem:[#allocation73_spill] sm:$0xff] %v8888_v60  ;;  %v2338_v18 = vrot.slane %v2328_v31, %v7969_v10  ;;  %v2345_v49 = vrot.slane %v2329_v52, %v7969_v10  ;;  %v2352_v25 = vrot.slane %v2330_v30, %v7969_v10  ;;  %v1360_v53 = vcombine.high %v8741_v29, %v8741_v29 }
  0x82   : > { %10957 = vst [vmem:[#allocation74_spill] sm:$0xff] %v8897_v21  ;;  %10958 = vst [vmem:[#allocation75_spill] sm:$0xff] %v8900_v24  ;;  %v8912_v15 = vrot.slane %v2085_v19, %v7969_v10  ;;  %v2114_v2 = vcombine.low %v8888_v60, %v8897_v21  ;;  %v2359_v9 = vrot.slane %v2331_v16, %v7969_v10  ;;  %v1773_v35 = vshrl.u32 %v8752_v39, 16 }
  0x83   : > { %v2360_v23 = vcombine.low %v2338_v18, %v2345_v49  ;;  %v8919_v0 = vrot.slane %v1360_v53, %v7969_v10  ;;  %v1778_v59 = vshll.u32 %v8765_v6, 16  ;;  %v1781_v31 = vshrl.u32 %v8765_v6, 16 }
  0x84   : > { %10959 = vst [vmem:[#allocation76_spill] sm:$0xff] %v8912_v15  ;;  %v2115_v29 = vcombine.low %v8900_v24, %v8912_v15  ;;  %v2122_v52 = vrot.slane %v2114_v2, %v7969_v10  ;;  %v2361_v30 = vcombine.low %v2352_v25, %v2359_v9  ;;  %v1786_v19 = vshll.u32 %v8771_v42, 16 }
  0x85   : > { %v2368_v16 = vrot.slane %v2360_v23, %v7969_v10  ;;  %v8930_v39 = vsel %vm8072_vm3, %v1773_v35, %v1778_v59  ;;  %v1789_v18 = vshrl.u32 %v8771_v42, 16  ;;  %v1794_v49 = vshll.u32 %v8788_v1, 16 }
  0x86   : > { %v2129_v53 = vrot.slane %v2115_v29, %v7969_v10  ;;  %v2375_v21 = vrot.slane %v2361_v30, %v7969_v10  ;;  %v8938_v2 = vsel %vm8072_vm3, %v1781_v31, %v1786_v19  ;;  %v1797_v25 = vshrl.u32 %v8788_v1, 16 }
  0x87   : > { %v8943_v9 = vsel %vm8072_vm3, %v1789_v18, %v1794_v49  ;;  %v1802_v35 = vshll.u32 %v8794_v41, 16  ;;  %v1805_v23 = vshrl.u32 %v8794_v41, 16  ;;  %v1810_v59 = vshll.u32 %v8775_v45, 16 }
  0x88   : > { %v2130_v15 = vcombine.low %v2122_v52, %v2129_v53  ;;  %v2376_v29 = vcombine.low %v2368_v16, %v2375_v21  ;;  %v1813_v30 = vshrl.u32 %v8775_v45, 16  ;;  %v1818_v24 = vshll.u32 %v8919_v0, 16 }
  0x89   : > { %v8952_v31 = vsel %vm8072_vm3, %v1797_v25, %v1802_v35  ;;  %v8956_v1 = vsel %vm8072_vm3, %v1805_v23, %v1810_v59  ;;  %v2131_v19 = vcombine.low %v8930_v39, %v8938_v2  ;;  %v2377_v41 = vcombine.low %v8175_v26, %v8025_v36 }
  0x8a   : > { %7455 = vmatmul.mubr.msk.bf16.gmra.mxu1 %vm1177_vm14, %v2130_v15  ;;  %7465 = vmatmul.mubr.msk.bf16.vlgmr.msra.gmra.mxu0 %vm1177_vm14, %v2376_v29  ;;  %v8966_v21 = vsel %vm8072_vm3, %v1813_v30, %v1818_v24  ;;  %v2132_v52 = vcombine.low %v8943_v9, %v8952_v31  ;;  %v7143_v16 = vcombine.high %v8010_v28, %v8025_v36 }
  0x8b   : > { %7523 = vmatpush3.bf16.msra.mxu0 %v8304_v63  ;;  %7458 = vmatprep.mubr.msk.bf16.mxu1 %vm7859_vm1, %v10895_v47  ;;  %v2133_v26 = vcombine.low %v8956_v1, %v8966_v21  ;;  %v8978_v15 = vrot.slane %v2131_v19, %v7969_v10  ;;  %v2379_v24 = vcombine.low %v8015_v33, %v8034_v40 }
  0x8c   : > { %v8983_v18 = vrot.slane %v2132_v52, %v7969_v10  ;;  %7468 = vmatprep.mubr.msk.bf16.mxu0 %vm7859_vm1, %v10895_v47  ;;  %v7144_v63 = vcombine.high %v8015_v33, %v8034_v40  ;;  %v2387_v49 = vrot.slane %v2377_v41, %v7969_v10  ;;  %v2394_v53 = vrot.slane %v7143_v16, %v7969_v10 }
  0x8d   : > { %10960 = vst [vmem:[#allocation77_spill] sm:$0xff] %v8978_v15  ;;  %v8992_v25 = vrot.slane %v2133_v26, %v7969_v10  ;;  %v2401_v35 = vrot.slane %v2379_v24, %v7969_v10  ;;  %v2884_v23 = vcombine.low %v8010_v28, %v8025_v36  ;;  %v2426_v59 = vcombine.low %v8136_v50, %v8360_v22 }
  0x8e   : > { %10961 = vst [vmem:[#allocation78_spill] sm:$0xff] %v8983_v18  ;;  %7582 = vmatprep.subr.bf16.mxu0 %v10895_v47  ;;  %v2155_v33 = vcombine.low %v8978_v15, %v8983_v18  ;;  %v2408_v40 = vrot.slane %v7144_v63, %v7969_v10  ;;  %v2409_v29 = vcombine.low %v2387_v49, %v2394_v53  ;;  %v9227_v15 = vld.sshfl [vmem:[%s8409_s23 + $0x20] sm:$0x11 pattern:$0x75316420] }
  0x8f   : > { %10962 = vst [vmem:[#allocation79_spill] sm:$0xff] %v8992_v25  ;;  %v2427_v30 = vcombine.low %v8147_v3, %v8319_v32  ;;  %v2169_v19 = vrot.slane %v8992_v25, %v7969_v10  ;;  %v2891_v41 = vrot.slane %v2884_v23, %v7969_v10  ;;  %v2428_v28 = vcombine.low %v8323_v44, %v8150_v4 }
  0x90   : > { %v2429_v36 = vcombine.low %v8157_v8, %v8340_v27  ;;  %v2162_v52 = vrot.slane %v2155_v33, %v7969_v10  ;;  %v2410_v16 = vcombine.low %v2401_v35, %v2408_v40  ;;  %v2417_v26 = vrot.slane %v2409_v29, %v7969_v10 }
  0x91   : > { %v2436_v24 = vrot.slane %v2426_v59, %v7969_v10  ;;  %v2892_v63 = vcombine.low %v2891_v41, %v2394_v53  ;;  %v2443_v32 = vrot.slane %v2427_v30, %v7969_v10  ;;  %v2450_v49 = vrot.slane %v2428_v28, %v7969_v10 }
  0x92   : > { %v2457_v23 = vrot.slane %v2429_v36, %v7969_v10  ;;  %v2170_v18 = vcombine.low %v2162_v52, %v2169_v19  ;;  %v2424_v4 = vrot.slane %v2410_v16, %v7969_v10  ;;  %v2475_v8 = vcombine.low %v8495_v54, %v8301_v61  ;;  %v10965_v36 = vld [vmem:[#allocation10_spill] sm:$0xff] }
  0x93   : > { %v2901_v44 = vcombine.low %v8136_v50, %v8144_v62  ;;  %v2899_v27 = vrot.slane %v2892_v63, %v7969_v10  ;;  %v2458_v35 = vcombine.low %v2436_v24, %v2443_v32  ;;  %v4878_v53 = vcombine.low %v2443_v32, %v2450_v49 }
  0x94   : > { %v2459_v59 = vcombine.low %v2450_v49, %v2457_v23  ;;  %7459 = vmatmul.mubr.msk.bf16.gmra.mxu1 %vm1177_vm14, %v2170_v18  ;;  %v2425_v33 = vcombine.low %v2417_v26, %v2424_v4  ;;  %v2485_v40 = vrot.slane %v2475_v8, %v7969_v10  ;;  %v2476_v30 = vcombine.low %v8519_v37, %v8327_v14 }
  0x95   : > { %v2908_v29 = vrot.slane %v2901_v44, %v7969_v10  ;;  %v10963_v54 = vcombine.low %v8271_v13, %v8374_v20  ;;  %7494 = vmatprep.mubr.msk.bf16.mxu1 %vm7859_vm1, %v10895_v47  ;;  %v2466_v62 = vrot.slane %v2458_v35, %v7969_v10  ;;  %v9042_v19 = vrot.slane %v4878_v53, %v7969_v10  ;;  %v10966_v20 = vld [vmem:[#allocation11_spill] sm:$0xff] }
  0x96   : > { %v9039_v18 = vrot.slane %v2459_v59, %v7969_v10  ;;  %7469 = vmatmul.mubr.msk.bf16.gmra.mxu0 %vm1177_vm14, %v2425_v33  ;;  %v4879_v41 = vcombine.low %v2457_v23, %v2485_v40  ;;  %v7145_v13 = vcombine.high %v10965_v36, %v8327_v14  ;;  %v2478_v52 = vcombine.low %v10966_v20, %v8463_v11 }
  0x97   : > { %v9033_v50 = vrot.slane %v10963_v54, %v7969_v10  ;;  %10964 = vst [vmem:[#allocation80_spill] sm:$0xff] %v9042_v19  ;;  %v2909_v28 = vcombine.low %v2908_v29, %v2443_v32  ;;  %v2900_v16 = vcombine.low %v2899_v27, %v2424_v4  ;;  %7472 = vmatprep.mubr.msk.bf16.mxu0 %vm7859_vm1, %v10895_v47  ;;  %v10972_v27 = vld [vmem:[#allocation56_spill] sm:$0xff] }
  0x98   : > { %v9052_v26 = vrot.slane %v2476_v30, %v7969_v10  ;;  %v7146_v24 = vcombine.high %v10966_v20, %v8463_v11  ;;  %v2918_v63 = vcombine.low %v10965_v36, %v8327_v14  ;;  %v2474_v32 = vcombine.low %v2466_v62, %v9039_v18  ;;  %v10973_v14 = vld [vmem:[#allocation26_spill] sm:$0xff]  ;;  %v7184_v30 = vld [vmem:[%s10770_s2 + $0xa] sm:$0x3]  ;;  %v10974_v36 = vld [vmem:[#allocation53_spill] sm:$0xff] }
  0x99   : > { %v9060_v49 = vrot.slane %v4879_v41, %v7969_v10  ;;  %v9063_v23 = vrot.slane %v7145_v13, %v7969_v10  ;;  %v9066_v4 = vrot.slane %v2478_v52, %v7969_v10  ;;  %v2525_v35 = vcombine.low %v10973_v14, %v10972_v27  ;;  %v10975_v13 = vld [vmem:[#allocation29_spill] sm:$0xff]  ;;  %v10976_v52 = vld [vmem:[#allocation43_spill] sm:$0xff]  ;;  %v10979_v29 = vld [vmem:[#allocation28_spill] sm:$0xff] }
  0x9a   : > { %10967 = vst [vmem:[#allocation10_spill] sm:$0xff] %v9052_v26  ;;  %v2507_v8 = vcombine.low %v2485_v40, %v9052_v26  ;;  %v9070_v44 = vrot.slane %v7146_v24, %v7969_v10  ;;  %v2925_v11 = vrot.slane %v2918_v63, %v7969_v10  ;;  %v2916_v53 = vrot.slane %v2909_v28, %v7969_v10  ;;  %v10977_v24 = vld [vmem:[#allocation54_spill] sm:$0xff]  ;;  %v7157_v62 = vld.sshfl [vmem:[%s8409_s23 + $0x1c] sm:$0x33 pattern:$0x75316420] }
  0x9b   : > { %10968 = vst [vmem:[#allocation11_spill] sm:$0xff] %v9060_v49  ;;  %10969 = vst [vmem:[#allocation81_spill] sm:$0xff] %v9063_v23  ;;  %v2508_v33 = vcombine.low %v9063_v23, %v9066_v4  ;;  %v2526_v20 = vcombine.low %v10975_v13, %v10974_v36  ;;  %v2527_v63 = vcombine.low %v10977_v24, %v10976_v52  ;;  %v3975_v52 = vsel %vm1199_vm0, %v7184_v30, 0  ;;  %v11001_v23 = vld [vmem:[#allocation20_spill] sm:$0xff] }
  0x9c   : > { %10970 = vst [vmem:[#allocation82_spill] sm:$0xff] %v9066_v4  ;;  %10971 = vst [vmem:[#allocation83_spill] sm:$0xff] %v9070_v44  ;;  %v2515_v54 = vrot.slane %v2507_v8, %v7969_v10  ;;  %v2926_v41 = vcombine.low %v2485_v40, %v2925_v11  ;;  %7495 = vmatmul.mubr.msk.bf16.vlgmr.msra.gmra.mxu1 %vm1177_vm14, %v2900_v16  ;;  %v9097_v59 = vrot.slane %v2525_v35, %v7969_v10  ;;  %v10981_v11 = vld [vmem:[#allocation68_spill] sm:$0xff]  ;;  %v10982_v16 = vld [vmem:[#allocation46_spill] sm:$0xff] }
  0x9d   : > { %v9092_v28 = vrot.slane %v2508_v33, %v7969_v10  ;;  %v2935_v8 = vcombine.low %v10973_v14, %v10979_v29  ;;  %7498 = vmatprep.mubr.msk.bf16.mxu1 %vm7859_vm1, %v10895_v47  ;;  %v9104_v40 = vrot.slane %v2526_v20, %v7969_v10  ;;  %v2573_v36 = vcombine.low %v10982_v16, %v10981_v11 }
  0x9e   : > { %10978 = vst [vmem:[#allocation56_spill] sm:$0xff] %v9097_v59  ;;  %v2574_v33 = vcombine.low %v8798_v17, %v8620_v58  ;;  %7473 = vmatmul.mubr.msk.bf16.gmra.mxu0 %vm1177_vm14, %v2474_v32  ;;  %v2917_v35 = vcombine.low %v2916_v53, %v9039_v18  ;;  %v9114_v14 = vrot.slane %v2926_v41, %v7969_v10 }
  0x9f   : > { %10980 = vst [vmem:[#allocation26_spill] sm:$0xff] %v9104_v40  ;;  %v9117_v29 = vrot.slane %v2527_v63, %v7969_v10  ;;  %v2556_v20 = vcombine.low %v9070_v44, %v9097_v59  ;;  %7476 = vmatprep.mubr.msk.bf16.mxu0 %vm7859_vm1, %v10895_v47  ;;  %v2523_v17 = vcombine.low %v2515_v54, %v9092_v28  ;;  %v10998_v59 = vld [vmem:[#allocation9_spill] sm:$0xff] }
  0xa0   : > { %v2575_v18 = vcombine.low %v8814_v56, %v8635_v12  ;;  %v7147_v32 = vcombine.high %v8623_v38, %v8635_v12  ;;  %v2942_v24 = vrot.slane %v2935_v8, %v7969_v10  ;;  %v9137_v54 = vrot.slane %v2573_v36, %v7969_v10  ;;  %7553 = vmatpush3.bf16.msra.mxu1 %v3975_v52 }
  0xa1   : > { %10983 = vst [vmem:[#allocation53_spill] sm:$0xff] %v9117_v29  ;;  %v2557_v53 = vcombine.low %v9104_v40, %v9117_v29  ;;  %v9133_v41 = vrot.slane %v2556_v20, %v7969_v10  ;;  %v9140_v63 = vrot.slane %v2574_v33, %v7969_v10  ;;  %v2952_v20 = vcombine.low %v8623_v38, %v8635_v12  ;;  %v10997_v29 = vld [vmem:[#allocation18_spill] sm:$0xff] }
  0xa2   : > { %10984 = vst [vmem:[#allocation29_spill] sm:$0xff] %v9137_v54  ;;  %v9143_v11 = vrot.slane %v2575_v18, %v7969_v10  ;;  %v9146_v16 = vrot.slane %v7147_v32, %v7969_v10  ;;  %7612 = vmatprep.subr.bf16.mxu1 %v10895_v47  ;;  %v2934_v8 = vcombine.low %v9114_v14, %v9092_v28  ;;  %v7156_v14 = vld.sshfl [vmem:[%s8409_s23 + $0x18] sm:$0x33 pattern:$0x75316420] }
  0xa3   : > { %10985 = vst [vmem:[#allocation43_spill] sm:$0xff] %v9140_v63  ;;  %v9154_v36 = vrot.slane %v2557_v53, %v7969_v10  ;;  %v2622_v52 = vcombine.low %v8765_v6, %v8771_v42  ;;  %v2605_v18 = vcombine.low %v9137_v54, %v9140_v63  ;;  %v2959_v28 = vrot.slane %v2952_v20, %v7969_v10 }
  0xa4   : > { %10986 = vst [vmem:[#allocation54_spill] sm:$0xff] %v9143_v11  ;;  %10987 = vst [vmem:[#allocation28_spill] sm:$0xff] %v9146_v16  ;;  %v2606_v12 = vcombine.low %v9143_v11, %v9146_v16  ;;  %7499 = vmatmul.mubr.msk.bf16.gmra.mxu1 %vm1177_vm14, %v2917_v35  ;;  %v2943_v53 = vcombine.low %v9070_v44, %v2942_v24  ;;  %v7148_v33 = vcombine.high %v8765_v6, %v8771_v42  ;;  %v10999_v44 = vld [vmem:[#allocation8_spill] sm:$0xff] }
  0xa5   : > { %v2572_v32 = vcombine.low %v9133_v41, %v9154_v36  ;;  %v2624_v30 = vcombine.low %v8775_v45, %v8919_v0  ;;  %7502 = vmatprep.mubr.msk.bf16.mxu1 %vm7859_vm1, %v10895_v47  ;;  %v9179_v20 = vrot.slane %v2605_v18, %v7969_v10  ;;  %v2960_v41 = vcombine.low %v2959_v28, %v9146_v16  ;;  %v10992_v28 = vld [vmem:[#allocation23_spill] sm:$0xff]  ;;  %v10995_v16 = vld [vmem:[#allocation16_spill] sm:$0xff] }
  0xa6   : > { %v9182_v35 = vrot.slane %v2606_v12, %v7969_v10  ;;  %v9186_v24 = vrot.slane %v2622_v52, %v7969_v10  ;;  %7477 = vmatmul.mubr.msk.bf16.gmra.mxu0 %vm1177_vm14, %v2523_v17  ;;  %v9190_v42 = vrot.slane %v7148_v33, %v7969_v10  ;;  %v2813_v38 = vcombine.high %v7156_v14, %v7156_v14  ;;  %v10991_v33 = vld [vmem:[#allocation30_spill] sm:$0xff] }
  0xa7   : > { %v9193_v6 = vrot.slane %v2624_v30, %v7969_v10  ;;  %v9196_v18 = vrot.slane %v7156_v14, %v7969_v10  ;;  %7480 = vmatprep.mubr.msk.bf16.mxu0 %vm7859_vm1, %v10895_v47  ;;  %v2967_v12 = vrot.slane %v2960_v41, %v7969_v10  ;;  %v3304_v30 = vcombine.low %v10992_v28, %v10991_v33  ;;  %v10993_v28 = vld [vmem:[#allocation49_spill] sm:$0xff] }
  0xa8   : > { %10988 = vst [vmem:[#allocation68_spill] sm:$0xff] %v9186_v24  ;;  %10989 = vst [vmem:[#allocation46_spill] sm:$0xff] %v9190_v42  ;;  %v2621_v52 = vcombine.low %v9179_v20, %v9182_v35  ;;  %v2646_v49 = vcombine.low %v9186_v24, %v9190_v42  ;;  %v9215_v35 = vrot.slane %v2813_v38, %v7969_v10  ;;  %v10994_v24 = vld [vmem:[#allocation17_spill] sm:$0xff] }
  0xa9   : > { %10990 = vst [vmem:[#allocation84_spill] sm:$0xff] %v9193_v6  ;;  %v2660_v14 = vrot.slane %v9193_v6, %v7969_v10  ;;  %v2968_v41 = vcombine.low %v9179_v20, %v2967_v12  ;;  %v9220_v17 = vcombine.high %v9196_v18, %v9196_v18  ;;  %v2969_v33 = vcombine.low %v8775_v45, %v9196_v18 }
  0xaa   : > { %v3305_v25 = vcombine.low %v10993_v28, %v9033_v50  ;;  %v9230_v60 = vrot.slane %v2646_v49, %v7969_v10  ;;  %v9233_v38 = vrot.slane %v3304_v30, %v7969_v10  ;;  %v9237_v20 = vcombine.high %v9215_v35, %v9215_v35 }
  0xab   : > { %v2837_v12 = vcombine.high %v7157_v62, %v7157_v62  ;;  %v2970_v19 = vcombine.low %v9215_v35, %v9220_v17  ;;  %v2977_v45 = vrot.slane %v2969_v33, %v7969_v10  ;;  %v9246_v28 = vrot.slane %v7157_v62, %v7969_v10 }
  0xac   : > { %v9243_v50 = vrot.slane %v3305_v25, %v7969_v10  ;;  %7503 = vmatmul.mubr.msk.bf16.gmra.mxu1 %vm1177_vm14, %v2934_v8  ;;  %v2950_v49 = vrot.slane %v2943_v53, %v7969_v10  ;;  %v2661_v30 = vcombine.low %v9230_v60, %v2660_v14  ;;  %v9256_v42 = vrot.slane %v9227_v15, %v7969_v10 }
  0xad   : > { %v9252_v6 = vrot.slane %v2837_v12, %v7969_v10  ;;  %7506 = vmatprep.mubr.msk.bf16.mxu1 %vm7859_vm1, %v10895_v47  ;;  %v9261_v25 = vrot.slane %v2970_v19, %v7969_v10  ;;  %v9267_v8 = vcombine.high %v9246_v28, %v9246_v28  ;;  %v2994_v53 = vcombine.low %v9237_v20, %v9246_v28 }
  0xae   : > { %7481 = vmatmul.mubr.msk.bf16.gmra.mxu0 %vm1177_vm14, %v2572_v32  ;;  %v2951_v62 = vcombine.low %v2950_v49, %v9154_v36  ;;  %v3321_v11 = vcombine.low %v10995_v16, %v10994_v24  ;;  %v11000_v49 = vld [vmem:[#allocation21_spill] sm:$0xff]  ;;  %v11002_v24 = vld [vmem:[#allocation35_spill] sm:$0xff] }
  0xaf   : > { %v9274_v14 = vcombine.high %v9252_v6, %v9252_v6  ;;  %7484 = vmatprep.mubr.msk.bf16.mxu0 %vm7859_vm1, %v10895_v47  ;;  %v2985_v19 = vcombine.low %v2977_v45, %v9261_v25  ;;  %v2995_v33 = vcombine.low %v9252_v6, %v9267_v8  ;;  %v9282_v12 = vrot.slane %v2994_v53, %v7969_v10  ;;  %v10996_v45 = vld [vmem:[#allocation19_spill] sm:$0xff] }
  0xb0   : > { %v3322_v40 = vcombine.low %v10997_v29, %v10996_v45  ;;  %v3779_v53 = vcombine.low %v10999_v44, %v10998_v59  ;;  %v3323_v16 = vcombine.low %v11001_v23, %v11000_v49  ;;  %v11004_v49 = vld [vmem:[#allocation37_spill] sm:$0xff]  ;;  %v3175_v44 = vcombine.high %v9227_v15, %v9227_v15 }
  0xb1   : > { %v2996_v32 = vcombine.low %v9274_v14, %v9256_v42  ;;  %v2992_v63 = vrot.slane %v2985_v19, %v7969_v10  ;;  %v9297_v4 = vrot.slane %v2995_v33, %v7969_v10  ;;  %v11003_v19 = vld [vmem:[#allocation22_spill] sm:$0xff]  ;;  %v3331_v33 = vrot.slane %v3321_v11, %v7969_v10 }
  0xb2   : > { %v3324_v26 = vcombine.low %v11003_v19, %v11002_v24  ;;  %v3345_v23 = vrot.slane %v3323_v16, %v7969_v10  ;;  %v3469_v11 = vcombine.low %v8852_v46, %v8860_v43  ;;  %v11005_v16 = vld [vmem:[#allocation36_spill] sm:$0xff]  ;;  %v11006_v19 = vld [vmem:[#allocation39_spill] sm:$0xff]  ;;  %v3470_v43 = vcombine.low %v8867_v7, %v8874_v51 }
  0xb3   : > { %v9300_v36 = vrot.slane %v2996_v32, %v7969_v10  ;;  %v2993_v54 = vcombine.low %v9230_v60, %v2992_v63  ;;  %v3338_v32 = vrot.slane %v3322_v40, %v7969_v10  ;;  %v7197_v40 = vld [vmem:[%s10770_s2 + $0xc] sm:$0x3]  ;;  %v3370_v24 = vcombine.low %v11005_v16, %v11004_v49  ;;  %v11010_v16 = vld [vmem:[#allocation57_spill] sm:$0xff] }
  0xb4   : > { %7507 = vmatmul.mubr.msk.bf16.gmra.mxu1 %vm1177_vm14, %v2951_v62  ;;  %v3352_v45 = vrot.slane %v3324_v26, %v7969_v10  ;;  %v3018_v62 = vcombine.low %v9282_v12, %v9297_v4  ;;  %v3468_v26 = vcombine.low %v8837_v48, %v8844_v34  ;;  %v11008_v48 = vld [vmem:[#allocation41_spill] sm:$0xff]  ;;  %v11009_v34 = vld [vmem:[#allocation40_spill] sm:$0xff]  ;;  %v3485_v49 = vrot.slane %v3469_v11, %v7969_v10 }
  0xb5   : > { %v4979_v29 = vcombine.low %v9297_v4, %v9300_v36  ;;  %7510 = vmatprep.mubr.msk.bf16.mxu1 %vm7859_vm1, %v10895_v47  ;;  %v3353_v60 = vcombine.low %v3331_v33, %v3338_v32  ;;  %v11007_v33 = vld [vmem:[#allocation38_spill] sm:$0xff]  ;;  %v3372_v46 = vcombine.low %v11009_v34, %v11008_v48  ;;  %v3492_v48 = vrot.slane %v3470_v43, %v7969_v10 }
  0xb6   : > { %7485 = vmatmul.mubr.msk.bf16.gmra.mxu0 %vm1177_vm14, %v2621_v52  ;;  %v3354_v63 = vcombine.low %v3345_v23, %v3352_v45  ;;  %v3371_v32 = vcombine.low %v11007_v33, %v11006_v19  ;;  %v3478_v23 = vrot.slane %v3468_v26, %v7969_v10  ;;  %v4315_v45 = vsel %vm1199_vm0, %v7197_v40, 0  ;;  %v11011_v19 = vld [vmem:[#allocation42_spill] sm:$0xff] }
  0xb7   : > { %7488 = vmatprep.mubr.msk.bf16.mxu0 %vm7859_vm1, %v10895_v47  ;;  %v9333_v52 = vrot.slane %v3353_v60, %v7969_v10  ;;  %v3025_v60 = vrot.slane %v3018_v62, %v7969_v10  ;;  %v3373_v33 = vcombine.low %v11011_v19, %v11010_v16  ;;  %v3184_v51 = vshrl.u32 %v9196_v18, 16  ;;  %v11014_v19 = vld [vmem:[#allocation58_spill] sm:$0xff] }
  0xb8   : > { %v3387_v62 = vrot.slane %v3371_v32, %v7969_v10  ;;  %v3500_v40 = vcombine.low %v3478_v23, %v3485_v49  ;;  %v3394_v26 = vrot.slane %v3372_v46, %v7969_v10  ;;  %v3189_v34 = vshll.u32 %v9215_v35, 16 }
  0xb9   : > { %v3192_v16 = vshrl.u32 %v9215_v35, 16  ;;  %v3780_v43 = vcombine.low %v8360_v22, %v8147_v3  ;;  %v3517_v3 = vcombine.low %v8938_v2, %v8943_v9  ;;  %v11012_v22 = vcombine.low %v9233_v38, %v9243_v50 }
  0xba   : > { %v9383_v32 = vsel %vm8072_vm3, %v3184_v51, %v3189_v34  ;;  %v3518_v23 = vcombine.low %v8952_v31, %v8956_v1 }
  0xbb   : > { %v3519_v49 = vcombine.low %v8966_v21, %v9383_v32  ;;  %v3527_v38 = vrot.slane %v3517_v3, %v7969_v10  ;;  %v3787_v3 = vrot.slane %v3780_v43, %v7969_v10 }
  0xbc   : > { %7511 = vmatmul.mubr.msk.bf16.gmra.mxu1 %vm1177_vm14, %v2968_v41  ;;  %v9336_v41 = vrot.slane %v3354_v63, %v7969_v10  ;;  %v3032_v63 = vrot.slane %v9300_v36, %v7969_v10  ;;  %v3534_v1 = vrot.slane %v3518_v23, %v7969_v10  ;;  %v11064_v36 = vld [vmem:[#allocation33_spill] sm:$0xff] }
  0xbd   : > { %7514 = vmatprep.mubr.msk.bf16.mxu1 %vm7859_vm1, %v10895_v47  ;;  %v3541_v21 = vrot.slane %v3519_v49, %v7969_v10 }
  0xbe   : > { %7489 = vmatmul.mubr.msk.bf16.gmra.mxu0 %vm1177_vm14, %v2661_v30  ;;  %v3471_v30 = vcombine.low %v8885_v5, %v8930_v39  ;;  %v3369_v5 = vcombine.low %v9333_v52, %v9336_v41  ;;  %v3380_v39 = vrot.slane %v3370_v24, %v7969_v10  ;;  %v3197_v52 = vshll.u32 %v9220_v17, 16 }
  0xbf   : > { %7524 = vmatprep.mubr.msk.bf16.mxu0 %vm7859_vm1, %v10895_v47  ;;  %v3200_v41 = vshrl.u32 %v9220_v17, 16  ;;  %v3401_v17 = vrot.slane %v3373_v33, %v7969_v10  ;;  %v3033_v50 = vcombine.low %v3025_v60, %v3032_v63  ;;  %v11019_v60 = vld [vmem:[#allocation64_spill] sm:$0xff] }
  0xc0   : > { %v3499_v7 = vrot.slane %v3471_v30, %v7969_v10  ;;  %v9372_v30 = vrot.slane %v3500_v40, %v7969_v10  ;;  %v9395_v46 = vsel %vm8072_vm3, %v3192_v16, %v3197_v52  ;;  %v11017_v40 = vld [vmem:[#allocation63_spill] sm:$0xff]  ;;  %v3422_v63 = vcombine.low %v11019_v60, %v8829_v55 }
  0xc1   : > { %v3402_v16 = vcombine.low %v3380_v39, %v3387_v62  ;;  %v3403_v52 = vcombine.low %v3394_v26, %v3401_v17 }
  0xc2   : > { %v3501_v11 = vcombine.low %v3492_v48, %v3499_v7  ;;  %v11015_v48 = vld [vmem:[#allocation61_spill] sm:$0xff]  ;;  %v11016_v7 = vld [vmem:[#allocation60_spill] sm:$0xff]  ;;  %v3450_v62 = vrot.slane %v3422_v63, %v7969_v10  ;;  %v11026_v63 = vld [vmem:[#allocation27_spill] sm:$0xff] }
  0xc3   : > { %v3420_v51 = vcombine.low %v11016_v7, %v11015_v48  ;;  %v3410_v26 = vrot.slane %v3402_v16, %v7969_v10  ;;  %v3417_v43 = vrot.slane %v3403_v52, %v7969_v10  ;;  %v11027_v16 = vld [vmem:[#allocation44_spill] sm:$0xff] }
  0xc4   : > { %7515 = vmatmul.mubr.msk.bf16.gmra.mxu1 %vm1177_vm14, %v2993_v54  ;;  %v9379_v24 = vrot.slane %v3501_v11, %v7969_v10  ;;  %v3205_v54 = vshll.u32 %v9237_v20, 16  ;;  %v11018_v11 = vld [vmem:[#allocation62_spill] sm:$0xff]  ;;  %v11028_v52 = vcombine.low %v11026_v63, %v11027_v16 }
  0xc5   : > { %7518 = vmatprep.mubr.msk.bf16.mxu1 %vm7859_vm1, %v10895_v47  ;;  %v3421_v34 = vcombine.low %v11018_v11, %v11017_v40  ;;  %v3436_v55 = vrot.slane %v3420_v51, %v7969_v10  ;;  %v3418_v7 = vcombine.low %v3410_v26, %v3417_v43  ;;  %v11023_v40 = vld [vmem:[#allocation24_spill] sm:$0xff]  ;;  %v11024_v11 = vld [vmem:[#allocation25_spill] sm:$0xff]  ;;  %v3830_v26 = vcombine.low %v10972_v27, %v10975_v13 }
  0xc6   : > { %7525 = vmatmul.mubr.msk.bf16.vlgmr.msra.gmra.mxu0 %vm1177_vm14, %v11012_v22  ;;  %v3516_v2 = vcombine.low %v9372_v30, %v9379_v24  ;;  %v9407_v9 = vsel %vm8072_vm3, %v3200_v41, %v3205_v54  ;;  %v3549_v54 = vcombine.low %v3527_v38, %v3534_v1  ;;  %v7214_v38 = vld [vmem:[%s10770_s2 + $0xe] sm:$0x3]  ;;  %v11021_v1 = vld [vmem:[#allocation12_spill] sm:$0xff]  ;;  %v3237_v27 = vshll.u32 %v9274_v14, 16  ;;  %v11036_v30 = vld [vmem:[#allocation70_spill] sm:$0xff] }
  0xc7   : > { %7583 = vmatpush3.bf16.msra.mxu0 %v4315_v45  ;;  %7528 = vmatprep.mubr.msk.bf16.mxu0 %vm7859_vm1, %v10895_v47  ;;  %v3520_v31 = vcombine.low %v9395_v46, %v9407_v9  ;;  %v11013_v45 = vld [vmem:[#allocation59_spill] sm:$0xff]  ;;  %v3443_v39 = vrot.slane %v3421_v34, %v7969_v10  ;;  %v4743_v51 = vsel %vm1199_vm0, %v7214_v38, 0  ;;  %v11025_v34 = vcombine.low %v11023_v40, %v11024_v11 }
  0xc8   : > { %7642 = vmatprep.subr.bf16.mxu0 %v10895_v47  ;;  %v3419_v33 = vcombine.low %v11014_v19, %v11013_v45  ;;  %v9427_v23 = vrot.slane %v3549_v54, %v7969_v10  ;;  %v3208_v38 = vshrl.u32 %v9237_v20, 16  ;;  %v3240_v11 = vshrl.u32 %v9274_v14, 16  ;;  %v11032_v14 = vld [vmem:[#allocation32_spill] sm:$0xff]  ;;  %v11037_v24 = vld [vmem:[#allocation55_spill] sm:$0xff] }
  0xc9   : > { %v3548_v41 = vrot.slane %v3520_v31, %v7969_v10  ;;  %v3452_v48 = vcombine.low %v3443_v39, %v3450_v62  ;;  %v9458_v60 = vrot.slane %v11025_v34, %v7969_v10  ;;  %v11031_v39 = vld [vmem:[#allocation15_spill] sm:$0xff]  ;;  %v3245_v34 = vshll.u32 %v9256_v42, 16 }
  0xca   : > { %v3429_v49 = vrot.slane %v3419_v33, %v7969_v10 }
  0xcb   : > { %v3550_v22 = vcombine.low %v3541_v21, %v3548_v41  ;;  %v11022_v21 = vld [vmem:[#allocation7_spill] sm:$0xff]  ;;  %v9464_v41 = vrot.slane %v11028_v52, %v7969_v10  ;;  %v3248_v52 = vshrl.u32 %v9256_v42, 16 }
  0xcc   : > { %7519 = vmatmul.mubr.msk.bf16.gmra.mxu1 %vm1177_vm14, %v3033_v50  ;;  %v11020_v50 = vld [vmem:[#allocation6_spill] sm:$0xff]  ;;  %v3789_v45 = vcombine.low %v11022_v21, %v11021_v1  ;;  %v3451_v33 = vcombine.low %v3429_v49, %v3436_v55  ;;  %v11030_v55 = vld [vmem:[#allocation31_spill] sm:$0xff]  ;;  %v3213_v1 = vshll.u32 %v9246_v28, 16  ;;  %v3216_v21 = vshrl.u32 %v9246_v28, 16 }
  0xcd   : > { %7554 = vmatprep.mubr.msk.bf16.mxu1 %vm7859_vm1, %v10895_v47  ;;  %v9439_v17 = vrot.slane %v3550_v22, %v7969_v10  ;;  %v3788_v31 = vcombine.low %v3787_v3, %v11020_v50  ;;  %v3466_v22 = vrot.slane %v3452_v48, %v7969_v10  ;;  %v4547_v15 = vcombine.low %v9458_v60, %v9464_v41  ;;  %v11072_v41 = vld [vmem:[#allocation73_spill] sm:$0xff] }
  0xce   : > { %7529 = vmatmul.mubr.msk.bf16.gmra.mxu0 %vm1177_vm14, %v3369_v5  ;;  %v3805_v5 = vcombine.low %v8301_v61, %v8519_v37  ;;  %v9472_v37 = vrot.slane %v3789_v45, %v7969_v10  ;;  %v3459_v3 = vrot.slane %v3451_v33, %v7969_v10  ;;  %v3814_v62 = vcombine.low %v11031_v39, %v11030_v55 }
  0xcf   : > { %7532 = vmatprep.mubr.msk.bf16.mxu0 %vm7859_vm1, %v10895_v47  ;;  %v3565_v19 = vcombine.low %v9427_v23, %v9439_v17  ;;  %v3796_v61 = vrot.slane %v3788_v31, %v7969_v10  ;;  %v9536_v31 = vrot.slane %v3175_v44, %v7969_v10  ;;  %v3221_v45 = vshll.u32 %v9252_v6, 16  ;;  %v11034_v44 = vld [vmem:[#allocation34_spill] sm:$0xff]  ;;  %v11040_v17 = vld [vmem:[#allocation5_spill] sm:$0xff] }
  0xd0   : > { %v3812_v54 = vrot.slane %v3805_v5, %v7969_v10  ;;  %v3467_v43 = vcombine.low %v3459_v3, %v3466_v22  ;;  %v3224_v5 = vshrl.u32 %v9252_v6, 16  ;;  %v3229_v33 = vshll.u32 %v9267_v8, 16  ;;  %v11033_v22 = vld [vmem:[#allocation50_spill] sm:$0xff] }
  0xd1   : > { %v3804_v59 = vcombine.low %v3796_v61, %v9472_v37  ;;  %v3232_v48 = vshrl.u32 %v9267_v8, 16  ;;  %v9548_v20 = vrot.slane %v3814_v62, %v7969_v10  ;;  %v9558_v8 = vsel %vm8072_vm3, %v3208_v38, %v3213_v1 }
  0xd2   : > { %v9562_v40 = vsel %vm8072_vm3, %v3216_v21, %v3221_v45  ;;  %v9570_v63 = vsel %vm8072_vm3, %v3224_v5, %v3229_v33  ;;  %v3253_v61 = vshll.u32 %v9536_v31, 16  ;;  %v9590_v62 = vsel %vm8072_vm3, %v3240_v11, %v3245_v34  ;;  %v11035_v33 = vld [vmem:[#allocation51_spill] sm:$0xff] }
  0xd3   : > { %v9574_v16 = vsel %vm8072_vm3, %v3232_v48, %v3237_v27  ;;  %v3566_v55 = vcombine.low %v9558_v8, %v9562_v40  ;;  %v3880_v38 = vcombine.low %v8919_v0, %v9215_v35  ;;  %v7185_v5 = vcombine.high %v9196_v18, %v9215_v35  ;;  %v828_v27 = vld [vmem:[#allocation2] sm:$0xff] }
  0xd4   : > { %7555 = vmatmul.mubr.msk.bf16.vlgmr.msra.gmra.mxu1 %vm1177_vm14, %v3779_v53  ;;  %v11029_v53 = vld [vmem:[#allocation14_spill] sm:$0xff]  ;;  %v3567_v39 = vcombine.low %v9570_v63, %v9574_v16 }
  0xd5   : > { %7558 = vmatprep.mubr.msk.bf16.mxu1 %vm7859_vm1, %v10895_v47  ;;  %7613 = vmatpush3.bf16.msra.mxu1 %v4743_v51  ;;  %v3813_v49 = vcombine.low %v3812_v54, %v11029_v53  ;;  %v4211_v51 = vcombine.low %v9196_v18, %v9215_v35  ;;  %v3575_v21 = vrot.slane %v3566_v55, %v7969_v10  ;;  %v834_v18 = vld [vmem:[#allocation2 + $0x30] sm:$0xff] }
  0xd6   : > { %7533 = vmatmul.mubr.msk.bf16.gmra.mxu0 %vm1177_vm14, %v3418_v7  ;;  %v3837_v7 = vrot.slane %v3830_v26, %v7969_v10  ;;  %v9594_v26 = vsel %vm8072_vm3, %v3248_v52, %v3253_v61  ;;  %v3582_v45 = vrot.slane %v3567_v39, %v7969_v10  ;;  %v3888_v11 = vrot.slane %v3880_v38, %v7969_v10 }
  0xd7   : > { %7536 = vmatprep.mubr.msk.bf16.mxu0 %vm7859_vm1, %v10895_v47  ;;  %v3821_v13 = vrot.slane %v3813_v49, %v7969_v10  ;;  %v3855_v49 = vcombine.low %v8620_v58, %v8814_v56  ;;  %v3568_v1 = vcombine.low %v9590_v62, %v9594_v26  ;;  %v9625_v34 = vrot.slane %v7185_v5, %v7969_v10 }
  0xd8   : > { %v3838_v3 = vcombine.low %v11032_v14, %v3837_v7  ;;  %v3590_v7 = vcombine.low %v3575_v21, %v3582_v45  ;;  %v3915_v21 = vcombine.low %v9256_v42, %v9536_v31 }
  0xd9   : > { %v3829_v54 = vcombine.low %v3821_v13, %v9548_v20  ;;  %v3862_v56 = vrot.slane %v3855_v49, %v7969_v10  ;;  %v3589_v13 = vrot.slane %v3568_v1, %v7969_v10  ;;  %v829_v49 = vld [vmem:[#allocation2 + $0x8] sm:$0xff]  ;;  %v3897_v1 = vcombine.low %v3888_v11, %v9625_v34 }
  0xda   : > { %v3597_v55 = vrot.slane %v3590_v7, %v7969_v10 }
  0xdb   : > { %v3863_v48 = vcombine.low %v11035_v33, %v3862_v56  ;;  %v3604_v39 = vrot.slane %v3589_v13, %v7969_v10  ;;  %v11039_v56 = vld [vmem:[#allocation71_spill] sm:$0xff] }
  0xdc   : > { %7559 = vmatmul.mubr.msk.bf16.gmra.mxu1 %vm1177_vm14, %v3804_v59  ;;  %v3839_v59 = vcombine.low %v11034_v44, %v11033_v22  ;;  %v3913_v22 = vcombine.low %v9246_v28, %v9252_v6  ;;  %v7186_v44 = vcombine.high %v9246_v28, %v9252_v6 }
  0xdd   : > { %7562 = vmatprep.mubr.msk.bf16.mxu1 %vm7859_vm1, %v10895_v47  ;;  %v3871_v61 = vrot.slane %v3863_v48, %v7969_v10  ;;  %v830_v48 = vld [vmem:[#allocation2 + $0x10] sm:$0xff] }
  0xde   : > { %7537 = vmatmul.mubr.msk.bf16.gmra.mxu0 %vm1177_vm14, %v3467_v43  ;;  %v3846_v43 = vrot.slane %v3838_v3, %v7969_v10  ;;  %v9599_v58 = vrot.slane %v3839_v59, %v7969_v10  ;;  %v3922_v45 = vrot.slane %v3913_v22, %v7969_v10  ;;  %v3929_v5 = vrot.slane %v7186_v44, %v7969_v10  ;;  %v831_v22 = vld [vmem:[#allocation2 + $0x18] sm:$0xff]  ;;  %v11041_v44 = vld [vmem:[#allocation10_spill] sm:$0xff] }
  0xdf   : > { %7540 = vmatprep.mubr.msk.bf16.mxu0 %vm7859_vm1, %v10895_v47 }
  0xe0   : > { %v3854_v0 = vcombine.low %v3846_v43, %v9599_v58  ;;  %v11038_v43 = vld [vmem:[#allocation72_spill] sm:$0xff] }
  0xe1   : > { %v3896_v38 = vcombine.low %v11039_v56, %v11038_v43  ;;  %v11044_v43 = vld [vmem:[#allocation82_spill] sm:$0xff]  ;;  %v11045_v56 = vld [vmem:[#allocation83_spill] sm:$0xff] }
  0xe4   : > { %7563 = vmatmul.mubr.msk.bf16.gmra.mxu1 %vm1177_vm14, %v3829_v54 }
  0xe5   : > { %7566 = vmatprep.mubr.msk.bf16.mxu1 %vm7859_vm1, %v10895_v47 }
  0xe6   : > { %7541 = vmatmul.mubr.msk.bf16.gmra.mxu0 %vm1177_vm14, %v3516_v2  ;;  %v3864_v2 = vcombine.low %v11037_v24, %v11036_v30  ;;  %v7194_v30 = vld.sshfl [vmem:[%s8409_s23 + $0x24] sm:$0x33 pattern:$0x75316420]  ;;  %v3605_v24 = vcombine.low %v3597_v55, %v3604_v39 }
  0xe7   : > { %7544 = vmatprep.mubr.msk.bf16.mxu0 %vm7859_vm1, %v10895_v47  ;;  %v4104_v7 = vcombine.high %v7194_v30, %v7194_v30 }
  0xe8   : > { %v9630_v54 = vrot.slane %v3864_v2, %v7969_v10  ;;  %v9659_v2 = vrot.slane %v3896_v38, %v7969_v10  ;;  %v11046_v38 = vcombine.low %v11044_v43, %v11045_v56  ;;  %v7222_v43 = vld [vmem:[%s10770_s2 + $0x10] sm:$0x3] }
  0xe9   : > { %v1237_v52 = vpop.f32.mrf.mxu0 }
  0xea   : > { %v1292_v3 = vadd.f32 %v1237_v52, %v828_v27  ;;  %v3879_v28 = vcombine.low %v3871_v61, %v9630_v54  ;;  %v3911_v27 = vrot.slane %v3897_v1, %v7969_v10  ;;  %v3936_v52 = vrot.slane %v3915_v21, %v7969_v10  ;;  %v11051_v21 = vld [vmem:[#allocation29_spill] sm:$0xff] }
  0xeb   : > { %v7406_v59 = vpop.f32.mrf.mxu0  ;;  %v3937_v61 = vcombine.low %v3922_v45, %v3929_v5  ;;  %v9681_v1 = vrot.slane %v11046_v38, %v7969_v10 }
  0xec   : > { %7567 = vmatmul.mubr.msk.bf16.gmra.mxu1 %vm1177_vm14, %v3854_v0  ;;  %1306 = vst.msk [vmem:[#allocation2] sm:$0xff] %vm422_vm4, %v1292_v3  ;;  %v11042_v59 = vld [vmem:[#allocation81_spill] sm:$0xff]  ;;  %v3912_v39 = vcombine.low %v9659_v2, %v3911_v27  ;;  %v11054_v27 = vld [vmem:[#allocation54_spill] sm:$0xff] }
  0xed   : > { %7570 = vmatprep.mubr.msk.bf16.mxu1 %vm7859_vm1, %v10895_v47  ;;  %v1240_v6 = vpop.f32.mrf.mxu0 }
  0xee   : > { %7545 = vmatmul.mubr.msk.bf16.gmra.mxu0 %vm1177_vm14, %v3565_v19  ;;  %v1293_v23 = vadd.f32 %v1240_v6, %v829_v49  ;;  %v4175_v19 = vcombine.low %v11040_v17, %v11020_v50  ;;  %v11043_v49 = vcombine.low %v11041_v44, %v11042_v59  ;;  %v11047_v6 = vld [vmem:[#allocation56_spill] sm:$0xff] }
  0xef   : > { %7548 = vmatprep.mubr.msk.bf16.mxu0 %vm7859_vm1, %v10895_v47  ;;  %v7407_v0 = vpop.f32.mrf.mxu0  ;;  %v11057_v44 = vld [vmem:[#allocation68_spill] sm:$0xff] }
  0xf0   : > { %1307 = vst.msk [vmem:[#allocation2 + $0x8] sm:$0xff] %vm422_vm4, %v1293_v23  ;;  %v4182_v11 = vrot.slane %v4175_v19, %v7969_v10  ;;  %v9672_v55 = vrot.slane %v11043_v49, %v7969_v10  ;;  %v11050_v19 = vld [vmem:[#allocation53_spill] sm:$0xff] }
  0xf1   : > { %v1245_v13 = vpop.f32.mrf.mxu0  ;;  %v11052_v45 = vcombine.low %v11050_v19, %v11051_v21  ;;  %v11059_v21 = vld [vmem:[#allocation46_spill] sm:$0xff] }
  0xf2   : > { %v1294_v50 = vadd.f32 %v1245_v13, %v830_v48  ;;  %v9698_v48 = vrot.slane %v7194_v30, %v7969_v10  ;;  %v9716_v30 = vrot.slane %v4104_v7, %v7969_v10  ;;  %v4911_v38 = vcombine.low %v9672_v55, %v9681_v1 }
  0xf3   : > { %v7410_v3 = vpop.f32.mrf.mxu0  ;;  %v9693_v5 = vrot.slane %v11052_v45, %v7969_v10 }
  0xf4   : > { %7571 = vmatmul.mubr.msk.bf16.gmra.mxu1 %vm1177_vm14, %v3879_v28  ;;  %1308 = vst.msk [vmem:[#allocation2 + $0x10] sm:$0xff] %vm422_vm4, %v1294_v50  ;;  %v11048_v28 = vld [vmem:[#allocation26_spill] sm:$0xff]  ;;  %v11056_v3 = vld [vmem:[#allocation28_spill] sm:$0xff] }
  0xf5   : > { %7574 = vmatprep.mubr.msk.bf16.mxu1 %vm7859_vm1, %v10895_v47  ;;  %v11049_v23 = vcombine.low %v11047_v6, %v11048_v28  ;;  %v1248_v0 = vpop.f32.mrf.mxu0  ;;  %v11058_v59 = vcombine.low %v11056_v3, %v11057_v44  ;;  %v1821_v28 = vld [vmem:[#allocation2] sm:$0xff]  ;;  %v4963_v44 = vcombine.low %v9536_v31, %v9716_v30 }
  0xf6   : > { %7549 = vmatmul.mubr.msk.bf16.gmra.mxu0 %vm1177_vm14, %v3605_v24  ;;  %v11053_v24 = vld [vmem:[#allocation43_spill] sm:$0xff]  ;;  %v1295_v56 = vadd.f32 %v1248_v0, %v831_v22  ;;  %v11060_v22 = vld [vmem:[#allocation84_spill] sm:$0xff]  ;;  %v11062_v0 = vcombine.low %v9261_v25, %v9282_v12 }
  0xf7   : > { %v9687_v17 = vrot.slane %v11049_v23, %v7969_v10  ;;  %7584 = vmatprep.mubr.msk.bf16.mxu0 %vm7859_vm1, %v10895_v47  ;;  %v11055_v13 = vcombine.low %v11053_v24, %v11054_v27  ;;  %v9710_v49 = vrot.slane %v11058_v59, %v7969_v10  ;;  %v7411_v23 = vpop.f32.mrf.mxu0  ;;  %v11061_v45 = vcombine.low %v11059_v21, %v11060_v22 }
  0xf8   : > { %v9736_v24 = vrot.slane %v11062_v0, %v7969_v10  ;;  %v4183_v27 = vcombine.low %v4182_v11, %v9472_v37  ;;  %1309 = vst.msk [vmem:[#allocation2 + $0x18] sm:$0xff] %vm422_vm4, %v1295_v56  ;;  %v7223_v59 = vcombine.high %v9698_v48, %v9716_v30  ;;  %v5058_v23 = vsel %vm1199_vm0, %v7222_v43, 0  ;;  %v1822_v56 = vld [vmem:[#allocation2 + $0x8] sm:$0xff] }
  0xf9   : > { %v9704_v50 = vrot.slane %v11055_v13, %v7969_v10  ;;  %v4928_v6 = vcombine.low %v9687_v17, %v9693_v5  ;;  %v9730_v7 = vrot.slane %v11061_v45, %v7969_v10  ;;  %v11063_v13 = vld [vmem:[#allocation13_spill] sm:$0xff]  ;;  %v3951_v21 = vrot.slane %v3936_v52, %v7969_v10  ;;  %v2229_v25 = vpop.f32.mrf.mxu1  ;;  %v832_v52 = vld [vmem:[#allocation2 + $0x20] sm:$0xff] }
  0xfa   : > { %v4184_v3 = vcombine.low %v11063_v13, %v11029_v53  ;;  %v9752_v37 = vrot.slane %v3937_v61, %v7969_v10  ;;  %v2284_v53 = vadd.f32 %v2229_v25, %v1821_v28  ;;  %v4971_v11 = vrot.slane %v4963_v44, %v7969_v10  ;;  %v833_v25 = vld [vmem:[#allocation2 + $0x28] sm:$0xff] }
  0xfb   : > { %v4945_v19 = vcombine.low %v9704_v50, %v9710_v49  ;;  %v4962_v12 = vcombine.low %v9730_v7, %v9736_v24  ;;  %v4978_v31 = vrot.slane %v7223_v59, %v7969_v10  ;;  %v7436_v43 = vpop.f32.mrf.mxu1  ;;  %v9765_v61 = vrot.slane %v4979_v29, %v7969_v10 }
  0xfc   : > { %7575 = vmatmul.mubr.msk.bf16.gmra.mxu1 %vm1177_vm14, %v3912_v39  ;;  %v4191_v22 = vrot.slane %v4184_v3, %v7969_v10  ;;  %2298 = vst.msk [vmem:[#allocation2] sm:$0xff] %vm422_vm4, %v2284_v53  ;;  %v3952_v0 = vcombine.low %v9752_v37, %v3951_v21  ;;  %v4193_v29 = vcombine.low %v11032_v14, %v11064_v36  ;;  %v11065_v14 = vld [vmem:[#allocation47_spill] sm:$0xff]  ;;  %vm5884_vm0 = vcmask 1043456  }
  0xfd   : > { %7578 = vmatprep.mubr.msk.bf16.mxu1 %vm7859_vm1, %v10895_v47  ;;  %v4980_v39 = vcombine.low %v4971_v11, %v4978_v31  ;;  %v2232_v28 = vpop.f32.mrf.mxu1  ;;  %v1253_v45 = vpop.f32.mrf.mxu0  ;;  %v11066_v31 = vld [vmem:[#allocation45_spill] sm:$0xff] }
  0xfe   : > { %7585 = vmatmul.mubr.msk.bf16.vlgmr.msra.gmra.mxu0 %vm1177_vm14, %v4183_v27  ;;  %v2285_v27 = vadd.f32 %v2232_v28, %v1822_v56  ;;  %v1296_v13 = vadd.f32 %v1253_v45, %v832_v52  ;;  %v4192_v4 = vcombine.low %v4191_v22, %v9548_v20  ;;  %v4200_v20 = vrot.slane %v4193_v29, %v7969_v10  ;;  %v11067_v56 = vld [vmem:[#allocation65_spill] sm:$0xff]  ;;  %v11068_v52 = vld [vmem:[#allocation48_spill] sm:$0xff] }
  0xff   : > { %7643 = vmatpush3.bf16.msra.mxu0 %v5058_v23  ;;  %7588 = vmatprep.mubr.msk.bf16.mxu0 %vm7859_vm1, %v10895_v47  ;;  %v9771_v3 = vrot.slane %v4980_v39, %v7969_v10  ;;  %v7437_v44 = vpop.f32.mrf.mxu1  ;;  %v7414_v59 = vpop.f32.mrf.mxu0  ;;  %v4548_v43 = vcombine.low %v11066_v31, %v11065_v14  ;;  %v4549_v22 = vcombine.low %v11068_v52, %v11067_v56  ;;  %v1823_v39 = vld [vmem:[#allocation2 + $0x10] sm:$0xff] }
 0x100   : > { %2299 = vst.msk [vmem:[#allocation2 + $0x8] sm:$0xff] %vm422_vm4, %v2285_v27  ;;  %1310 = vst.msk [vmem:[#allocation2 + $0x20] sm:$0xff] %vm422_vm4, %v1296_v13  ;;  %v4201_v28 = vcombine.low %v4200_v20, %v9599_v58  ;;  %v11069_v45 = vld [vmem:[#allocation52_spill] sm:$0xff]  ;;  %v1824_v58 = vld [vmem:[#allocation2 + $0x18] sm:$0xff]  ;;  %v4599_v14 = vcombine.low %v9383_v32, %v9395_v46  ;;  %v4600_v31 = vcombine.low %v9407_v9, %v9558_v8 }
 0x101   : > { %v4995_v23 = vcombine.low %v9765_v61, %v9771_v3  ;;  %v1256_v21 = vpop.f32.mrf.mxu0  ;;  %v4556_v44 = vrot.slane %v4548_v43, %v7969_v10  ;;  %v4563_v59 = vrot.slane %v4549_v22, %v7969_v10  ;;  %v7195_v20 = vld.sshfl [vmem:[%s8409_s23 + $0x28] sm:$0x33 pattern:$0x75316420] }
 0x102   : > { %v1297_v53 = vadd.f32 %v1256_v21, %v833_v25  ;;  %v11070_v25 = vld [vmem:[#allocation67_spill] sm:$0xff]  ;;  %v4128_v46 = vcombine.high %v7195_v20, %v7195_v20 }
 0x103   : > { %v7415_v11 = vpop.f32.mrf.mxu0  ;;  %v4564_v56 = vcombine.low %v4556_v44, %v4563_v59  ;;  %v11074_v22 = vld [vmem:[#allocation75_spill] sm:$0xff]  ;;  %v9839_v59 = vrot.slane %v7195_v20, %v7969_v10  ;;  %v11079_v20 = vld [vmem:[#allocation78_spill] sm:$0xff] }
 0x104   : > { %7579 = vmatmul.mubr.msk.bf16.gmra.mxu1 %vm1177_vm14, %v3952_v0  ;;  %1311 = vst.msk [vmem:[#allocation2 + $0x28] sm:$0xff] %vm422_vm4, %v1297_v53  ;;  %v4202_v0 = vcombine.low %v11035_v33, %v11069_v45  ;;  %v9807_v33 = vcombine.high %v9698_v48, %v9698_v48  ;;  %v4218_v53 = vrot.slane %v4211_v51, %v7969_v10  ;;  %v11076_v51 = vld [vmem:[#allocation77_spill] sm:$0xff]  ;;  %v11077_v45 = vld [vmem:[#allocation76_spill] sm:$0xff] }
 0x105   : > { %7614 = vmatprep.mubr.msk.bf16.mxu1 %vm7859_vm1, %v10895_v47 }
 0x106   : > { %7589 = vmatmul.mubr.msk.bf16.gmra.mxu0 %vm1177_vm14, %v4192_v4  ;;  %v11071_v4 = vld [vmem:[#allocation66_spill] sm:$0xff]  ;;  %v4209_v60 = vrot.slane %v4202_v0, %v7969_v10  ;;  %v4583_v0 = vcombine.low %v11077_v45, %v11076_v51  ;;  %v4229_v32 = vcombine.low %v9716_v30, %v9807_v33  ;;  %v4459_v51 = vshrl.u32 %v9807_v33, 16 }
 0x107   : > { %7592 = vmatprep.mubr.msk.bf16.mxu0 %vm7859_vm1, %v10895_v47  ;;  %v4565_v36 = vcombine.low %v11071_v4, %v11070_v25  ;;  %v4607_v25 = vrot.slane %v4599_v14, %v7969_v10  ;;  %v2313_v5 = vld [vmem:[#allocation2 + $0x8] sm:$0xff] }
 0x108   : > { %v2237_v27 = vpop.f32.mrf.mxu1  ;;  %v4210_v9 = vcombine.low %v4209_v60, %v9630_v54  ;;  %v9849_v54 = vcombine.high %v9716_v30, %v9716_v30 }
 0x109   : > { %v2286_v13 = vadd.f32 %v2237_v27, %v1823_v39  ;;  %v4573_v52 = vrot.slane %v4565_v36, %v7969_v10  ;;  %v11075_v39 = vld [vmem:[#allocation74_spill] sm:$0xff]  ;;  %v4228_v27 = vcombine.low %v9256_v42, %v9698_v48  ;;  %v4614_v42 = vrot.slane %v4600_v31, %v7969_v10  ;;  %v7196_v31 = vld.sshfl [vmem:[%s8409_s23 + $0x2c] sm:$0x11 pattern:$0x75316420]  ;;  %s7234_s23 = sadd.s32 4294967295, %s7942_s14 }
 0x10a   : > { %v7440_v29 = vpop.f32.mrf.mxu1  ;;  %v4464_v45 = vshll.u32 %v9849_v54, 16  ;;  %s11129_s14 = smov (!%p388_p8, %s7942_s14), 15 }
 0x10b   : > { %2300 = vst.msk [vmem:[#allocation2 + $0x10] sm:$0xff] %vm422_vm4, %v2286_v13  ;;  %v4219_v13 = vcombine.low %v4218_v53, %v9625_v34  ;;  %v835_v29 = vld [vmem:[#allocation2 + $0x38] sm:$0xff]  ;;  %v4236_v60 = vrot.slane %v4228_v27, %v7969_v10  ;;  %s7045_s25 = sshll.u32 %s11129_s14, 1 }
 0x10c   : > { %7615 = vmatmul.mubr.msk.bf16.vlgmr.msra.gmra.mxu1 %vm1177_vm14, %v4547_v15  ;;  %v11073_v15 = vld [vmem:[#allocation69_spill] sm:$0xff]  ;;  %v2240_v11 = vpop.f32.mrf.mxu1  ;;  %s392_s27 = sadd.s32 %s7046_s26, %s7045_s25 }
 0x10d   : > { %7618 = vmatprep.mubr.msk.bf16.mxu1 %vm7859_vm1, %v10895_v47  ;;  %v4566_v21 = vcombine.low %v11073_v15, %v11072_v41  ;;  %v2287_v43 = vadd.f32 %v2240_v11, %v1824_v58  ;;  %v9854_v58 = vrot.slane %v4583_v0, %v7969_v10  ;;  %v4243_v41 = vrot.slane %v4229_v32, %v7969_v10  ;;  %v11078_v11 = vld [vmem:[#allocation79_spill] sm:$0xff]  ;;  %s7047_s15 = sshll.u32 %s392_s27, 3 }
 0x10e   : > { %7593 = vmatmul.mubr.msk.bf16.gmra.mxu0 %vm1177_vm14, %v4201_v28  ;;  %v4582_v28 = vcombine.low %v11075_v39, %v11074_v22  ;;  %v7441_v35 = vpop.f32.mrf.mxu1  ;;  %v9860_v15 = vrot.slane %v4128_v46, %v7969_v10  ;;  %v4226_v53 = vrot.slane %v4219_v13, %v7969_v10  ;;  %v4615_v14 = vcombine.low %v11079_v20, %v11078_v11  ;;  %s10733_s19 = scalar_lea.vmem %s10776_s8, %s7047_s15 }
 0x10f   : > { %7596 = vmatprep.mubr.msk.bf16.mxu0 %vm7859_vm1, %v10895_v47  ;;  %2301 = vst.msk [vmem:[#allocation2 + $0x18] sm:$0xff] %vm422_vm4, %v2287_v43  ;;  %v4580_v8 = vrot.slane %v4566_v21, %v7969_v10  ;;  %v1261_v44 = vpop.f32.mrf.mxu0  ;;  %v9869_v43 = vcombine.high %v9839_v59, %v9839_v59  ;;  %v4616_v22 = vcombine.low %v4607_v25, %v4614_v42  ;;  %v4443_v39 = vshrl.u32 %v9698_v48, 16 }
 0x110   : > { %v1298_v4 = vadd.f32 %v1261_v44, %v834_v18  ;;  %v9845_v36 = vrot.slane %v4582_v28, %v7969_v10  ;;  %v4448_v28 = vshll.u32 %v9716_v30, 16  ;;  %v4451_v18 = vshrl.u32 %v9716_v30, 16 }
 0x111   : > { %v7418_v34 = vpop.f32.mrf.mxu0  ;;  %v4581_v21 = vcombine.low %v4573_v52, %v4580_v8  ;;  %v4456_v35 = vshll.u32 %v9807_v33, 16  ;;  %v4244_v27 = vcombine.low %v4236_v60, %v4243_v41  ;;  %v9881_v32 = vcombine.high %v9860_v15, %v9860_v15  ;;  %v1826_v41 = vld [vmem:[#allocation2 + $0x28] sm:$0xff] }
 0x112   : > { %1312 = vst.msk [vmem:[#allocation2 + $0x30] sm:$0xff] %vm422_vm4, %v1298_v4  ;;  %v9884_v46 = vrot.slane %v7196_v31, %v7969_v10  ;;  %v4253_v48 = vcombine.low %v9849_v54, %v9839_v59  ;;  %v4227_v30 = vcombine.low %v9659_v2, %v4226_v53  ;;  %v4254_v33 = vcombine.low %v9860_v15, %v9869_v43 }
 0x113   : > { %v4598_v8 = vcombine.low %v9845_v36, %v9854_v58  ;;  %v9895_v13 = vrot.slane %v4615_v14, %v7969_v10  ;;  %v4450_v25 = vsel %vm8072_vm3, %v4443_v39, %v4448_v28  ;;  %v9901_v42 = vrot.slane %v4616_v22, %v7969_v10 }
 0x114   : > { %7619 = vmatmul.mubr.msk.bf16.gmra.mxu1 %vm1177_vm14, %v4564_v56  ;;  %v1264_v56 = vpop.f32.mrf.mxu0  ;;  %v4458_v2 = vsel %vm8072_vm3, %v4451_v18, %v4456_v35  ;;  %v4466_v34 = vsel %vm8072_vm3, %v4459_v51, %v4464_v45  ;;  %v4251_v36 = vrot.slane %v4244_v27, %v7969_v10  ;;  %v4262_v58 = vrot.slane %v4253_v48, %v7969_v10 }
 0x115   : > { %7622 = vmatprep.mubr.msk.bf16.mxu1 %vm7859_vm1, %v10895_v47  ;;  %v1299_v52 = vadd.f32 %v1264_v56, %v835_v29  ;;  %v4255_v29 = vcombine.low %v9881_v32, %v9884_v46  ;;  %v4269_v53 = vrot.slane %v4254_v33, %v7969_v10  ;;  %v4632_v11 = vcombine.low %v9562_v40, %v9570_v63  ;;  %v836_v56 = vld [vmem:[#allocation2 + $0x40] sm:$0xff]  ;;  %v837_v33 = vld [vmem:[#allocation2 + $0x48] sm:$0xff] }
 0x116   : > { %7597 = vmatmul.mubr.msk.bf16.gmra.mxu0 %vm1177_vm14, %v4210_v9  ;;  %v7419_v0 = vpop.f32.mrf.mxu0  ;;  %v1825_v9 = vld [vmem:[#allocation2 + $0x20] sm:$0xff]  ;;  %v4633_v20 = vcombine.low %v9574_v16, %v9590_v62  ;;  %v4634_v14 = vcombine.low %v9594_v26, %v4450_v25  ;;  %v4635_v22 = vcombine.low %v4458_v2, %v4466_v34  ;;  %v4467_v39 = vshrl.u32 %v9849_v54, 16 }
 0x117   : > { %7600 = vmatprep.mubr.msk.bf16.mxu0 %vm7859_vm1, %v10895_v47  ;;  %1313 = vst.msk [vmem:[#allocation2 + $0x38] sm:$0xff] %vm422_vm4, %v1299_v52  ;;  %v4472_v28 = vshll.u32 %v9839_v59, 16  ;;  %v4475_v52 = vshrl.u32 %v9839_v59, 16  ;;  %v4480_v40 = vshll.u32 %v9860_v15, 16  ;;  %v4483_v63 = vshrl.u32 %v9860_v15, 16 }
 0x118   : > { %v4488_v16 = vshll.u32 %v9869_v43, 16  ;;  %v4491_v45 = vshrl.u32 %v9869_v43, 16  ;;  %v4496_v54 = vshll.u32 %v9881_v32, 16  ;;  %v4252_v0 = vcombine.low %v9752_v37, %v4251_v36 }
 0x119   : > { %v2245_v44 = vpop.f32.mrf.mxu1  ;;  %v4276_v27 = vrot.slane %v4255_v29, %v7969_v10  ;;  %v4277_v48 = vcombine.low %v4262_v58, %v4269_v53  ;;  %v4656_v25 = vrot.slane %v4634_v14, %v7969_v10  ;;  %v4474_v37 = vsel %vm8072_vm3, %v4467_v39, %v4472_v28 }
 0x11a   : > { %v2288_v4 = vadd.f32 %v2245_v44, %v1825_v9  ;;  %v4642_v9 = vrot.slane %v4632_v11, %v7969_v10  ;;  %v4649_v44 = vrot.slane %v4633_v20, %v7969_v10  ;;  %v4482_v43 = vsel %vm8072_vm3, %v4475_v52, %v4480_v40 }
 0x11b   : > { %v7444_v60 = vpop.f32.mrf.mxu1  ;;  %v4490_v2 = vsel %vm8072_vm3, %v4483_v63, %v4488_v16  ;;  %v4499_v34 = vshrl.u32 %v9881_v32, 16  ;;  %v4504_v36 = vshll.u32 %v9884_v46, 16  ;;  %v4498_v58 = vsel %vm8072_vm3, %v4491_v45, %v4496_v54 }
 0x11c   : > { %7623 = vmatmul.mubr.msk.bf16.gmra.mxu1 %vm1177_vm14, %v4581_v21  ;;  %v4434_v21 = vcombine.high %v7196_v31, %v7196_v31  ;;  %2302 = vst.msk [vmem:[#allocation2 + $0x20] sm:$0xff] %vm422_vm4, %v2288_v4  ;;  %v4663_v4 = vrot.slane %v4635_v22, %v7969_v10  ;;  %v4507_v60 = vshrl.u32 %v9884_v46, 16  ;;  %v4291_v32 = vrot.slane %v4276_v27, %v7969_v10 }
 0x11d   : > { %7626 = vmatprep.mubr.msk.bf16.mxu1 %vm7859_vm1, %v10895_v47  ;;  %v2248_v31 = vpop.f32.mrf.mxu1  ;;  %v4664_v11 = vcombine.low %v4642_v9, %v4649_v44  ;;  %v4631_v14 = vcombine.low %v9895_v13, %v9901_v42  ;;  %v4682_v22 = vcombine.low %v4490_v2, %v4498_v58  ;;  %v4506_v39 = vsel %vm8072_vm3, %v4499_v34, %v4504_v36  ;;  %v11080_v34 = vld [vmem:[#allocation80_spill] sm:$0xff]  ;;  %v11081_v36 = vld [vmem:[#allocation11_spill] sm:$0xff] }
 0x11e   : > { %7601 = vmatmul.mubr.msk.bf16.gmra.mxu0 %vm1177_vm14, %v4227_v30  ;;  %v2289_v18 = vadd.f32 %v2248_v31, %v1826_v41  ;;  %v9930_v51 = vrot.slane %v4434_v21, %v7969_v10  ;;  %v4284_v21 = vrot.slane %v4277_v48, %v7969_v10  ;;  %v4665_v20 = vcombine.low %v4656_v25, %v4663_v4  ;;  %v1827_v31 = vld [vmem:[#allocation2 + $0x30] sm:$0xff]  ;;  %v1828_v57 = vld [vmem:[#allocation2 + $0x38] sm:$0xff] }
 0x11f   : > { %7604 = vmatprep.mubr.msk.bf16.mxu0 %vm7859_vm1, %v10895_v47  ;;  %v1269_v35 = vpop.f32.mrf.mxu0  ;;  %v7445_v26 = vpop.f32.mrf.mxu1  ;;  %v4697_v42 = vrot.slane %v4682_v22, %v7969_v10  ;;  %v839_v25 = vld [vmem:[#allocation2 + $0x58] sm:$0xff]  ;;  %v7224_v50 = vcombine.high %v9839_v59, %v9860_v15 }
 0x120   : > { %v1300_v62 = vadd.f32 %v1269_v35, %v836_v56  ;;  %2303 = vst.msk [vmem:[#allocation2 + $0x28] sm:$0xff] %vm422_vm4, %v2289_v18  ;;  %v4681_v56 = vcombine.low %v4474_v37, %v4482_v43  ;;  %v4292_v52 = vcombine.low %v4284_v21, %v4291_v32  ;;  %v4672_v18 = vrot.slane %v4664_v11, %v7969_v10  ;;  %v838_v26 = vld [vmem:[#allocation2 + $0x50] sm:$0xff]  ;;  %v840_v11 = vld [vmem:[#allocation2 + $0x60] sm:$0xff] }
 0x121   : > { %v7422_v30 = vpop.f32.mrf.mxu0  ;;  %v4679_v35 = vrot.slane %v4665_v20, %v7969_v10 }
 0x122   : > { %1314 = vst.msk [vmem:[#allocation2 + $0x40] sm:$0xff] %vm422_vm4, %v1300_v62  ;;  %v4690_v13 = vrot.slane %v4681_v56, %v7969_v10 }
 0x123   : > { %v1272_v29 = vpop.f32.mrf.mxu0  ;;  %v4680_v54 = vcombine.low %v4672_v18, %v4679_v35  ;;  %v2312_v35 = vld [vmem:[#allocation2] sm:$0xff] }
 0x124   : > { %7627 = vmatmul.mubr.msk.bf16.gmra.mxu1 %vm1177_vm14, %v4598_v8  ;;  %v4512_v8 = vshll.u32 %v9930_v51, 16  ;;  %v1301_v41 = vadd.f32 %v1272_v29, %v837_v33  ;;  %v4705_v27 = vcombine.low %v4690_v13, %v4697_v42  ;;  %v11082_v29 = vcombine.low %v11080_v34, %v11081_v36 }
 0x125   : > { %7630 = vmatprep.mubr.msk.bf16.mxu1 %vm7859_vm1, %v10895_v47  ;;  %v7423_v53 = vpop.f32.mrf.mxu0 }
 0x126   : > { %7605 = vmatmul.mubr.msk.bf16.gmra.mxu0 %vm1177_vm14, %v4252_v0  ;;  %1315 = vst.msk [vmem:[#allocation2 + $0x48] sm:$0xff] %vm422_vm4, %v1301_v41  ;;  %v4514_v28 = vsel %vm8072_vm3, %v4507_v60, %v4512_v8  ;;  %v4712_v4 = vrot.slane %v4705_v27, %v7969_v10  ;;  %v4996_v27 = vcombine.low %v9839_v59, %v9860_v15 }
 0x127   : > { %7608 = vmatprep.mubr.msk.bf16.mxu0 %vm7859_vm1, %v10895_v47  ;;  %v4683_v16 = vcombine.low %v4506_v39, %v4514_v28  ;;  %v841_v28 = vld [vmem:[#allocation2 + $0x68] sm:$0xf] }
 0x128   : > { %v2317_v61 = vld [vmem:[#allocation2 + $0x28] sm:$0xff] }
 0x129   : > { %v4704_v0 = vrot.slane %v4683_v16, %v7969_v10  ;;  %v1829_v8 = vld [vmem:[#allocation2 + $0x40] sm:$0xff] }
 0x12a   : > { %v2253_v40 = vpop.f32.mrf.mxu1 }
 0x12b   : > { %v2290_v63 = vadd.f32 %v2253_v40, %v1827_v31  ;;  %v4719_v37 = vrot.slane %v4704_v0, %v7969_v10 }
 0x12c   : > { %7631 = vmatmul.mubr.msk.bf16.gmra.mxu1 %vm1177_vm14, %v4631_v14  ;;  %v7448_v62 = vpop.f32.mrf.mxu1 }
 0x12d   : > { %7634 = vmatprep.mubr.msk.bf16.mxu1 %vm7859_vm1, %v10895_v47  ;;  %2304 = vst.msk [vmem:[#allocation2 + $0x30] sm:$0xff] %vm422_vm4, %v2290_v63  ;;  %v4720_v60 = vcombine.low %v4712_v4, %v4719_v37  ;;  %v1830_v53 = vld [vmem:[#allocation2 + $0x48] sm:$0xff]  ;;  %v5012_v4 = vrot.slane %v7224_v50, %v7969_v10 }
 0x12e   : > { %7609 = vmatmul.mubr.msk.bf16.gmra.mxu0 %vm1177_vm14, %v4292_v52  ;;  %v2256_v45 = vpop.f32.mrf.mxu1 }
 0x12f   : > { %7644 = vmatprep.mubr.msk.bf16.mxu0 %vm7859_vm1, %v10895_v47  ;;  %v2291_v48 = vadd.f32 %v2256_v45, %v1828_v57  ;;  %v1277_v9 = vpop.f32.mrf.mxu0 }
 0x130   : > { %v1302_v30 = vadd.f32 %v1277_v9, %v838_v26  ;;  %v7449_v33 = vpop.f32.mrf.mxu1 }
 0x131   : > { %2305 = vst.msk [vmem:[#allocation2 + $0x38] sm:$0xff] %vm422_vm4, %v2291_v48  ;;  %v7426_v44 = vpop.f32.mrf.mxu0 }
 0x132   : > { %1316 = vst.msk [vmem:[#allocation2 + $0x50] sm:$0xff] %vm422_vm4, %v1302_v30  ;;  %v2314_v30 = vld [vmem:[#allocation2 + $0x10] sm:$0xff]  ;;  %v4998_v44 = vcombine.low %v9884_v46, %v9930_v51 }
 0x133   : > { %v1280_v43 = vpop.f32.mrf.mxu0 }
 0x134   : > { %7635 = vmatmul.mubr.msk.bf16.gmra.mxu1 %vm1177_vm14, %v4680_v54  ;;  %v1303_v2 = vadd.f32 %v1280_v43, %v839_v25  ;;  %v5005_v25 = vrot.slane %v4996_v27, %v7969_v10  ;;  %v5019_v46 = vrot.slane %v4998_v44, %v7969_v10 }
 0x135   : > { %7638 = vmatprep.mubr.msk.bf16.mxu1 %vm7859_vm1, %v10895_v47  ;;  %v7427_v58 = vpop.f32.mrf.mxu0 }
 0x136   : > { %7645 = vmatmul.mubr.msk.bf16.vlgmr.msra.gmra.mxu0 %vm1177_vm14, %v11082_v29  ;;  %1317 = vst.msk [vmem:[#allocation2 + $0x58] sm:$0xff] %vm422_vm4, %v1303_v2  ;;  %v5020_v51 = vcombine.low %v5005_v25, %v5012_v4 }
 0x137   : > { %7648 = vmatprep.mubr.msk.bf16.mxu0 %vm7859_vm1, %v10895_v47 }
 0x13b   : > { %v2261_v41 = vpop.f32.mrf.mxu1 }
 0x13c   : > { %7639 = vmatmul.mubr.msk.bf16.gmra.mxu1 %vm1177_vm14, %v4720_v60  ;;  %v2292_v21 = vadd.f32 %v2261_v41, %v1829_v8  ;;  %v2316_v41 = vld [vmem:[#allocation2 + $0x20] sm:$0xff] }
 0x13d   : > { %v7452_v32 = vpop.f32.mrf.mxu1  ;;  %v1832_v42 = vld [vmem:[#allocation2 + $0x58] sm:$0xff] }
 0x13e   : > { %7649 = vmatmul.mubr.msk.bf16.gmra.mxu0 %vm1177_vm14, %v4911_v38  ;;  %2306 = vst.msk [vmem:[#allocation2 + $0x40] sm:$0xff] %vm422_vm4, %v2292_v21  ;;  %v1831_v38 = vld [vmem:[#allocation2 + $0x50] sm:$0xff]  ;;  %v5027_v32 = vrot.slane %v5020_v51, %v7969_v10 }
 0x13f   : > { %v2264_v20 = vpop.f32.mrf.mxu1  ;;  %7652 = vmatprep.mubr.msk.bf16.mxu0 %vm7859_vm1, %v10895_v47  ;;  %v1285_v14 = vpop.f32.mrf.mxu0 }
 0x140   : > { %v2293_v56 = vadd.f32 %v2264_v20, %v1830_v53  ;;  %v1304_v22 = vadd.f32 %v1285_v14, %v840_v11  ;;  %v5034_v53 = vrot.slane %v5019_v46, %v7969_v10 }
 0x141   : > { %v7453_v31 = vpop.f32.mrf.mxu1  ;;  %v7430_v39 = vpop.f32.mrf.mxu0 }
 0x142   : > { %2307 = vst.msk [vmem:[#allocation2 + $0x48] sm:$0xff] %vm422_vm4, %v2293_v56  ;;  %1318 = vst.msk [vmem:[#allocation2 + $0x60] sm:$0xff] %vm422_vm4, %v1304_v22 }
 0x143   : > { %v1288_v52 = vpop.f32.mrf.mxu0 }
 0x144   : > { %v1305_v55 = vadd.f32 %v1288_v52, %v841_v28 }
 0x145   : > { %v7431_v1 = vpop.f32.mrf.mxu0 }
 0x146   : > { %7653 = vmatmul.mubr.msk.bf16.gmra.mxu0 %vm1177_vm14, %v4928_v6  ;;  %1319 = vst.msk [vmem:[#allocation2 + $0x68] sm:$0xf] %vm436_vm5, %v1305_v55  ;;  %v2318_v1 = vld [vmem:[#allocation2 + $0x30] sm:$0xff] }
 0x147   : > { %7656 = vmatprep.mubr.msk.bf16.mxu0 %vm7859_vm1, %v10895_v47 }
 0x149   : > { %v1833_v0 = vld [vmem:[#allocation2 + $0x60] sm:$0xff] }
 0x14a   : > { %v2269_v18 = vpop.f32.mrf.mxu1  ;;  %v2720_v40 = vpop.f32.mrf.mxu0 }
 0x14b   : > { %v2294_v63 = vadd.f32 %v2269_v18, %v1831_v38  ;;  %v2775_v16 = vadd.f32 %v2720_v40, %v2312_v35 }
 0x14c   : > { %v7456_v13 = vpop.f32.mrf.mxu1  ;;  %v7466_v62 = vpop.f32.mrf.mxu0 }
 0x14d   : > { %2308 = vst.msk [vmem:[#allocation2 + $0x50] sm:$0xff] %vm422_vm4, %v2294_v63  ;;  %2789 = vst.msk [vmem:[#allocation2] sm:$0xff] %vm422_vm4, %v2775_v16  ;;  %v1834_v9 = vld [vmem:[#allocation2 + $0x68] sm:$0xf] }
 0x14e   : > { %v2272_v17 = vpop.f32.mrf.mxu1  ;;  %7657 = vmatmul.mubr.msk.bf16.gmra.mxu0 %vm1177_vm14, %v4945_v19  ;;  %v2723_v6 = vpop.f32.mrf.mxu0 }
 0x14f   : > { %v2295_v57 = vadd.f32 %v2272_v17, %v1832_v42  ;;  %v2776_v26 = vadd.f32 %v2723_v6, %v2313_v5  ;;  %7660 = vmatprep.mubr.msk.bf16.mxu0 %vm7859_vm1, %v10895_v47  ;;  %v2319_v42 = vld [vmem:[#allocation2 + $0x38] sm:$0xff] }
 0x150   : > { %v7457_v45 = vpop.f32.mrf.mxu1  ;;  %v7467_v54 = vpop.f32.mrf.mxu0 }
 0x151   : > { %2309 = vst.msk [vmem:[#allocation2 + $0x58] sm:$0xff] %vm422_vm4, %v2295_v57  ;;  %2790 = vst.msk [vmem:[#allocation2 + $0x8] sm:$0xff] %vm422_vm4, %v2776_v26  ;;  %v2320_v54 = vld [vmem:[#allocation2 + $0x40] sm:$0xff] }
 0x154   : > { %v2277_v49 = vpop.f32.mrf.mxu1  ;;  %v2868_v24 = vld [vmem:[#allocation2] sm:$0xff] }
 0x155   : > { %v2296_v19 = vadd.f32 %v2277_v49, %v1833_v0 }
 0x156   : > { %v7460_v48 = vpop.f32.mrf.mxu1  ;;  %v2728_v33 = vpop.f32.mrf.mxu0  ;;  %7661 = vmatmul.mubr.msk.bf16.gmra.mxu0 %vm1177_vm14, %v4962_v12  ;;  %v2315_v12 = vld [vmem:[#allocation2 + $0x18] sm:$0xff] }
 0x157   : > { %2310 = vst.msk [vmem:[#allocation2 + $0x60] sm:$0xff] %vm422_vm4, %v2296_v19  ;;  %v2777_v59 = vadd.f32 %v2728_v33, %v2314_v30  ;;  %7664 = vmatprep.mubr.msk.bf16.mxu0 %vm7859_vm1, %v10895_v47  ;;  %v2321_v30 = vld [vmem:[#allocation2 + $0x48] sm:$0xff] }
 0x158   : > { %v2280_v15 = vpop.f32.mrf.mxu1  ;;  %v7470_v37 = vpop.f32.mrf.mxu0  ;;  %v2869_v8 = vld [vmem:[#allocation2 + $0x8] sm:$0xff] }
 0x159   : > { %v2297_v43 = vadd.f32 %v2280_v15, %v1834_v9  ;;  %2791 = vst.msk [vmem:[#allocation2 + $0x10] sm:$0xff] %vm422_vm4, %v2777_v59 }
 0x15a   : > { %v7461_v7 = vpop.f32.mrf.mxu1  ;;  %v2731_v2 = vpop.f32.mrf.mxu0 }
 0x15b   : > { %2311 = vst.msk [vmem:[#allocation2 + $0x68] sm:$0xf] %vm436_vm5, %v2297_v43  ;;  %v2778_v34 = vadd.f32 %v2731_v2, %v2315_v12  ;;  %v2322_v43 = vld [vmem:[#allocation2 + $0x50] sm:$0xff]  ;;  %v5871_v12 = vld [vmem:[%s10771_s3] sm:$0xf] }
 0x15c   : > { %v3092_v36 = vpop.f32.mrf.mxu1  ;;  %v7471_v29 = vpop.f32.mrf.mxu0  ;;  %7762 = vmatprep.subr.msk.bf16.mxu1 %vm5884_vm0, %v5871_v12 }
 0x15d   : > { %v3147_v58 = vadd.f32 %v3092_v36, %v2868_v24  ;;  %2792 = vst.msk [vmem:[#allocation2 + $0x18] sm:$0xff] %vm422_vm4, %v2778_v34  ;;  %v2323_v29 = vld [vmem:[#allocation2 + $0x58] sm:$0xff] }
 0x15e   : > { %v7496_v60 = vpop.f32.mrf.mxu1  ;;  %v2736_v21 = vpop.f32.mrf.mxu0  ;;  %7665 = vmatmul.mubr.msk.bf16.gmra.mxu0 %vm1177_vm14, %v4995_v23  ;;  %v5035_v23 = vcombine.low %v5027_v32, %v5034_v53 }
 0x15f   : > { %3161 = vst.msk [vmem:[#allocation2] sm:$0xff] %vm422_vm4, %v3147_v58  ;;  %v2779_v11 = vadd.f32 %v2736_v21, %v2316_v41  ;;  %7668 = vmatprep.mubr.msk.bf16.mxu0 %vm7859_vm1, %v10895_v47 }
 0x160   : > { %v3095_v20 = vpop.f32.mrf.mxu1  ;;  %v7474_v14 = vpop.f32.mrf.mxu0  ;;  %v2870_v31 = vld [vmem:[#allocation2 + $0x10] sm:$0xff] }
 0x161   : > { %v3148_v56 = vadd.f32 %v3095_v20, %v2869_v8  ;;  %2793 = vst.msk [vmem:[#allocation2 + $0x20] sm:$0xff] %vm422_vm4, %v2779_v11  ;;  %v5886_v8 = vsel %vm5884_vm0, %v5871_v12, 0  ;;  %v2324_v20 = vld [vmem:[#allocation2 + $0x60] sm:$0xff] }
 0x162   : > { %v7497_v22 = vpop.f32.mrf.mxu1  ;;  %v2739_v3 = vpop.f32.mrf.mxu0  ;;  %7673 = vmatpush3.bf16.msra.mxu1 %v5886_v8 }
 0x163   : > { %3162 = vst.msk [vmem:[#allocation2 + $0x8] sm:$0xff] %vm422_vm4, %v3148_v56  ;;  %v2780_v39 = vadd.f32 %v2739_v3, %v2317_v61 }
 0x164   : > { %v3100_v10 = vpop.f32.mrf.mxu1  ;;  %v7475_v28 = vpop.f32.mrf.mxu0  ;;  %v2871_v47 = vld [vmem:[#allocation2 + $0x18] sm:$0xff] }
 0x165   : > { %v3149_v52 = vadd.f32 %v3100_v10, %v2870_v31  ;;  %2794 = vst.msk [vmem:[#allocation2 + $0x28] sm:$0xff] %vm422_vm4, %v2780_v39  ;;  %v2325_v39 = vld [vmem:[#allocation2 + $0x68] sm:$0xf] }
 0x166   : > { %v7500_v55 = vpop.f32.mrf.mxu1  ;;  %v2744_v38 = vpop.f32.mrf.mxu0  ;;  %7669 = vmatmul.mubr.msk.bf16.gmra.mxu0 %vm1177_vm14, %v5035_v23 }
 0x167   : > { %3163 = vst.msk [vmem:[#allocation2 + $0x10] sm:$0xff] %vm422_vm4, %v3149_v52  ;;  %v2781_v18 = vadd.f32 %v2744_v38, %v2318_v1 }
 0x168   : > { %v3103_v35 = vpop.f32.mrf.mxu1  ;;  %v7478_v40 = vpop.f32.mrf.mxu0  ;;  %v2872_v13 = vld [vmem:[#allocation2 + $0x20] sm:$0xff] }
 0x169   : > { %v3150_v63 = vadd.f32 %v3103_v35, %v2871_v47  ;;  %2795 = vst.msk [vmem:[#allocation2 + $0x30] sm:$0xff] %vm422_vm4, %v2781_v18  ;;  %v3256_v18 = vld [vmem:[#allocation2] sm:$0xff] }
 0x16a   : > { %v7501_v16 = vpop.f32.mrf.mxu1  ;;  %v2747_v62 = vpop.f32.mrf.mxu0 }
 0x16b   : > { %3164 = vst.msk [vmem:[#allocation2 + $0x18] sm:$0xff] %vm422_vm4, %v3150_v63  ;;  %v2782_v17 = vadd.f32 %v2747_v62, %v2319_v42 }
 0x16c   : > { %v3108_v5 = vpop.f32.mrf.mxu1  ;;  %v7479_v6 = vpop.f32.mrf.mxu0  ;;  %v2873_v45 = vld [vmem:[#allocation2 + $0x28] sm:$0xff] }
 0x16d   : > { %v3151_v57 = vadd.f32 %v3108_v5, %v2872_v13  ;;  %2796 = vst.msk [vmem:[#allocation2 + $0x38] sm:$0xff] %vm422_vm4, %v2782_v17  ;;  %v3257_v17 = vld [vmem:[#allocation2 + $0x8] sm:$0xff] }
 0x16e   : > { %v7504_v26 = vpop.f32.mrf.mxu1  ;;  %v2752_v0 = vpop.f32.mrf.mxu0 }
 0x16f   : > { %3165 = vst.msk [vmem:[#allocation2 + $0x20] sm:$0xff] %vm422_vm4, %v3151_v57  ;;  %v2783_v27 = vadd.f32 %v2752_v0, %v2320_v54 }
 0x170   : > { %v3111_v50 = vpop.f32.mrf.mxu1  ;;  %v7482_v49 = vpop.f32.mrf.mxu0  ;;  %v2874_v9 = vld [vmem:[#allocation2 + $0x30] sm:$0xff] }
 0x171   : > { %v3152_v19 = vadd.f32 %v3111_v50, %v2873_v45  ;;  %2797 = vst.msk [vmem:[#allocation2 + $0x40] sm:$0xff] %vm422_vm4, %v2783_v27  ;;  %v3258_v27 = vld [vmem:[#allocation2 + $0x10] sm:$0xff] }
 0x172   : > { %v7505_v48 = vpop.f32.mrf.mxu1  ;;  %v2755_v33 = vpop.f32.mrf.mxu0 }
 0x173   : > { %3166 = vst.msk [vmem:[#allocation2 + $0x28] sm:$0xff] %vm422_vm4, %v3152_v19  ;;  %v2784_v44 = vadd.f32 %v2755_v33, %v2321_v30 }
 0x174   : > { %v3116_v25 = vpop.f32.mrf.mxu1  ;;  %v7483_v4 = vpop.f32.mrf.mxu0  ;;  %v2875_v37 = vld [vmem:[#allocation2 + $0x38] sm:$0xff] }
 0x175   : > { %v3153_v59 = vadd.f32 %v3116_v25, %v2874_v9  ;;  %2798 = vst.msk [vmem:[#allocation2 + $0x48] sm:$0xff] %vm422_vm4, %v2784_v44  ;;  %v3259_v44 = vld [vmem:[#allocation2 + $0x18] sm:$0xff] }
 0x176   : > { %v7508_v15 = vpop.f32.mrf.mxu1  ;;  %v2760_v7 = vpop.f32.mrf.mxu0 }
 0x177   : > { %3167 = vst.msk [vmem:[#allocation2 + $0x30] sm:$0xff] %vm422_vm4, %v3153_v59  ;;  %v2785_v24 = vadd.f32 %v2760_v7, %v2322_v43 }
 0x178   : > { %v3119_v2 = vpop.f32.mrf.mxu1  ;;  %v7486_v46 = vpop.f32.mrf.mxu0  ;;  %v2876_v36 = vld [vmem:[#allocation2 + $0x40] sm:$0xff] }
 0x179   : > { %v3154_v51 = vadd.f32 %v3119_v2, %v2875_v37  ;;  %2799 = vst.msk [vmem:[#allocation2 + $0x50] sm:$0xff] %vm422_vm4, %v2785_v24  ;;  %v3260_v24 = vld [vmem:[#allocation2 + $0x20] sm:$0xff] }
 0x17a   : > { %v7509_v34 = vpop.f32.mrf.mxu1  ;;  %v2763_v58 = vpop.f32.mrf.mxu0 }
 0x17b   : > { %3168 = vst.msk [vmem:[#allocation2 + $0x38] sm:$0xff] %vm422_vm4, %v3154_v51  ;;  %v2786_v60 = vadd.f32 %v2763_v58, %v2323_v29  ;;  %v3261_v58 = vld [vmem:[#allocation2 + $0x28] sm:$0xff] }
 0x17c   : > { %v3124_v41 = vpop.f32.mrf.mxu1  ;;  %v7487_v21 = vpop.f32.mrf.mxu0  ;;  %v2877_v11 = vld [vmem:[#allocation2 + $0x48] sm:$0xff] }
 0x17d   : > { %v3155_v32 = vadd.f32 %v3124_v41, %v2876_v36  ;;  %2800 = vst.msk [vmem:[#allocation2 + $0x58] sm:$0xff] %vm422_vm4, %v2786_v60 }
 0x17e   : > { %v7512_v53 = vpop.f32.mrf.mxu1  ;;  %v2768_v14 = vpop.f32.mrf.mxu0 }
 0x17f   : > { %3169 = vst.msk [vmem:[#allocation2 + $0x40] sm:$0xff] %vm422_vm4, %v3155_v32  ;;  %v2787_v56 = vadd.f32 %v2768_v14, %v2324_v20  ;;  %v3262_v20 = vld [vmem:[#allocation2 + $0x30] sm:$0xff] }
 0x180   : > { %v3127_v22 = vpop.f32.mrf.mxu1  ;;  %v7490_v31 = vpop.f32.mrf.mxu0  ;;  %v2878_v23 = vld [vmem:[#allocation2 + $0x50] sm:$0xff] }
 0x181   : > { %v3156_v61 = vadd.f32 %v3127_v22, %v2877_v11  ;;  %2801 = vst.msk [vmem:[#allocation2 + $0x60] sm:$0xff] %vm422_vm4, %v2787_v56 }
 0x182   : > { %v7513_v3 = vpop.f32.mrf.mxu1  ;;  %v2771_v10 = vpop.f32.mrf.mxu0 }
 0x183   : > { %3170 = vst.msk [vmem:[#allocation2 + $0x48] sm:$0xff] %vm422_vm4, %v3156_v61  ;;  %v2788_v28 = vadd.f32 %v2771_v10, %v2325_v39  ;;  %v3263_v39 = vld [vmem:[#allocation2 + $0x38] sm:$0xff] }
 0x184   : > { %v3132_v52 = vpop.f32.mrf.mxu1  ;;  %v7491_v55 = vpop.f32.mrf.mxu0  ;;  %v2879_v38 = vld [vmem:[#allocation2 + $0x58] sm:$0xff] }
 0x185   : > { %v3157_v47 = vadd.f32 %v3132_v52, %v2878_v23  ;;  %2802 = vst.msk [vmem:[#allocation2 + $0x68] sm:$0xf] %vm436_vm5, %v2788_v28 }
 0x186   : > { %v7516_v1 = vpop.f32.mrf.mxu1  ;;  %v3664_v35 = vpop.f32.mrf.mxu0 }
 0x187   : > { %3171 = vst.msk [vmem:[#allocation2 + $0x50] sm:$0xff] %vm422_vm4, %v3157_v47  ;;  %v3719_v40 = vadd.f32 %v3664_v35, %v3256_v18  ;;  %v3264_v18 = vld [vmem:[#allocation2 + $0x40] sm:$0xff] }
 0x188   : > { %v3135_v63 = vpop.f32.mrf.mxu1  ;;  %v7526_v16 = vpop.f32.mrf.mxu0  ;;  %v2880_v62 = vld [vmem:[#allocation2 + $0x60] sm:$0xff] }
 0x189   : > { %v3158_v13 = vadd.f32 %v3135_v63, %v2879_v38  ;;  %3733 = vst.msk [vmem:[#allocation2] sm:$0xff] %vm422_vm4, %v3719_v40 }
 0x18a   : > { %v7517_v42 = vpop.f32.mrf.mxu1  ;;  %v3667_v5 = vpop.f32.mrf.mxu0 }
 0x18b   : > { %3172 = vst.msk [vmem:[#allocation2 + $0x58] sm:$0xff] %vm422_vm4, %v3158_v13  ;;  %v3720_v6 = vadd.f32 %v3667_v5, %v3257_v17  ;;  %v3265_v17 = vld [vmem:[#allocation2 + $0x48] sm:$0xff] }
 0x18c   : > { %v3140_v57 = vpop.f32.mrf.mxu1  ;;  %v7527_v26 = vpop.f32.mrf.mxu0  ;;  %v2881_v0 = vld [vmem:[#allocation2 + $0x68] sm:$0xf] }
 0x18d   : > { %v3159_v45 = vadd.f32 %v3140_v57, %v2880_v62  ;;  %3734 = vst.msk [vmem:[#allocation2 + $0x8] sm:$0xff] %vm422_vm4, %v3720_v6 }
 0x18e   : > { %v7520_v54 = vpop.f32.mrf.mxu1  ;;  %v3672_v50 = vpop.f32.mrf.mxu0 }
 0x18f   : > { %3173 = vst.msk [vmem:[#allocation2 + $0x60] sm:$0xff] %vm422_vm4, %v3159_v45  ;;  %v3721_v49 = vadd.f32 %v3672_v50, %v3258_v27  ;;  %v10098_v54 = vld [vmem:[%s10771_s3 + $0x4] sm:$0xf] }
 0x190   : > { %v3143_v19 = vpop.f32.mrf.mxu1  ;;  %v7530_v48 = vpop.f32.mrf.mxu0  ;;  %v3747_v33 = vld [vmem:[#allocation2] sm:$0xff]  ;;  %7763 = vmatprep.subr.msk.bf16.mxu1 %vm5884_vm0, %v10098_v54 }
 0x191   : > { %v3160_v9 = vadd.f32 %v3143_v19, %v2881_v0  ;;  %3735 = vst.msk [vmem:[#allocation2 + $0x10] sm:$0xff] %vm422_vm4, %v3721_v49  ;;  %v7254_v0 = vld [vmem:[%s10771_s3 + $0x10] sm:$0xf] }
 0x192   : > { %v7521_v30 = vpop.f32.mrf.mxu1  ;;  %v3675_v25 = vpop.f32.mrf.mxu0  ;;  %v3266_v49 = vld [vmem:[#allocation2 + $0x50] sm:$0xff]  ;;  %7766 = vmatprep.subr.msk.bf16.mxu0 %vm5884_vm0, %v7254_v0  ;;  %v6369_v48 = vsel %vm5884_vm0, %v7254_v0, 0 }
 0x193   : > { %3174 = vst.msk [vmem:[#allocation2 + $0x68] sm:$0xf] %vm436_vm5, %v3160_v9  ;;  %v3722_v4 = vadd.f32 %v3675_v25, %v3259_v44  ;;  %7713 = vmatpush3.bf16.msra.mxu0 %v6369_v48 }
 0x194   : > { %v4011_v59 = vpop.f32.mrf.mxu1  ;;  %v7531_v15 = vpop.f32.mrf.mxu0  ;;  %v3748_v7 = vld [vmem:[#allocation2 + $0x8] sm:$0xff] }
 0x195   : > { %v4066_v37 = vadd.f32 %v4011_v59, %v3747_v33  ;;  %3736 = vst.msk [vmem:[#allocation2 + $0x18] sm:$0xff] %vm422_vm4, %v3722_v4  ;;  %v3267_v59 = vld [vmem:[#allocation2 + $0x58] sm:$0xff] }
 0x196   : > { %v7556_v43 = vpop.f32.mrf.mxu1  ;;  %v3680_v12 = vpop.f32.mrf.mxu0 }
 0x197   : > { %4080 = vst.msk [vmem:[#allocation2] sm:$0xff] %vm422_vm4, %v4066_v37  ;;  %v3723_v2 = vadd.f32 %v3680_v12, %v3260_v24 }
 0x198   : > { %v4014_v46 = vpop.f32.mrf.mxu1  ;;  %v7534_v51 = vpop.f32.mrf.mxu0  ;;  %v3749_v29 = vld [vmem:[#allocation2 + $0x10] sm:$0xff] }
 0x199   : > { %v4067_v34 = vadd.f32 %v4014_v46, %v3748_v7  ;;  %3737 = vst.msk [vmem:[#allocation2 + $0x20] sm:$0xff] %vm422_vm4, %v3723_v2  ;;  %v3268_v46 = vld [vmem:[#allocation2 + $0x60] sm:$0xff] }
 0x19a   : > { %v7557_v36 = vpop.f32.mrf.mxu1  ;;  %v3683_v60 = vpop.f32.mrf.mxu0 }
 0x19b   : > { %4081 = vst.msk [vmem:[#allocation2 + $0x8] sm:$0xff] %vm422_vm4, %v4067_v34  ;;  %v3724_v8 = vadd.f32 %v3683_v60, %v3261_v58 }
 0x19c   : > { %v4019_v41 = vpop.f32.mrf.mxu1  ;;  %v7535_v21 = vpop.f32.mrf.mxu0  ;;  %v3750_v11 = vld [vmem:[#allocation2 + $0x18] sm:$0xff] }
 0x19d   : > { %v4068_v32 = vadd.f32 %v4019_v41, %v3749_v29  ;;  %3738 = vst.msk [vmem:[#allocation2 + $0x28] sm:$0xff] %vm422_vm4, %v3724_v8  ;;  %v3269_v41 = vld [vmem:[#allocation2 + $0x68] sm:$0xf] }
 0x19e   : > { %v7560_v53 = vpop.f32.mrf.mxu1  ;;  %v3688_v14 = vpop.f32.mrf.mxu0 }
 0x19f   : > { %4082 = vst.msk [vmem:[#allocation2 + $0x10] sm:$0xff] %vm422_vm4, %v4068_v32  ;;  %v3725_v56 = vadd.f32 %v3688_v14, %v3262_v20 }
 0x1a0   : > { %v4022_v22 = vpop.f32.mrf.mxu1  ;;  %v7538_v31 = vpop.f32.mrf.mxu0  ;;  %v3751_v23 = vld [vmem:[#allocation2 + $0x20] sm:$0xff] }
 0x1a1   : > { %v4069_v61 = vadd.f32 %v4022_v22, %v3750_v11  ;;  %3739 = vst.msk [vmem:[#allocation2 + $0x30] sm:$0xff] %vm422_vm4, %v3725_v56  ;;  %v4159_v22 = vld [vmem:[#allocation2] sm:$0xff] }
 0x1a2   : > { %v7561_v3 = vpop.f32.mrf.mxu1  ;;  %v3691_v10 = vpop.f32.mrf.mxu0 }
 0x1a3   : > { %4083 = vst.msk [vmem:[#allocation2 + $0x18] sm:$0xff] %vm422_vm4, %v4069_v61  ;;  %v3726_v28 = vadd.f32 %v3691_v10, %v3263_v39 }
 0x1a4   : > { %v4027_v52 = vpop.f32.mrf.mxu1  ;;  %v7539_v55 = vpop.f32.mrf.mxu0  ;;  %v3752_v38 = vld [vmem:[#allocation2 + $0x28] sm:$0xff] }
 0x1a5   : > { %v4070_v47 = vadd.f32 %v4027_v52, %v3751_v23  ;;  %3740 = vst.msk [vmem:[#allocation2 + $0x38] sm:$0xff] %vm422_vm4, %v3726_v28  ;;  %v4160_v52 = vld [vmem:[#allocation2 + $0x8] sm:$0xff] }
 0x1a6   : > { %v7564_v1 = vpop.f32.mrf.mxu1  ;;  %v3696_v35 = vpop.f32.mrf.mxu0 }
 0x1a7   : > { %4084 = vst.msk [vmem:[#allocation2 + $0x20] sm:$0xff] %vm422_vm4, %v4070_v47  ;;  %v3727_v40 = vadd.f32 %v3696_v35, %v3264_v18 }
 0x1a8   : > { %v4030_v63 = vpop.f32.mrf.mxu1  ;;  %v7542_v16 = vpop.f32.mrf.mxu0  ;;  %v3753_v62 = vld [vmem:[#allocation2 + $0x30] sm:$0xff] }
 0x1a9   : > { %v4071_v13 = vadd.f32 %v4030_v63, %v3752_v38  ;;  %3741 = vst.msk [vmem:[#allocation2 + $0x40] sm:$0xff] %vm422_vm4, %v3727_v40  ;;  %v4161_v63 = vld [vmem:[#allocation2 + $0x10] sm:$0xff] }
 0x1aa   : > { %v7565_v42 = vpop.f32.mrf.mxu1  ;;  %v3699_v5 = vpop.f32.mrf.mxu0 }
 0x1ab   : > { %4085 = vst.msk [vmem:[#allocation2 + $0x28] sm:$0xff] %vm422_vm4, %v4071_v13  ;;  %v3728_v6 = vadd.f32 %v3699_v5, %v3265_v17 }
 0x1ac   : > { %v4035_v57 = vpop.f32.mrf.mxu1  ;;  %v7543_v26 = vpop.f32.mrf.mxu0  ;;  %v3754_v50 = vld [vmem:[#allocation2 + $0x38] sm:$0xff] }
 0x1ad   : > { %v4072_v45 = vadd.f32 %v4035_v57, %v3753_v62  ;;  %3742 = vst.msk [vmem:[#allocation2 + $0x48] sm:$0xff] %vm422_vm4, %v3728_v6  ;;  %v4162_v57 = vld [vmem:[#allocation2 + $0x18] sm:$0xff] }
 0x1ae   : > { %v7568_v27 = vpop.f32.mrf.mxu1  ;;  %v3704_v19 = vpop.f32.mrf.mxu0  ;;  %v4163_v48 = vld [vmem:[#allocation2 + $0x20] sm:$0xff] }
 0x1af   : > { %4086 = vst.msk [vmem:[#allocation2 + $0x30] sm:$0xff] %vm422_vm4, %v4072_v45  ;;  %v3729_v9 = vadd.f32 %v3704_v19, %v3266_v49 }
 0x1b0   : > { %v4038_v30 = vpop.f32.mrf.mxu1  ;;  %v7546_v33 = vpop.f32.mrf.mxu0  ;;  %v3755_v4 = vld [vmem:[#allocation2 + $0x40] sm:$0xff] }
 0x1b1   : > { %v4073_v44 = vadd.f32 %v4038_v30, %v3754_v50  ;;  %3743 = vst.msk [vmem:[#allocation2 + $0x50] sm:$0xff] %vm422_vm4, %v3729_v9  ;;  %v10128_v33 = vld [vmem:[%s10771_s3 + $0x18] sm:$0xf] }
 0x1b2   : > { %v7569_v25 = vpop.f32.mrf.mxu1  ;;  %v3707_v15 = vpop.f32.mrf.mxu0  ;;  %7768 = vmatprep.subr.msk.bf16.mxu0 %vm5884_vm0, %v10128_v33 }
 0x1b3   : > { %4087 = vst.msk [vmem:[#allocation2 + $0x38] sm:$0xff] %vm422_vm4, %v4073_v44  ;;  %v3730_v37 = vadd.f32 %v3707_v15, %v3267_v59 }
 0x1b4   : > { %v4043_v43 = vpop.f32.mrf.mxu1  ;;  %v7547_v7 = vpop.f32.mrf.mxu0  ;;  %v3756_v2 = vld [vmem:[#allocation2 + $0x48] sm:$0xff] }
 0x1b5   : > { %v4074_v24 = vadd.f32 %v4043_v43, %v3755_v4  ;;  %3744 = vst.msk [vmem:[#allocation2 + $0x58] sm:$0xff] %vm422_vm4, %v3730_v37  ;;  %v4164_v37 = vld [vmem:[#allocation2 + $0x28] sm:$0xff]  ;;  %v10133_v7 = vstv %s7234_s23 }
 0x1b6   : > { %v7572_v12 = vpop.f32.mrf.mxu1  ;;  %v3712_v51 = vpop.f32.mrf.mxu0  ;;  %vm5501_vm10 = vcmp.ge.s32.totalorder %v10133_v7, 0  ;;  %vm5507_vm11 = vcmp.lt.s32.totalorder %v10133_v7, 16 }
 0x1b7   : > { %4088 = vst.msk [vmem:[#allocation2 + $0x40] sm:$0xff] %vm422_vm4, %v4074_v24  ;;  %v3731_v34 = vadd.f32 %v3712_v51, %v3268_v46  ;;  %v5496_v12 = vadd.s32 5, %v10133_v7  ;;  %v11083_v51 = vld [vmem:[#allocation4_spill] sm:$0xff]  ;;  %vm10215_vm13 = vmand %vm5501_vm10, %vm5507_vm11 }
 0x1b8   : > { %v4046_v36 = vpop.f32.mrf.mxu1  ;;  %v7550_v29 = vpop.f32.mrf.mxu0  ;;  %v3757_v8 = vld [vmem:[#allocation2 + $0x50] sm:$0xff]  ;;  %vm5519_vm12 = vcmp.ge.s32.totalorder %v11083_v51, 1 }
 0x1b9   : > { %v4075_v58 = vadd.f32 %v4046_v36, %v3756_v2  ;;  %3745 = vst.msk [vmem:[#allocation2 + $0x60] sm:$0xff] %vm422_vm4, %v3731_v34  ;;  %v10138_v34 = vadd.s32 16, %v11083_v51  ;;  %vm5506_vm1 = vcmp.ge.s32.totalorder %v5496_v12, 0  ;;  %vm5512_vm6 = vcmp.lt.s32.totalorder %v5496_v12, 16  ;;  %vm10234_vm15 = vmand %vm10215_vm13, %vm5519_vm12 }
 0x1ba   : > { %v7573_v60 = vpop.f32.mrf.mxu1  ;;  %v3715_v21 = vpop.f32.mrf.mxu0  ;;  %vm10143_vm8 = vmand %vm5506_vm1, %vm5512_vm6 }
 0x1bb   : > { %4089 = vst.msk [vmem:[#allocation2 + $0x48] sm:$0xff] %vm422_vm4, %v4075_v58  ;;  %v3732_v32 = vadd.f32 %v3715_v21, %v3269_v41  ;;  %v4165_v60 = vld [vmem:[#allocation2 + $0x30] sm:$0xff]  ;;  %vm5542_vm7 = vcmp.le.s32.totalorder %v10138_v34, 16 }
 0x1bc   : > { %v4051_v53 = vpop.f32.mrf.mxu1  ;;  %v7551_v11 = vpop.f32.mrf.mxu0  ;;  %v3758_v56 = vld [vmem:[#allocation2 + $0x58] sm:$0xff]  ;;  %vm10152_vm9 = vmand %vm10143_vm8, %vm5542_vm7 }
 0x1bd   : > { %v4076_v20 = vadd.f32 %v4051_v53, %v3757_v8  ;;  %3746 = vst.msk [vmem:[#allocation2 + $0x68] sm:$0xf] %vm436_vm5, %v3732_v32 }
 0x1be   : > { %v7576_v14 = vpop.f32.mrf.mxu1  ;;  %v4351_v31 = vpop.f32.mrf.mxu0 }
 0x1bf   : > { %4090 = vst.msk [vmem:[#allocation2 + $0x50] sm:$0xff] %vm422_vm4, %v4076_v20  ;;  %v4406_v61 = vadd.f32 %v4351_v31, %v4159_v22  ;;  %v4166_v22 = vld [vmem:[#allocation2 + $0x38] sm:$0xff] }
 0x1c0   : > { %v4054_v3 = vpop.f32.mrf.mxu1  ;;  %v7586_v23 = vpop.f32.mrf.mxu0  ;;  %v3759_v28 = vld [vmem:[#allocation2 + $0x60] sm:$0xff] }
 0x1c1   : > { %v4077_v39 = vadd.f32 %v4054_v3, %v3758_v56  ;;  %4420 = vst.msk [vmem:[#allocation2] sm:$0xff] %vm422_vm4, %v4406_v61 }
 0x1c2   : > { %v7577_v10 = vpop.f32.mrf.mxu1  ;;  %v4354_v55 = vpop.f32.mrf.mxu0 }
 0x1c3   : > { %4091 = vst.msk [vmem:[#allocation2 + $0x58] sm:$0xff] %vm422_vm4, %v4077_v39  ;;  %v4407_v47 = vadd.f32 %v4354_v55, %v4160_v52  ;;  %v4167_v52 = vld [vmem:[#allocation2 + $0x40] sm:$0xff] }
 0x1c4   : > { %v4059_v1 = vpop.f32.mrf.mxu1  ;;  %v7587_v38 = vpop.f32.mrf.mxu0  ;;  %v3760_v40 = vld [vmem:[#allocation2 + $0x68] sm:$0xf] }
 0x1c5   : > { %v4078_v18 = vadd.f32 %v4059_v1, %v3759_v28  ;;  %4421 = vst.msk [vmem:[#allocation2 + $0x8] sm:$0xff] %vm422_vm4, %v4407_v47 }
 0x1c6   : > { %v7580_v35 = vpop.f32.mrf.mxu1  ;;  %v4359_v16 = vpop.f32.mrf.mxu0 }
 0x1c7   : > { %4092 = vst.msk [vmem:[#allocation2 + $0x60] sm:$0xff] %vm422_vm4, %v4078_v18  ;;  %v4408_v13 = vadd.f32 %v4359_v16, %v4161_v63  ;;  %v4168_v63 = vld [vmem:[#allocation2 + $0x48] sm:$0xff] }
 0x1c8   : > { %v4062_v42 = vpop.f32.mrf.mxu1  ;;  %v7590_v62 = vpop.f32.mrf.mxu0  ;;  %v4515_v6 = vld [vmem:[#allocation2] sm:$0xff] }
 0x1c9   : > { %v4079_v17 = vadd.f32 %v4062_v42, %v3760_v40  ;;  %4422 = vst.msk [vmem:[#allocation2 + $0x10] sm:$0xff] %vm422_vm4, %v4408_v13 }
 0x1ca   : > { %v7581_v5 = vpop.f32.mrf.mxu1  ;;  %v4362_v26 = vpop.f32.mrf.mxu0 }
 0x1cb   : > { %4093 = vst.msk [vmem:[#allocation2 + $0x68] sm:$0xf] %vm436_vm5, %v4079_v17  ;;  %v4409_v45 = vadd.f32 %v4362_v26, %v4162_v57  ;;  %v4169_v57 = vld [vmem:[#allocation2 + $0x50] sm:$0xff] }
 0x1cc   : > { %v4779_v0 = vpop.f32.mrf.mxu1  ;;  %v7591_v27 = vpop.f32.mrf.mxu0  ;;  %v4516_v19 = vld [vmem:[#allocation2 + $0x8] sm:$0xff] }
 0x1cd   : > { %v4834_v50 = vadd.f32 %v4779_v0, %v4515_v6  ;;  %4423 = vst.msk [vmem:[#allocation2 + $0x18] sm:$0xff] %vm422_vm4, %v4409_v45 }
 0x1ce   : > { %v7616_v49 = vpop.f32.mrf.mxu1  ;;  %v4367_v9 = vpop.f32.mrf.mxu0 }
 0x1cf   : > { %4848 = vst.msk [vmem:[#allocation2] sm:$0xff] %vm422_vm4, %v4834_v50  ;;  %v4410_v30 = vadd.f32 %v4367_v9, %v4163_v48  ;;  %v4170_v48 = vld [vmem:[#allocation2 + $0x58] sm:$0xff] }
 0x1d0   : > { %v4782_v44 = vpop.f32.mrf.mxu1  ;;  %v7594_v25 = vpop.f32.mrf.mxu0  ;;  %v4517_v15 = vld [vmem:[#allocation2 + $0x10] sm:$0xff] }
 0x1d1   : > { %v4835_v4 = vadd.f32 %v4782_v44, %v4516_v19  ;;  %4424 = vst.msk [vmem:[#allocation2 + $0x20] sm:$0xff] %vm422_vm4, %v4410_v30 }
 0x1d2   : > { %v7617_v59 = vpop.f32.mrf.mxu1  ;;  %v4370_v43 = vpop.f32.mrf.mxu0 }
 0x1d3   : > { %4849 = vst.msk [vmem:[#allocation2 + $0x8] sm:$0xff] %vm422_vm4, %v4835_v4  ;;  %v4411_v24 = vadd.f32 %v4370_v43, %v4164_v37  ;;  %v4171_v37 = vld [vmem:[#allocation2 + $0x60] sm:$0xff] }
 0x1d4   : > { %v4787_v2 = vpop.f32.mrf.mxu1  ;;  %v7595_v46 = vpop.f32.mrf.mxu0  ;;  %v4518_v58 = vld [vmem:[#allocation2 + $0x18] sm:$0xff] }
 0x1d5   : > { %v4836_v36 = vadd.f32 %v4787_v2, %v4517_v15  ;;  %4425 = vst.msk [vmem:[#allocation2 + $0x28] sm:$0xff] %vm422_vm4, %v4411_v24 }
 0x1d6   : > { %v7620_v29 = vpop.f32.mrf.mxu1  ;;  %v4375_v8 = vpop.f32.mrf.mxu0 }
 0x1d7   : > { %4850 = vst.msk [vmem:[#allocation2 + $0x10] sm:$0xff] %vm422_vm4, %v4836_v36  ;;  %v4412_v41 = vadd.f32 %v4375_v8, %v4165_v60 }
 0x1d8   : > { %v4790_v21 = vpop.f32.mrf.mxu1  ;;  %v7598_v32 = vpop.f32.mrf.mxu0  ;;  %v4519_v56 = vld [vmem:[#allocation2 + $0x20] sm:$0xff] }
 0x1d9   : > { %v4837_v11 = vadd.f32 %v4790_v21, %v4518_v58  ;;  %4426 = vst.msk [vmem:[#allocation2 + $0x30] sm:$0xff] %vm422_vm4, %v4412_v41  ;;  %v4172_v58 = vld [vmem:[#allocation2 + $0x68] sm:$0xf] }
 0x1da   : > { %v7621_v14 = vpop.f32.mrf.mxu1  ;;  %v4378_v31 = vpop.f32.mrf.mxu0 }
 0x1db   : > { %4851 = vst.msk [vmem:[#allocation2 + $0x18] sm:$0xff] %vm422_vm4, %v4837_v11  ;;  %v4413_v61 = vadd.f32 %v4378_v31, %v4166_v22 }
 0x1dc   : > { %v4795_v3 = vpop.f32.mrf.mxu1  ;;  %v7599_v23 = vpop.f32.mrf.mxu0  ;;  %v4520_v28 = vld [vmem:[#allocation2 + $0x28] sm:$0xff] }
 0x1dd   : > { %v4838_v39 = vadd.f32 %v4795_v3, %v4519_v56  ;;  %4427 = vst.msk [vmem:[#allocation2 + $0x38] sm:$0xff] %vm422_vm4, %v4413_v61  ;;  %v4862_v56 = vld [vmem:[#allocation2] sm:$0xff] }
 0x1de   : > { %v7624_v10 = vpop.f32.mrf.mxu1  ;;  %v4383_v55 = vpop.f32.mrf.mxu0 }
 0x1df   : > { %4852 = vst.msk [vmem:[#allocation2 + $0x20] sm:$0xff] %vm422_vm4, %v4838_v39  ;;  %v4414_v47 = vadd.f32 %v4383_v55, %v4167_v52 }
 0x1e0   : > { %v4798_v1 = vpop.f32.mrf.mxu1  ;;  %v7602_v38 = vpop.f32.mrf.mxu0  ;;  %v4521_v40 = vld [vmem:[#allocation2 + $0x30] sm:$0xff] }
 0x1e1   : > { %v4839_v18 = vadd.f32 %v4798_v1, %v4520_v28  ;;  %4428 = vst.msk [vmem:[#allocation2 + $0x40] sm:$0xff] %vm422_vm4, %v4414_v47  ;;  %v4863_v28 = vld [vmem:[#allocation2 + $0x8] sm:$0xff]  ;;  %v7861_v47 = vmov 1983009808  }
 0x1e2   : > { %v7625_v35 = vpop.f32.mrf.mxu1  ;;  %v4386_v16 = vpop.f32.mrf.mxu0  ;;  %v5263_v1 = vunpack.c.l.s4 %v7861_v47 }
 0x1e3   : > { %4853 = vst.msk [vmem:[#allocation2 + $0x28] sm:$0xff] %vm422_vm4, %v4839_v18  ;;  %v4415_v13 = vadd.f32 %v4386_v16, %v4168_v63  ;;  %v4864_v16 = vld [vmem:[#allocation2 + $0x10] sm:$0xff] }
 0x1e4   : > { %v4803_v42 = vpop.f32.mrf.mxu1  ;;  %v7603_v62 = vpop.f32.mrf.mxu0  ;;  %v4522_v6 = vld [vmem:[#allocation2 + $0x38] sm:$0xff] }
 0x1e5   : > { %v4840_v17 = vadd.f32 %v4803_v42, %v4521_v40  ;;  %4429 = vst.msk [vmem:[#allocation2 + $0x48] sm:$0xff] %vm422_vm4, %v4415_v13  ;;  %v10177_v42 = vld [vmem:[%s10772_s4] ss:$0 sm:$0xff] }
 0x1e6   : > { %v7628_v5 = vpop.f32.mrf.mxu1  ;;  %v4391_v26 = vpop.f32.mrf.mxu0 }
 0x1e7   : > { %4854 = vst.msk [vmem:[#allocation2 + $0x30] sm:$0xff] %vm422_vm4, %v4840_v17  ;;  %v4416_v45 = vadd.f32 %v4391_v26, %v4169_v57  ;;  %v5264_v17 = vunpack.c.0.s8 %v5263_v1  ;;  %v10183_v26 = vld [vmem:[%s10773_s5] ss:$0 sm:$0xff] }
 0x1e8   : > { %v4806_v0 = vpop.f32.mrf.mxu1  ;;  %v7606_v27 = vpop.f32.mrf.mxu0  ;;  %v4523_v19 = vld [vmem:[#allocation2 + $0x40] sm:$0xff] }
 0x1e9   : > { %v4841_v50 = vadd.f32 %v4806_v0, %v4522_v6  ;;  %4430 = vst.msk [vmem:[#allocation2 + $0x50] sm:$0xff] %vm422_vm4, %v4416_v45  ;;  %v4865_v27 = vld [vmem:[#allocation2 + $0x18] sm:$0xff] }
 0x1ea   : > { %v7629_v49 = vpop.f32.mrf.mxu1  ;;  %v4394_v9 = vpop.f32.mrf.mxu0 }
 0x1eb   : > { %4855 = vst.msk [vmem:[#allocation2 + $0x38] sm:$0xff] %vm422_vm4, %v4841_v50  ;;  %v4417_v30 = vadd.f32 %v4394_v9, %v4170_v48  ;;  %v10190_v9 = vsub.s32 %v5264_v17, %v11083_v51 }
 0x1ec   : > { %v4811_v44 = vpop.f32.mrf.mxu1  ;;  %v7607_v25 = vpop.f32.mrf.mxu0  ;;  %v4524_v15 = vld [vmem:[#allocation2 + $0x48] sm:$0xff] }
 0x1ed   : > { %v4842_v4 = vadd.f32 %v4811_v44, %v4523_v19  ;;  %4431 = vst.msk [vmem:[#allocation2 + $0x58] sm:$0xff] %vm422_vm4, %v4417_v30 }
 0x1ee   : > { %v7632_v59 = vpop.f32.mrf.mxu1  ;;  %v4399_v43 = vpop.f32.mrf.mxu0 }
 0x1ef   : > { %4856 = vst.msk [vmem:[#allocation2 + $0x40] sm:$0xff] %vm422_vm4, %v4842_v4  ;;  %v4418_v24 = vadd.f32 %v4399_v43, %v4171_v37  ;;  %v4866_v59 = vld [vmem:[#allocation2 + $0x20] sm:$0xff] }
 0x1f0   : > { %v4814_v12 = vpop.f32.mrf.mxu1  ;;  %v7610_v2 = vpop.f32.mrf.mxu0  ;;  %v4525_v29 = vld [vmem:[#allocation2 + $0x50] sm:$0xff] }
 0x1f1   : > { %v4843_v46 = vadd.f32 %v4814_v12, %v4524_v15  ;;  %4432 = vst.msk [vmem:[#allocation2 + $0x60] sm:$0xff] %vm422_vm4, %v4418_v24 }
 0x1f2   : > { %v7633_v36 = vpop.f32.mrf.mxu1  ;;  %v4402_v60 = vpop.f32.mrf.mxu0 }
 0x1f3   : > { %4857 = vst.msk [vmem:[#allocation2 + $0x48] sm:$0xff] %vm422_vm4, %v4843_v46  ;;  %v4419_v8 = vadd.f32 %v4402_v60, %v4172_v58 }
 0x1f4   : > { %v4819_v41 = vpop.f32.mrf.mxu1  ;;  %v7611_v21 = vpop.f32.mrf.mxu0  ;;  %v4526_v14 = vld [vmem:[#allocation2 + $0x58] sm:$0xff] }
 0x1f5   : > { %v4844_v32 = vadd.f32 %v4819_v41, %v4525_v29  ;;  %4433 = vst.msk [vmem:[#allocation2 + $0x68] sm:$0xf] %vm436_vm5, %v4419_v8  ;;  %v4867_v8 = vld [vmem:[#allocation2 + $0x28] sm:$0xff] }
 0x1f6   : > { %v7636_v11 = vpop.f32.mrf.mxu1  ;;  %v5094_v22 = vpop.f32.mrf.mxu0 }
 0x1f7   : > { %4858 = vst.msk [vmem:[#allocation2 + $0x50] sm:$0xff] %vm422_vm4, %v4844_v32  ;;  %v5149_v31 = vadd.f32 %v5094_v22, %v4862_v56 }
 0x1f8   : > { %v4822_v61 = vpop.f32.mrf.mxu1  ;;  %v7646_v3 = vpop.f32.mrf.mxu0  ;;  %v4527_v10 = vld [vmem:[#allocation2 + $0x60] sm:$0xff] }
 0x1f9   : > { %v4845_v23 = vadd.f32 %v4822_v61, %v4526_v14  ;;  %5163 = vst.msk [vmem:[#allocation2] sm:$0xff] %vm422_vm4, %v5149_v31  ;;  %v10204_v3 = vadd.s32 1, %v10133_v7 }
 0x1fa   : > { %v7637_v39 = vpop.f32.mrf.mxu1  ;;  %v5097_v52 = vpop.f32.mrf.mxu0 }
 0x1fb   : > { %4859 = vst.msk [vmem:[#allocation2 + $0x58] sm:$0xff] %vm422_vm4, %v4845_v23  ;;  %v5150_v55 = vadd.f32 %v5097_v52, %v4863_v28  ;;  %v4868_v52 = vld [vmem:[#allocation2 + $0x30] sm:$0xff]  ;;  %vm5502_vm14 = vcmp.ge.s32.totalorder %v10204_v3, 0  ;;  %vm5508_vm2 = vcmp.lt.s32.totalorder %v10204_v3, 16  ;;  %v6037_v3 = vsel %vm5884_vm0, %v10098_v54, 0 }
 0x1fc   : > { %v4827_v38 = vpop.f32.mrf.mxu1  ;;  %v7647_v18 = vpop.f32.mrf.mxu0  ;;  %v4528_v63 = vld [vmem:[#allocation2 + $0x68] sm:$0xf]  ;;  %vm10265_vm1 = vmand %vm5502_vm14, %vm5508_vm2  ;;  %vm5969_vm14 = vsmask.f32 7424 }
 0x1fd   : > { %v4846_v35 = vadd.f32 %v4827_v38, %v4527_v10  ;;  %5164 = vst.msk [vmem:[#allocation2 + $0x8] sm:$0xff] %vm422_vm4, %v5150_v55  ;;  %vm5548_vm6 = vmand %vm10265_vm1, %vm5542_vm7 }
 0x1fe   : > { %v7640_v40 = vpop.f32.mrf.mxu1  ;;  %v5102_v13 = vpop.f32.mrf.mxu0  ;;  %vm10290_vm11 = vmand %vm10265_vm1, %vm5519_vm12 }
 0x1ff   : > { %4860 = vst.msk [vmem:[#allocation2 + $0x60] sm:$0xff] %vm422_vm4, %v4846_v35  ;;  %v5151_v62 = vadd.f32 %v5102_v13, %v4864_v16  ;;  %vm10323_vm2 = vmand %vm10215_vm13, %vm5542_vm7 }
 0x200   : > { %v4830_v5 = vpop.f32.mrf.mxu1  ;;  %v7650_v6 = vpop.f32.mrf.mxu0  ;;  %v5177_v57 = vld [vmem:[#allocation2] sm:$0xff] }
 0x201   : > { %v4847_v45 = vadd.f32 %v4830_v5, %v4528_v63  ;;  %5165 = vst.msk [vmem:[#allocation2 + $0x10] sm:$0xff] %vm422_vm4, %v5151_v62  ;;  %v5198_v0 = vmul.f32 %v10177_v42, %v5177_v57 }
 0x202   : > { %v5105_v50 = vpop.f32.mrf.mxu0  ;;  %v7641_v49 = vpop.f32.mrf.mxu1 }
 0x203   : > { %4861 = vst.msk [vmem:[#allocation2 + $0x68] sm:$0xf] %vm436_vm5, %v4847_v45  ;;  %v5152_v19 = vadd.f32 %v5105_v50, %v4865_v27  ;;  %v5219_v48 = vadd.f32 %v10183_v26, %v5198_v0  ;;  %v10228_v0 = vadd.s32 2, %v10133_v7  ;;  %v4869_v27 = vld [vmem:[#allocation2 + $0x38] sm:$0xff] }
 0x204   : > { %v7651_v30 = vpop.f32.mrf.mxu0  ;;  %v5178_v44 = vld [vmem:[#allocation2 + $0x8] sm:$0xff] }
 0x205   : > { %5166 = vst.msk [vmem:[#allocation2 + $0x18] sm:$0xff] %vm422_vm4, %v5152_v19  ;;  %v5199_v25 = vmul.f32 %v10177_v42, %v5178_v44  ;;  %v5233_v4 = vmax.f32 %v5219_v48, 0.0  ;;  %vm5503_vm3 = vcmp.ge.s32.totalorder %v10228_v0, 0  ;;  %vm5509_vm10 = vcmp.lt.s32.totalorder %v10228_v0, 16 }
 0x206   : > { %v5110_v15 = vpop.f32.mrf.mxu0  ;;  %v6568_v0 = vsel %vm5884_vm0, %v10128_v33, 0 }
 0x207   : > { %v5153_v37 = vadd.f32 %v5110_v15, %v4866_v59  ;;  %v5220_v43 = vadd.f32 %v10183_v26, %v5199_v25  ;;  %v5261_v24 = vcombine.high %v5233_v4, %v5233_v4  ;;  %v5268_v12 = vrot.slane %v5233_v4, %v10190_v9 }
 0x208   : > { %v5179_v2 = vld [vmem:[#allocation2 + $0x10] sm:$0xff]  ;;  %v7654_v46 = vpop.f32.mrf.mxu0 }
 0x209   : > { %v5200_v36 = vmul.f32 %v10177_v42, %v5179_v2  ;;  %5167 = vst.msk [vmem:[#allocation2 + $0x20] sm:$0xff] %vm422_vm4, %v5153_v37  ;;  %v5234_v29 = vmax.f32 %v5220_v43, 0.0  ;;  %v5275_v58 = vrot.slane %v5261_v24, %v10190_v9  ;;  %v5276_v60 = vcombine.high %v5268_v12, %v5268_v12 }
 0x20a   : > { %v5113_v41 = vpop.f32.mrf.mxu0 }
 0x20b   : > { %v5154_v21 = vadd.f32 %v5113_v41, %v4867_v8  ;;  %v5277_v32 = vcombine.high %v5275_v58, %v5275_v58  ;;  %v5278_v11 = vcombine.high %v5234_v29, %v5234_v29  ;;  %v5285_v14 = vrot.slane %v5234_v29, %v10190_v9 }
 0x20c   : > { %v5180_v56 = vld [vmem:[#allocation2 + $0x18] sm:$0xff]  ;;  %v7655_v22 = vpop.f32.mrf.mxu0  ;;  %v5561_v31 = vcombine.low %v5268_v12, %v5276_v60  ;;  %v5221_v61 = vadd.f32 %v10183_v26, %v5200_v36  ;;  %v4870_v60 = vld [vmem:[#allocation2 + $0x40] sm:$0xff] }
 0x20d   : > { %5168 = vst.msk [vmem:[#allocation2 + $0x28] sm:$0xff] %vm422_vm4, %v5154_v21  ;;  %v5292_v23 = vrot.slane %v5278_v11, %v10190_v9  ;;  %v5293_v39 = vcombine.high %v5285_v14, %v5285_v14  ;;  %v5562_v10 = vcombine.low %v5275_v58, %v5277_v32  ;;  %v5201_v28 = vmul.f32 %v10177_v42, %v5180_v56 }
 0x20e   : > { %v5118_v55 = vpop.f32.mrf.mxu0  ;;  %v5569_v47 = vrot.slane %v5561_v31, %v10190_v9  ;;  %v5235_v1 = vmax.f32 %v5221_v61, 0.0 }
 0x20f   : > { %v5155_v38 = vadd.f32 %v5118_v55, %v4868_v52  ;;  %v5294_v18 = vcombine.high %v5292_v23, %v5292_v23  ;;  %v5576_v40 = vrot.slane %v5562_v10, %v10190_v9  ;;  %v5578_v63 = vcombine.low %v5285_v14, %v5293_v39  ;;  %v10333_v55 = vld [vmem:[%s10771_s3 + $0x8] sm:$0xf] }
 0x210   : > { %v5181_v16 = vld [vmem:[#allocation2 + $0x20] sm:$0xff]  ;;  %v7658_v13 = vpop.f32.mrf.mxu0  ;;  %v5222_v62 = vadd.f32 %v10183_v26, %v5201_v28  ;;  %v5295_v17 = vcombine.high %v5235_v1, %v5235_v1  ;;  %v10222_v5 = vrot.slane %v5235_v1, %v10190_v9 }
 0x211   : > { %5169 = vst.msk [vmem:[#allocation2 + $0x30] sm:$0xff] %vm422_vm4, %v5155_v38  ;;  %v5577_v6 = vcombine.low %v5569_v47, %v5576_v40  ;;  %v5579_v57 = vcombine.low %v5292_v23, %v5294_v18  ;;  %v5202_v45 = vmul.f32 %v10177_v42, %v5181_v16  ;;  %v5586_v25 = vrot.slane %v5578_v63, %v10190_v9  ;;  %v4871_v40 = vld [vmem:[#allocation2 + $0x48] sm:$0xff] }
 0x212   : > { %v5121_v50 = vpop.f32.mrf.mxu0  ;;  %v5236_v19 = vmax.f32 %v5222_v62, 0.0  ;;  %v5309_v48 = vrot.slane %v5295_v17, %v10190_v9  ;;  %v5310_v30 = vcombine.high %v10222_v5, %v10222_v5 }
 0x213   : > { %v5156_v44 = vadd.f32 %v5121_v50, %v4869_v27  ;;  %v5593_v4 = vrot.slane %v5579_v57, %v10190_v9  ;;  %v5223_v59 = vadd.f32 %v10183_v26, %v5202_v45  ;;  %v5825_v36 = vsel %vm10234_vm15, %v5577_v6, 0.0  ;;  %vm10309_vm15 = vmand %vm5503_vm3, %vm5509_vm10 }
 0x214   : > { %v7659_v15 = vpop.f32.mrf.mxu0  ;;  %v5311_v37 = vcombine.high %v5309_v48, %v5309_v48  ;;  %v5312_v43 = vcombine.high %v5236_v19, %v5236_v19  ;;  %v5319_v24 = vrot.slane %v5236_v19, %v10190_v9  ;;  %v5602_v12 = vcombine.low %v5310_v30, %v5309_v48  ;;  %v5182_v2 = vld [vmem:[#allocation2 + $0x28] sm:$0xff] }
 0x215   : > { %5170 = vst.msk [vmem:[#allocation2 + $0x38] sm:$0xff] %vm422_vm4, %v5156_v44  ;;  %v5594_v46 = vcombine.low %v5586_v25, %v5593_v4  ;;  %v5237_v29 = vmax.f32 %v5223_v59, 0.0  ;;  %v5203_v58 = vmul.f32 %v10177_v42, %v5182_v2  ;;  %v10295_v25 = vadd.s32 3, %v10133_v7  ;;  %v4872_v4 = vld [vmem:[#allocation2 + $0x50] sm:$0xff] }
 0x216   : > { %v5126_v8 = vpop.f32.mrf.mxu0  ;;  %v5326_v41 = vrot.slane %v5312_v43, %v10190_v9  ;;  %v5327_v21 = vcombine.high %v5319_v24, %v5319_v24  ;;  %v5603_v32 = vcombine.low %v5311_v37, %v5319_v24  ;;  %v5610_v11 = vrot.slane %v5602_v12, %v10190_v9 }
 0x217   : > { %v5157_v14 = vadd.f32 %v5126_v8, %v4870_v60  ;;  %v5826_v56 = vsel %vm10215_vm13, %v5594_v46, 0.0  ;;  %v5336_v22 = vrot.slane %v5237_v29, %v10190_v9  ;;  %v5224_v31 = vadd.f32 %v10183_v26, %v5203_v58  ;;  %vm10344_vm13 = vmand %vm10309_vm15, %vm5542_vm7 }
 0x218   : > { %v7662_v61 = vpop.f32.mrf.mxu0  ;;  %v10257_v23 = vpack.c.bf16 %v5826_v56, %v5825_v36  ;;  %v5328_v39 = vcombine.high %v5326_v41, %v5326_v41  ;;  %v5617_v10 = vrot.slane %v5603_v32, %v10190_v9  ;;  %v5619_v28 = vcombine.low %v5327_v21, %v5326_v41  ;;  %v5183_v52 = vld [vmem:[#allocation2 + $0x30] sm:$0xff] }
 0x219   : > { %5171 = vst.msk [vmem:[#allocation2 + $0x40] sm:$0xff] %vm422_vm4, %v5157_v14  ;;  %v5344_v47 = vcombine.high %v5336_v22, %v5336_v22  ;;  %v5204_v1 = vmul.f32 %v10177_v42, %v5183_v52  ;;  %v5238_v38 = vmax.f32 %v5224_v31, 0.0  ;;  %v5329_v18 = vcombine.high %v5237_v29, %v5237_v29  ;;  %v4873_v61 = vld [vmem:[#allocation2 + $0x58] sm:$0xff] }
 0x21a   : > { %v5129_v63 = vpop.f32.mrf.mxu0  ;;  %7674 = vmatprep.mubr.msk.bf16.mxu1 %vm422_vm4, %v10257_v23  ;;  %v5618_v16 = vcombine.low %v5610_v11, %v5617_v10  ;;  %v5620_v13 = vcombine.low %v5328_v39, %v5336_v22  ;;  %v5627_v27 = vrot.slane %v5619_v28, %v10190_v9  ;;  %v5601_v11 = vrot.slane %v10222_v5, %v10190_v9 }
 0x21b   : > { %v5158_v62 = vadd.f32 %v5129_v63, %v4871_v40  ;;  %v5642_v17 = vrot.slane %v5344_v47, %v10190_v9  ;;  %v5225_v6 = vadd.f32 %v10183_v26, %v5204_v1  ;;  %v5343_v57 = vrot.slane %v5329_v18, %v10190_v9 }
 0x21c   : > { %v7663_v45 = vpop.f32.mrf.mxu0  ;;  %v5634_v50 = vrot.slane %v5620_v13, %v10190_v9  ;;  %v5346_v49 = vcombine.high %v5238_v38, %v5238_v38  ;;  %v5353_v19 = vrot.slane %v5238_v38, %v10190_v9  ;;  %v5184_v12 = vld [vmem:[#allocation2 + $0x38] sm:$0xff]  ;;  %v5828_v60 = vsel %vm10290_vm11, %v5618_v16, 0.0 }
 0x21d   : > { %5172 = vst.msk [vmem:[#allocation2 + $0x48] sm:$0xff] %vm422_vm4, %v5158_v62  ;;  %v5830_v48 = vsel %vm5548_vm6, %v5642_v17, 0.0  ;;  %v5239_v30 = vmax.f32 %v5225_v6, 0.0  ;;  %v5345_v44 = vcombine.high %v5343_v57, %v5343_v57  ;;  %v5205_v31 = vmul.f32 %v10177_v42, %v5184_v12  ;;  %vm10363_vm6 = vmand %vm10309_vm15, %vm5519_vm12 }
 0x21e   : > { %v5134_v59 = vpop.f32.mrf.mxu0  ;;  %v5635_v15 = vcombine.low %v5627_v27, %v5634_v50  ;;  %v10297_v37 = vpack.c.bf16 %v5830_v48, %v5830_v48  ;;  %v5360_v43 = vrot.slane %v5346_v49, %v10190_v9  ;;  %v5361_v24 = vcombine.high %v5353_v19, %v5353_v19 }
 0x21f   : > { %v5159_v2 = vadd.f32 %v5134_v59, %v4872_v4  ;;  %v5370_v46 = vrot.slane %v5239_v30, %v10190_v9  ;;  %v5643_v36 = vcombine.low %v5343_v57, %v5345_v44  ;;  %v5363_v29 = vcombine.high %v5239_v30, %v5239_v30 }
 0x220   : > { %v7666_v58 = vpop.f32.mrf.mxu0  ;;  %v5829_v8 = vsel %vm10265_vm1, %v5635_v15, 0.0  ;;  %v5362_v41 = vcombine.high %v5360_v43, %v5360_v43  ;;  %v5185_v32 = vld [vmem:[#allocation2 + $0x40] sm:$0xff]  ;;  %v5644_v22 = vcombine.low %v5353_v19, %v5361_v24  ;;  %v5988_v5 = vshll.u32 %v10297_v37, 16 }
 0x221   : > { %5173 = vst.msk [vmem:[#allocation2 + $0x50] sm:$0xff] %vm422_vm4, %v5159_v2  ;;  %v10316_v14 = vpack.c.bf16 %v5829_v8, %v5828_v60  ;;  %v5378_v56 = vcombine.high %v5370_v46, %v5370_v46  ;;  %v5377_v28 = vrot.slane %v5363_v29, %v10190_v9  ;;  %v5206_v52 = vmul.f32 %v10177_v42, %v5185_v32  ;;  %v4875_v58 = vld [vmem:[#allocation2 + $0x68] sm:$0xf] }
 0x222   : > { %v5137_v39 = vpop.f32.mrf.mxu0  ;;  %v5660_v10 = vcombine.low %v5360_v43, %v5362_v41  ;;  %v5651_v1 = vrot.slane %v5643_v36, %v10190_v9  ;;  %v5658_v38 = vrot.slane %v5644_v22, %v10190_v9  ;;  %vm5504_vm3 = vcmp.ge.s32.totalorder %v10295_v25, 0 }
 0x223   : > { %v5160_v47 = vadd.f32 %v5137_v39, %v4873_v61  ;;  %7675 = vmatmul.mubr.msk.bf16.vlgmr.msra.gmra.mxu1 %vm422_vm4, %v10316_v14  ;;  %v5983_v35 = vshll.u32 %v10316_v14, 16  ;;  %v5981_v63 = vshrl.u32 %v10316_v14, 16  ;;  %v5661_v16 = vcombine.low %v5370_v46, %v5378_v56 }
 0x224   : > { %v7667_v40 = vpop.f32.mrf.mxu0  ;;  %7683 = vmatpush3.bf16.msra.mxu1 %v6037_v3  ;;  %v5683_v13 = vrot.slane %v5377_v28, %v10190_v9  ;;  %vm5510_vm1 = vcmp.lt.s32.totalorder %v10295_v25, 16  ;;  %v5827_v62 = vsel %vm10323_vm2, %v5601_v11, 0.0  ;;  %v5659_v6 = vcombine.low %v5651_v1, %v5658_v38  ;;  %v4874_v3 = vld [vmem:[#allocation2 + $0x60] sm:$0xff]  ;;  %v5186_v33 = vld [vmem:[#allocation2 + $0x48] sm:$0xff] }
 0x225   : > { %5174 = vst.msk [vmem:[#allocation2 + $0x58] sm:$0xff] %vm422_vm4, %v5160_v47  ;;  %v5985_v17 = vrot.slane %v5983_v35, 1  ;;  %v5226_v57 = vadd.f32 %v10183_v26, %v5205_v31  ;;  %v5227_v45 = vadd.f32 %v10183_v26, %v5206_v52  ;;  %7764 = vmatprep.subr.msk.bf16.mxu1 %vm5884_vm0, %v10333_v55  ;;  %v5668_v49 = vrot.slane %v5660_v10, %v10190_v9 }
 0x226   : > { %v5142_v27 = vpop.f32.mrf.mxu0  ;;  %v5675_v19 = vrot.slane %v5661_v16, %v10190_v9  ;;  %v5833_v54 = vsel %vm10344_vm13, %v5683_v13, 0.0  ;;  %v10372_v48 = vadd.s32 4, %v10133_v7  ;;  %v5990_v4 = vrot.slane %v5988_v5, 1 }
 0x227   : > { %v5161_v30 = vadd.f32 %v5142_v27, %v4874_v3  ;;  %v5986_v44 = vor.u32 %v5985_v17, %v5981_v63  ;;  %v10374_v59 = vpack.c.bf16 %v5827_v62, %v5827_v62  ;;  %v5379_v24 = vcombine.high %v5377_v28, %v5377_v28 }
 0x228   : > { %v7670_v15 = vpop.f32.mrf.mxu0  ;;  %v5676_v43 = vcombine.low %v5668_v49, %v5675_v19  ;;  %v5240_v12 = vmax.f32 %v5226_v57, 0.0  ;;  %v5241_v2 = vmax.f32 %v5227_v45, 0.0  ;;  %v5831_v36 = vsel %vm10363_vm6, %v5659_v6, 0.0  ;;  %v5187_v6 = vld [vmem:[#allocation2 + $0x50] sm:$0xff]  ;;  %vm10540_vm6 = vmand %vm10143_vm8, %vm5519_vm12 }
 0x229   : > { %5175 = vst.msk [vmem:[#allocation2 + $0x60] sm:$0xff] %vm422_vm4, %v5161_v30  ;;  %v10378_v46 = vsel %vm5969_vm14, %v5986_v44, %v5990_v4  ;;  %v10382_v7 = vpack.c.bf16 %v5833_v54, %v5833_v54  ;;  %v5972_v29 = vshll.u32 %v10257_v23, 16  ;;  %v5970_v35 = vshrl.u32 %v10257_v23, 16 }
 0x22a   : > { %7714 = vmatprep.mubr.msk.bf16.mxu0 %vm422_vm4, %v10378_v46  ;;  %v5145_v60 = vpop.f32.mrf.mxu0  ;;  %v5832_v8 = vsel %vm10309_vm15, %v5676_v43, 0.0  ;;  %v5380_v41 = vcombine.high %v5240_v12, %v5240_v12  ;;  %v5387_v32 = vrot.slane %v5240_v12, %v10190_v9  ;;  %v5397_v11 = vcombine.high %v5241_v2, %v5241_v2 }
 0x22b   : > { %v5162_v56 = vadd.f32 %v5145_v60, %v4875_v58  ;;  %v10390_v22 = vpack.c.bf16 %v5832_v8, %v5831_v36  ;;  %v5404_v31 = vrot.slane %v5241_v2, %v10190_v9  ;;  %v5999_v52 = vshll.u32 %v10382_v7, 16  ;;  %v10440_v36 = vld [vmem:[%s10771_s3 + $0x20] sm:$0xf] }
 0x22c   : > { %v5394_v61 = vrot.slane %v5380_v41, %v10190_v9  ;;  %v5395_v39 = vcombine.high %v5387_v32, %v5387_v32  ;;  %v5411_v5 = vrot.slane %v5397_v11, %v10190_v9  ;;  %v5684_v10 = vcombine.low %v5379_v24, %v5387_v32  ;;  %v7671_v21 = vpop.f32.mrf.mxu0  ;;  %v5188_v57 = vld [vmem:[#allocation2 + $0x58] sm:$0xff] }
 0x22d   : > { %5176 = vst.msk [vmem:[#allocation2 + $0x68] sm:$0xf] %vm436_vm5, %v5162_v56  ;;  %7678 = vmatprep.mubr.msk.bf16.mxu1 %vm422_vm4, %v10390_v22  ;;  %v5994_v28 = vshll.u32 %v10390_v22, 16  ;;  %v5412_v47 = vcombine.high %v5404_v31, %v5404_v31  ;;  %v5974_v18 = vrot.slane %v5972_v29, 1  ;;  %v5977_v40 = vshll.u32 %v10374_v59, 16  ;;  %vm10409_vm5 = vmand %vm5504_vm3, %vm5510_vm1 }
 0x22e   : > { %v5396_v1 = vcombine.high %v5394_v61, %v5394_v61  ;;  %v5685_v38 = vcombine.low %v5395_v39, %v5394_v61  ;;  %v5992_v63 = vshrl.u32 %v10390_v22, 16  ;;  %v5413_v17 = vcombine.high %v5411_v5, %v5411_v5  ;;  %vm5554_vm10 = vmand %vm10409_vm5, %vm5542_vm7 }
 0x22f   : > { %v5996_v16 = vrot.slane %v5994_v28, 1  ;;  %v5702_v62 = vcombine.low %v5412_v47, %v5411_v5  ;;  %v5692_v45 = vrot.slane %v5684_v10, %v10190_v9  ;;  %v5207_v25 = vmul.f32 %v10177_v42, %v5186_v33  ;;  %vm10432_vm11 = vmand %vm10409_vm5, %vm5519_vm12 }
 0x230   : > { %v5699_v3 = vrot.slane %v5685_v38, %v10190_v9  ;;  %v5701_v27 = vcombine.low %v5396_v1, %v5404_v31  ;;  %v6001_v49 = vrot.slane %v5999_v52, 1  ;;  %v5724_v54 = vrot.slane %v5413_v17, %v10190_v9 }
 0x231   : > { %v5997_v50 = vor.u32 %v5996_v16, %v5992_v63  ;;  %v5716_v19 = vrot.slane %v5702_v62, %v10190_v9  ;;  %v5208_v4 = vmul.f32 %v10177_v42, %v5187_v6  ;;  %v5209_v15 = vmul.f32 %v10177_v42, %v5188_v57  ;;  %v5189_v6 = vld [vmem:[#allocation2 + $0x60] sm:$0xff] }
 0x232   : > { %v5700_v30 = vcombine.low %v5692_v45, %v5699_v3  ;;  %v5709_v44 = vrot.slane %v5701_v27, %v10190_v9  ;;  %v5836_v12 = vsel %vm5554_vm10, %v5724_v54, 0.0  ;;  %v5228_v2 = vadd.f32 %v10183_v26, %v5207_v25 }
 0x233   : > { %v10426_v43 = vsel %vm5969_vm14, %v5997_v50, %v6001_v49  ;;  %v5975_v58 = vor.u32 %v5974_v18, %v5970_v35  ;;  %v5229_v60 = vadd.f32 %v10183_v26, %v5208_v4  ;;  %vm5505_vm15 = vcmp.ge.s32.totalorder %v10372_v48, 0 }
 0x234   : > { %7715 = vmatmul.mubr.msk.bf16.vlgmr.msra.gmra.mxu0 %vm422_vm4, %v10426_v43  ;;  %v5717_v29 = vcombine.low %v5709_v44, %v5716_v19  ;;  %v10446_v8 = vpack.c.bf16 %v5836_v12, %v5836_v12  ;;  %v5230_v41 = vadd.f32 %v10183_v26, %v5209_v15  ;;  %v5242_v32 = vmax.f32 %v5228_v2, 0.0  ;;  %v5190_v19 = vld [vmem:[#allocation2 + $0x68] sm:$0xf] }
 0x235   : > { %vm5511_vm2 = vcmp.lt.s32.totalorder %v10372_v48, 16  ;;  %7733 = vmatpush3.bf16.msra.mxu0 %v6568_v0  ;;  %v5834_v11 = vsel %vm10432_vm11, %v5700_v30, 0.0  ;;  %v5979_v31 = vrot.slane %v5977_v40, 1  ;;  %v5243_v61 = vmax.f32 %v5229_v60, 0.0 }
 0x236   : > { %v5835_v56 = vsel %vm10409_vm5, %v5717_v29, 0.0  ;;  %7770 = vmatprep.subr.msk.bf16.mxu0 %vm5884_vm0, %v10440_v36  ;;  %v5244_v5 = vmax.f32 %v5230_v41, 0.0  ;;  %v5414_v10 = vcombine.high %v5242_v32, %v5242_v32  ;;  %v5421_v21 = vrot.slane %v5242_v32, %v10190_v9  ;;  %vm10470_vm13 = vmand %vm5505_vm15, %vm5511_vm2  ;;  %v7249_v29 = vld [vmem:[%s10771_s3 + $0xc] sm:$0xf] }
 0x237   : > { %v10456_v39 = vpack.c.bf16 %v5835_v56, %v5834_v11  ;;  %v5980_v28 = vsel %vm5969_vm14, %v5975_v58, %v5979_v31  ;;  %v5431_v0 = vcombine.high %v5243_v61, %v5243_v61  ;;  %v5438_v52 = vrot.slane %v5243_v61, %v10190_v9  ;;  %vm5557_vm3 = vmand %vm10470_vm13, %vm5542_vm7 }
 0x238   : > { %v6010_v35 = vshll.u32 %v10446_v8, 16  ;;  %v5428_v33 = vrot.slane %v5414_v10, %v10190_v9  ;;  %v5429_v1 = vcombine.high %v5421_v21, %v5421_v21  ;;  %v5455_v63 = vrot.slane %v5244_v5, %v10190_v9  ;;  %vm10498_vm7 = vmand %vm10470_vm13, %vm5519_vm12 }
 0x239   : > { %7679 = vmatmul.mubr.msk.bf16.gmra.mxu1 %vm422_vm4, %v10456_v39  ;;  %v6005_v47 = vshll.u32 %v10456_v39, 16  ;;  %v5445_v18 = vrot.slane %v5431_v0, %v10190_v9  ;;  %v5446_v40 = vcombine.high %v5438_v52, %v5438_v52  ;;  %v6003_v16 = vshrl.u32 %v10456_v39, 16 }
 0x23a   : > { %7684 = vmatprep.mubr.msk.bf16.mxu1 %vm422_vm4, %v5980_v28  ;;  %v5430_v62 = vcombine.high %v5428_v33, %v5428_v33  ;;  %v5725_v17 = vcombine.low %v5421_v21, %v5429_v1  ;;  %v5448_v45 = vcombine.high %v5244_v5, %v5244_v5  ;;  %v5765_v3 = vrot.slane %v5455_v63, %v10190_v9 }
 0x23b   : > { %v6007_v13 = vrot.slane %v6005_v47, 1  ;;  %v5447_v57 = vcombine.high %v5445_v18, %v5445_v18  ;;  %v5742_v48 = vcombine.low %v5438_v52, %v5446_v40  ;;  %v6012_v25 = vrot.slane %v6010_v35, 1 }
 0x23c   : > { %v6164_v50 = vsel %vm5884_vm0, %v10333_v55, 0  ;;  %v5726_v49 = vcombine.low %v5428_v33, %v5430_v62  ;;  %v5463_v54 = vcombine.high %v5455_v63, %v5455_v63  ;;  %v5733_v30 = vrot.slane %v5725_v17, %v10190_v9 }
 0x23d   : > { %v6008_v27 = vor.u32 %v6007_v13, %v6003_v16  ;;  %v5743_v44 = vcombine.low %v5445_v18, %v5447_v57  ;;  %v5210_v4 = vmul.f32 %v10177_v42, %v5189_v6  ;;  %v5750_v24 = vrot.slane %v5742_v48, %v10190_v9 }
 0x23e   : > { %v5740_v15 = vrot.slane %v5726_v49, %v10190_v9  ;;  %v5839_v12 = vsel %vm5557_vm3, %v5765_v3, 0.0  ;;  %v5211_v58 = vmul.f32 %v10177_v42, %v5190_v19  ;;  %v5462_v41 = vrot.slane %v5448_v45, %v10190_v9 }
 0x23f   : > { %v10488_v34 = vsel %vm5969_vm14, %v6008_v27, %v6012_v25  ;;  %v5757_v2 = vrot.slane %v5743_v44, %v10190_v9  ;;  %v5231_v60 = vadd.f32 %v10183_v26, %v5210_v4  ;;  %v10516_v5 = vpack.c.bf16 %v5839_v12, %v5839_v12 }
 0x240   : > { %7718 = vmatprep.mubr.msk.bf16.mxu0 %vm422_vm4, %v10488_v34  ;;  %v5741_v32 = vcombine.low %v5733_v30, %v5740_v15  ;;  %v5232_v56 = vadd.f32 %v10183_v26, %v5211_v58  ;;  %v5464_v61 = vcombine.high %v5462_v41, %v5462_v41  ;;  %v5766_v10 = vcombine.low %v5463_v54, %v5462_v41 }
 0x241   : > { %7685 = vmatmul.mubr.msk.bf16.vlgmr.msra.gmra.mxu1 %vm422_vm4, %v10378_v46  ;;  %v5758_v11 = vcombine.low %v5750_v24, %v5757_v2  ;;  %v5245_v31 = vmax.f32 %v5231_v60, 0.0  ;;  %vm6128_vm1 = vcmask 1046528   ;;  %v6129_v26 = vrot.slane %v10257_v23, 1 }
 0x242   : > { %7693 = vmatpush3.bf16.msra.mxu1 %v6164_v50  ;;  %7688 = vmatprep.mubr.msk.bf16.mxu1 %vm422_vm4, %v10426_v43  ;;  %v5837_v42 = vsel %vm10498_vm7, %v5741_v32, 0.0  ;;  %v5246_v21 = vmax.f32 %v5232_v56, 0.0  ;;  %v6130_v18 = vrot.slane %v10374_v59, 1  ;;  %v6351_v40 = vshll.u32 %v10516_v5, 16 }
 0x243   : > { %7765 = vmatprep.subr.msk.bf16.mxu1 %vm5884_vm0, %v7249_v29  ;;  %v5838_v46 = vsel %vm10470_vm13, %v5758_v11, 0.0  ;;  %v5465_v28 = vcombine.high %v5245_v31, %v5245_v31  ;;  %v5472_v0 = vrot.slane %v5245_v31, %v10190_v9  ;;  %v5774_v63 = vrot.slane %v5766_v10, %v10190_v9 }
 0x244   : > { %v10523_v52 = vpack.c.bf16 %v5838_v46, %v5837_v42  ;;  %v5488_v33 = vrot.slane %v5246_v21, %v10190_v9  ;;  %v6131_v17 = vsel %vm6128_vm1, %v6129_v26, %v6130_v18  ;;  %v6353_v25 = vrot.slane %v6351_v40, 1  ;;  %v7269_v21 = vld [vmem:[%s10771_s3 + $0x1c] sm:$0xf]  ;;  %v5863_v26 = vld [vmem:[#allocation3] sm:$0xff]  ;;  %v5869_v40 = vld [vmem:[#allocation3 + $0x30] sm:$0xff] }
 0x245   : > { %v5479_v47 = vrot.slane %v5465_v28, %v10190_v9  ;;  %v5480_v35 = vcombine.high %v5472_v0, %v5472_v0  ;;  %v5767_v1 = vcombine.low %v5464_v61, %v5472_v0  ;;  %v6132_v50 = vrot.slane %v10316_v14, 1  ;;  %v5864_v18 = vld [vmem:[#allocation3 + $0x8] sm:$0xff] }
 0x246   : > { %v6346_v38 = vshll.u32 %v10523_v52, 16  ;;  %v5489_v62 = vcombine.high %v5488_v33, %v5488_v33  ;;  %v6344_v6 = vshrl.u32 %v10523_v52, 16  ;;  %v6135_v44 = vrot.slane %v10390_v22, 1 }
 0x247   : > { %v5481_v16 = vcombine.high %v5479_v47, %v5479_v47  ;;  %v5781_v13 = vrot.slane %v5767_v1, %v10190_v9  ;;  %v5783_v23 = vcombine.low %v5480_v35, %v5479_v47  ;;  %v6133_v4 = vrot.slane %v10297_v37, 1  ;;  %v7259_v37 = vld [vmem:[%s10771_s3 + $0x14] sm:$0xf]  ;;  %v5866_v35 = vld [vmem:[#allocation3 + $0x18] sm:$0xff] }
 0x248   : > { %v6348_v57 = vrot.slane %v6346_v38, 1  ;;  %v5806_v3 = vrot.slane %v5489_v62, %v10190_v9  ;;  %v6136_v24 = vrot.slane %v10382_v7, 1  ;;  %v6138_v53 = vrot.slane %v10456_v39, 1  ;;  %v5870_v62 = vld [vmem:[#allocation3 + $0x38] sm:$0xff] }
 0x249   : > { %7689 = vmatmul.mubr.msk.bf16.gmra.mxu1 %vm422_vm4, %v10488_v34  ;;  %v5782_v45 = vcombine.low %v5774_v63, %v5781_v13  ;;  %v5784_v48 = vcombine.low %v5481_v16, %v5488_v33  ;;  %v5791_v49 = vrot.slane %v5783_v23, %v10190_v9  ;;  %v6134_v20 = vsel %vm6128_vm1, %v6132_v50, %v6133_v4  ;;  %v5867_v16 = vld [vmem:[#allocation3 + $0x20] sm:$0xff] }
 0x24a   : > { %7694 = vmatprep.mubr.msk.bf16.mxu1 %vm422_vm4, %v6131_v17  ;;  %v6349_v27 = vor.u32 %v6348_v57, %v6344_v6  ;;  %v5842_v54 = vsel %vm10152_vm9, %v5806_v3, 0.0  ;;  %v6137_v2 = vsel %vm6128_vm1, %v6135_v44, %v6136_v24  ;;  %v6778_v32 = vsel %vm5884_vm0, %v10440_v36, 0  ;;  %v5868_v57 = vld [vmem:[#allocation3 + $0x28] sm:$0xff] }
 0x24b   : > { %v5798_v51 = vrot.slane %v5784_v48, %v10190_v9  ;;  %v5840_v19 = vsel %vm10540_vm6, %v5782_v45, 0.0  ;;  %v6261_v9 = vsel %vm5884_vm0, %v7249_v29, 0  ;;  %v5854_v12 = vpack.c.bf16 %v5842_v54, %v5842_v54 }
 0x24c   : > { %v6354_v30 = vsel %vm5969_vm14, %v6349_v27, %v6353_v25  ;;  %v6139_v61 = vrot.slane %v10446_v8, 1  ;;  %v6471_v8 = vsel %vm5884_vm0, %v7259_v37, 0  ;;  %v6454_v28 = vrot.slane %v10523_v52, 1 }
 0x24d   : > { %7719 = vmatmul.mubr.msk.bf16.gmra.mxu0 %vm422_vm4, %v6354_v30  ;;  %v5799_v15 = vcombine.low %v5791_v49, %v5798_v51  ;;  %v6762_v29 = vrot.slane %v5854_v12, 1  ;;  %v6658_v41 = vshll.u32 %v5854_v12, 16 }
 0x24e   : > { %7734 = vmatprep.mubr.msk.bf16.mxu0 %vm422_vm4, %v10390_v22  ;;  %v6140_v46 = vsel %vm6128_vm1, %v6138_v53, %v6139_v61 }
 0x24f   : > { %v5841_v55 = vsel %vm10143_vm8, %v5799_v15, 0.0  ;;  %v6660_v10 = vrot.slane %v6658_v41, 1 }
 0x250   : > { %v5853_v58 = vpack.c.bf16 %v5841_v55, %v5840_v19 }
 0x251   : > { %7695 = vmatmul.mubr.msk.bf16.vlgmr.msra.gmra.mxu1 %vm422_vm4, %v6134_v20 }
 0x252   : > { %7703 = vmatpush3.bf16.msra.mxu1 %v6261_v9  ;;  %7698 = vmatprep.mubr.msk.bf16.mxu1 %vm422_vm4, %v6137_v2  ;;  %v6761_v7 = vrot.slane %v5853_v58, 1  ;;  %v6653_v60 = vshll.u32 %v5853_v58, 16  ;;  %v6651_v56 = vshrl.u32 %v5853_v58, 16 }
 0x253   : > { %7767 = vmatprep.subr.msk.bf16.mxu1 %vm5884_vm0, %v7259_v37 }
 0x254   : > { %v6763_v11 = vsel %vm6128_vm1, %v6761_v7, %v6762_v29  ;;  %v6655_v31 = vrot.slane %v6653_v60, 1 }
 0x255   : > { %7735 = vmatmul.mubr.msk.bf16.vlgmr.msra.gmra.mxu0 %vm422_vm4, %v10456_v39 }
 0x256   : > { %7738 = vmatprep.mubr.msk.bf16.mxu0 %vm422_vm4, %v10523_v52  ;;  %7753 = vmatpush3.bf16.msra.mxu0 %v6778_v32  ;;  %v6656_v42 = vor.u32 %v6655_v31, %v6651_v56 }
 0x258   : > { %v6661_v36 = vsel %vm5969_vm14, %v6656_v42, %v6660_v10 }
 0x259   : > { %7699 = vmatmul.mubr.msk.bf16.gmra.mxu1 %vm422_vm4, %v6140_v46 }
 0x25a   : > { %7704 = vmatprep.mubr.msk.bf16.mxu1 %vm422_vm4, %v10316_v14  ;;  %v6455_v14 = vrot.slane %v10516_v5, 1 }
 0x25c   : > { %v6456_v0 = vsel %vm6128_vm1, %v6454_v28, %v6455_v14 }
 0x25d   : > { %7739 = vmatmul.mubr.msk.bf16.gmra.mxu0 %vm422_vm4, %v5853_v58 }
 0x25e   : > { %7754 = vmatprep.mubr.msk.bf16.mxu0 %vm422_vm4, %v6137_v2 }
 0x261   : > { %7705 = vmatmul.mubr.msk.bf16.vlgmr.msra.gmra.mxu1 %vm422_vm4, %v10390_v22  ;;  %v6676_v22 = vsel %vm5884_vm0, %v7269_v21, 0 }
 0x262   : > { %7708 = vmatprep.mubr.msk.bf16.mxu1 %vm422_vm4, %v10456_v39  ;;  %7723 = vmatpush3.bf16.msra.mxu1 %v6471_v8  ;;  %v5865_v39 = vld [vmem:[#allocation3 + $0x10] sm:$0xff] }
 0x263   : > { %7769 = vmatprep.subr.msk.bf16.mxu1 %vm5884_vm0, %v7269_v21 }
 0x265   : > { %7755 = vmatmul.mubr.msk.bf16.vlgmr.msra.gmra.mxu0 %vm422_vm4, %v6140_v46 }
 0x266   : > { %7758 = vmatprep.mubr.msk.bf16.mxu0 %vm422_vm4, %v6456_v0 }
 0x269   : > { %7709 = vmatmul.mubr.msk.bf16.gmra.mxu1 %vm422_vm4, %v10523_v52 }
 0x26a   : > { %7724 = vmatprep.mubr.msk.bf16.mxu1 %vm422_vm4, %v6134_v20 }
 0x26d   : > { %7759 = vmatmul.mubr.msk.bf16.gmra.mxu0 %vm422_vm4, %v6763_v11 }
 0x271   : > { %7725 = vmatmul.mubr.msk.bf16.vlgmr.msra.gmra.mxu1 %vm422_vm4, %v6137_v2 }
 0x272   : > { %7728 = vmatprep.mubr.msk.bf16.mxu1 %vm422_vm4, %v6140_v46  ;;  %7743 = vmatpush3.bf16.msra.mxu1 %v6676_v22 }
 0x279   : > { %7729 = vmatmul.mubr.msk.bf16.gmra.mxu1 %vm422_vm4, %v6456_v0 }
 0x27a   : > { %7744 = vmatprep.mubr.msk.bf16.mxu1 %vm422_vm4, %v10426_v43 }
 0x281   : > { %7745 = vmatmul.mubr.msk.bf16.vlgmr.msra.gmra.mxu1 %vm422_vm4, %v10488_v34 }
 0x282   : > { %7748 = vmatprep.mubr.msk.bf16.mxu1 %vm422_vm4, %v6354_v30 }
 0x289   : > { %7749 = vmatmul.mubr.msk.bf16.gmra.mxu1 %vm422_vm4, %v6661_v36 }
 0x2e3   : > { %v7676_v5 = vpop.f32.mrf.mxu1 }
 0x2e4   : > { %v5955_v52 = vadd.f32 %v7676_v5, %v5865_v39 }
 0x2e5   : > { %v5922_v47 = vpop.f32.mrf.mxu1 }
 0x2e6   : > { %5963 = vst.msk [vmem:[#allocation3 + $0x10] sm:$0xff] %vm422_vm4, %v5955_v52  ;;  %v5953_v33 = vadd.f32 %v5922_v47, %v5863_v26 }
 0x2e7   : > { %v7677_v1 = vpop.f32.mrf.mxu1 }
 0x2e8   : > { %5961 = vst.msk [vmem:[#allocation3] sm:$0xff] %vm422_vm4, %v5953_v33  ;;  %v5956_v43 = vadd.f32 %v7677_v1, %v5866_v35 }
 0x2e9   : > { %v5925_v38 = vpop.f32.mrf.mxu1 }
 0x2ea   : > { %5964 = vst.msk [vmem:[#allocation3 + $0x18] sm:$0xff] %vm422_vm4, %v5956_v43  ;;  %v5954_v34 = vadd.f32 %v5925_v38, %v5864_v18 }
 0x2ec   : > { %5962 = vst.msk [vmem:[#allocation3 + $0x8] sm:$0xff] %vm422_vm4, %v5954_v34 }
 0x2ed   : > { %v6016_v3 = vld [vmem:[#allocation3 + $0x10] sm:$0xff] }
 0x2ef   : > { %v6014_v50 = vld [vmem:[#allocation3] sm:$0xff] }
 0x2f1   : > { %v6017_v19 = vld [vmem:[#allocation3 + $0x18] sm:$0xff] }
 0x2f3   : > { %v6015_v4 = vld [vmem:[#allocation3 + $0x8] sm:$0xff] }
 0x2f4   : > { %v10625_v44 = vpop.f32.mrf.mxu0 }
 0x2f6   : > { %v10629_v55 = vpop.f32.mrf.mxu0 }
 0x2f8   : > { %v10633_v41 = vpop.f32.mrf.mxu0 }
 0x2f9   : > { %v7680_v63 = vpop.f32.mrf.mxu1 }
 0x2fa   : > { %v5959_v13 = vadd.f32 %v7680_v63, %v5869_v40  ;;  %v10637_v42 = vpop.f32.mrf.mxu0 }
 0x2fb   : > { %v5938_v23 = vpop.f32.mrf.mxu1 }
 0x2fc   : > { %5967 = vst.msk [vmem:[#allocation3 + $0x30] sm:$0xff] %vm422_vm4, %v5959_v13  ;;  %v5957_v17 = vadd.f32 %v5938_v23, %v5867_v16 }
 0x2fd   : > { %v7681_v6 = vpop.f32.mrf.mxu1 }
 0x2fe   : > { %5965 = vst.msk [vmem:[#allocation3 + $0x20] sm:$0xff] %vm422_vm4, %v5957_v17  ;;  %v5960_v59 = vadd.f32 %v7681_v6, %v5870_v62 }
 0x2ff   : > { %v5941_v45 = vpop.f32.mrf.mxu1 }
 0x300   : > { %5968 = vst.msk [vmem:[#allocation3 + $0x38] sm:$0xff] %vm422_vm4, %v5960_v59  ;;  %v5958_v48 = vadd.f32 %v5941_v45, %v5868_v57 }
 0x301   : > { %v7686_v27 = vpop.f32.mrf.mxu1 }
 0x302   : > { %5966 = vst.msk [vmem:[#allocation3 + $0x28] sm:$0xff] %vm422_vm4, %v5958_v48  ;;  %v6106_v25 = vadd.f32 %v7686_v27, %v6016_v3 }
 0x303   : > { %v6073_v49 = vpop.f32.mrf.mxu1  ;;  %v6020_v24 = vld [vmem:[#allocation3 + $0x30] sm:$0xff] }
 0x304   : > { %6114 = vst.msk [vmem:[#allocation3 + $0x10] sm:$0xff] %vm422_vm4, %v6106_v25  ;;  %v6104_v51 = vadd.f32 %v6073_v49, %v6014_v50 }
 0x305   : > { %v7687_v54 = vpop.f32.mrf.mxu1  ;;  %v6018_v37 = vld [vmem:[#allocation3 + $0x20] sm:$0xff] }
 0x306   : > { %6112 = vst.msk [vmem:[#allocation3] sm:$0xff] %vm422_vm4, %v6104_v51  ;;  %v6107_v30 = vadd.f32 %v7687_v54, %v6017_v19 }
 0x307   : > { %v6076_v15 = vpop.f32.mrf.mxu1  ;;  %v6021_v7 = vld [vmem:[#allocation3 + $0x38] sm:$0xff] }
 0x308   : > { %6115 = vst.msk [vmem:[#allocation3 + $0x18] sm:$0xff] %vm422_vm4, %v6107_v30  ;;  %v6105_v9 = vadd.f32 %v6076_v15, %v6015_v4 }
 0x309   : > { %v7690_v12 = vpop.f32.mrf.mxu1  ;;  %v6019_v53 = vld [vmem:[#allocation3 + $0x28] sm:$0xff] }
 0x30a   : > { %6113 = vst.msk [vmem:[#allocation3 + $0x8] sm:$0xff] %vm422_vm4, %v6105_v9  ;;  %v6110_v20 = vadd.f32 %v7690_v12, %v6020_v24 }
 0x30b   : > { %v6089_v2 = vpop.f32.mrf.mxu1  ;;  %v6143_v56 = vld [vmem:[#allocation3 + $0x10] sm:$0xff] }
 0x30c   : > { %6118 = vst.msk [vmem:[#allocation3 + $0x30] sm:$0xff] %vm422_vm4, %v6110_v20  ;;  %v6108_v58 = vadd.f32 %v6089_v2, %v6018_v37 }
 0x30d   : > { %v7691_v29 = vpop.f32.mrf.mxu1  ;;  %v6141_v10 = vld [vmem:[#allocation3] sm:$0xff]  ;;  %v10640_v8 = vpop.f32.mrf.mxu0 }
 0x30e   : > { %6116 = vst.msk [vmem:[#allocation3 + $0x20] sm:$0xff] %vm422_vm4, %v6108_v58  ;;  %v6111_v60 = vadd.f32 %v7691_v29, %v6021_v7 }
 0x30f   : > { %v6092_v32 = vpop.f32.mrf.mxu1  ;;  %v6144_v21 = vld [vmem:[#allocation3 + $0x18] sm:$0xff]  ;;  %v10644_v5 = vpop.f32.mrf.mxu0 }
 0x310   : > { %6119 = vst.msk [vmem:[#allocation3 + $0x38] sm:$0xff] %vm422_vm4, %v6111_v60  ;;  %v6109_v11 = vadd.f32 %v6092_v32, %v6019_v53 }
 0x311   : > { %v7696_v31 = vpop.f32.mrf.mxu1  ;;  %v6142_v0 = vld [vmem:[#allocation3 + $0x8] sm:$0xff]  ;;  %v10648_v18 = vpop.f32.mrf.mxu0 }
 0x312   : > { %6117 = vst.msk [vmem:[#allocation3 + $0x28] sm:$0xff] %vm422_vm4, %v6109_v11  ;;  %v6233_v61 = vadd.f32 %v7696_v31, %v6143_v56 }
 0x313   : > { %v6200_v46 = vpop.f32.mrf.mxu1  ;;  %v6147_v26 = vld [vmem:[#allocation3 + $0x30] sm:$0xff]  ;;  %v10652_v13 = vpop.f32.mrf.mxu0 }
 0x314   : > { %6241 = vst.msk [vmem:[#allocation3 + $0x10] sm:$0xff] %vm422_vm4, %v6233_v61  ;;  %v6231_v36 = vadd.f32 %v6200_v46, %v6141_v10 }
 0x315   : > { %v7697_v28 = vpop.f32.mrf.mxu1  ;;  %v6145_v35 = vld [vmem:[#allocation3 + $0x20] sm:$0xff]  ;;  %v10656_v45 = vpop.f32.mrf.mxu0 }
 0x316   : > { %6239 = vst.msk [vmem:[#allocation3] sm:$0xff] %vm422_vm4, %v6231_v36  ;;  %v6234_v14 = vadd.f32 %v7697_v28, %v6144_v21 }
 0x317   : > { %v6203_v22 = vpop.f32.mrf.mxu1  ;;  %v6148_v43 = vld [vmem:[#allocation3 + $0x38] sm:$0xff]  ;;  %v10660_v51 = vpop.f32.mrf.mxu0 }
 0x318   : > { %6242 = vst.msk [vmem:[#allocation3 + $0x18] sm:$0xff] %vm422_vm4, %v6234_v14  ;;  %v6232_v39 = vadd.f32 %v6203_v22, %v6142_v0 }
 0x319   : > { %v7700_v52 = vpop.f32.mrf.mxu1  ;;  %v6146_v40 = vld [vmem:[#allocation3 + $0x28] sm:$0xff]  ;;  %v10665_v20 = vpop.f32.mrf.mxu0 }
 0x31a   : > { %6240 = vst.msk [vmem:[#allocation3 + $0x8] sm:$0xff] %vm422_vm4, %v6232_v39  ;;  %v6237_v47 = vadd.f32 %v7700_v52, %v6147_v26 }
 0x31b   : > { %v6216_v33 = vpop.f32.mrf.mxu1  ;;  %v6249_v23 = vld [vmem:[#allocation3 + $0x10] sm:$0xff]  ;;  %v10673_v56 = vpop.f32.mrf.mxu0 }
 0x31c   : > { %6245 = vst.msk [vmem:[#allocation3 + $0x30] sm:$0xff] %vm422_vm4, %v6237_v47  ;;  %v6235_v1 = vadd.f32 %v6216_v33, %v6145_v35 }
 0x31d   : > { %v7701_v38 = vpop.f32.mrf.mxu1  ;;  %v6247_v6 = vld [vmem:[#allocation3] sm:$0xff]  ;;  %v7740_v21 = vpop.f32.mrf.mxu0 }
 0x31e   : > { %6243 = vst.msk [vmem:[#allocation3 + $0x20] sm:$0xff] %vm422_vm4, %v6235_v1  ;;  %v6238_v34 = vadd.f32 %v7701_v38, %v6148_v43 }
 0x31f   : > { %v6219_v63 = vpop.f32.mrf.mxu1  ;;  %v6250_v48 = vld [vmem:[#allocation3 + $0x18] sm:$0xff] }
 0x320   : > { %6246 = vst.msk [vmem:[#allocation3 + $0x38] sm:$0xff] %vm422_vm4, %v6238_v34  ;;  %v6236_v16 = vadd.f32 %v6219_v63, %v6146_v40 }
 0x321   : > { %v7706_v62 = vpop.f32.mrf.mxu1  ;;  %v6248_v25 = vld [vmem:[#allocation3 + $0x8] sm:$0xff] }
 0x322   : > { %6244 = vst.msk [vmem:[#allocation3 + $0x28] sm:$0xff] %vm422_vm4, %v6236_v16  ;;  %v6330_v17 = vadd.f32 %v7706_v62, %v6249_v23 }
 0x323   : > { %v6297_v57 = vpop.f32.mrf.mxu1  ;;  %v6253_v19 = vld [vmem:[#allocation3 + $0x30] sm:$0xff] }
 0x324   : > { %6338 = vst.msk [vmem:[#allocation3 + $0x10] sm:$0xff] %vm422_vm4, %v6330_v17  ;;  %v6328_v59 = vadd.f32 %v6297_v57, %v6247_v6 }
 0x325   : > { %v7707_v3 = vpop.f32.mrf.mxu1  ;;  %v6251_v4 = vld [vmem:[#allocation3 + $0x20] sm:$0xff] }
 0x326   : > { %6336 = vst.msk [vmem:[#allocation3] sm:$0xff] %vm422_vm4, %v6328_v59  ;;  %v6331_v27 = vadd.f32 %v7707_v3, %v6250_v48 }
 0x327   : > { %v6300_v50 = vpop.f32.mrf.mxu1  ;;  %v6254_v37 = vld [vmem:[#allocation3 + $0x38] sm:$0xff] }
 0x328   : > { %6339 = vst.msk [vmem:[#allocation3 + $0x18] sm:$0xff] %vm422_vm4, %v6331_v27  ;;  %v6329_v49 = vadd.f32 %v6300_v50, %v6248_v25 }
 0x329   : > { %v7710_v54 = vpop.f32.mrf.mxu1  ;;  %v6252_v60 = vld [vmem:[#allocation3 + $0x28] sm:$0xff] }
 0x32a   : > { %6337 = vst.msk [vmem:[#allocation3 + $0x8] sm:$0xff] %vm422_vm4, %v6329_v49  ;;  %v6334_v30 = vadd.f32 %v7710_v54, %v6253_v19 }
 0x32b   : > { %v6313_v15 = vpop.f32.mrf.mxu1  ;;  %v6357_v9 = vld [vmem:[#allocation3 + $0x10] sm:$0xff] }
 0x32c   : > { %6342 = vst.msk [vmem:[#allocation3 + $0x30] sm:$0xff] %vm422_vm4, %v6334_v30  ;;  %v6332_v24 = vadd.f32 %v6313_v15, %v6251_v4  ;;  %v6438_v12 = vadd.f32 %v10625_v44, %v6357_v9 }
 0x32d   : > { %v7711_v2 = vpop.f32.mrf.mxu1  ;;  %v6355_v58 = vld [vmem:[#allocation3] sm:$0xff] }
 0x32e   : > { %6340 = vst.msk [vmem:[#allocation3 + $0x20] sm:$0xff] %vm422_vm4, %v6332_v24  ;;  %v6335_v7 = vadd.f32 %v7711_v2, %v6254_v37  ;;  %6446 = vst.msk [vmem:[#allocation3 + $0x10] sm:$0xff] %vm422_vm4, %v6438_v12  ;;  %v6436_v29 = vadd.f32 %v10629_v55, %v6355_v58 }
 0x32f   : > { %v6316_v53 = vpop.f32.mrf.mxu1  ;;  %v6358_v32 = vld [vmem:[#allocation3 + $0x18] sm:$0xff] }
 0x330   : > { %6343 = vst.msk [vmem:[#allocation3 + $0x38] sm:$0xff] %vm422_vm4, %v6335_v7  ;;  %v6333_v11 = vadd.f32 %v6316_v53, %v6252_v60  ;;  %6444 = vst.msk [vmem:[#allocation3] sm:$0xff] %vm422_vm4, %v6436_v29  ;;  %v6439_v44 = vadd.f32 %v10633_v41, %v6358_v32 }
 0x331   : > { %v7726_v31 = vpop.f32.mrf.mxu1  ;;  %v6356_v61 = vld [vmem:[#allocation3 + $0x8] sm:$0xff] }
 0x332   : > { %6341 = vst.msk [vmem:[#allocation3 + $0x28] sm:$0xff] %vm422_vm4, %v6333_v11  ;;  %6447 = vst.msk [vmem:[#allocation3 + $0x18] sm:$0xff] %vm422_vm4, %v6439_v44  ;;  %v6437_v55 = vadd.f32 %v10637_v42, %v6356_v61 }
 0x333   : > { %v6507_v10 = vpop.f32.mrf.mxu1  ;;  %v6361_v46 = vld [vmem:[#allocation3 + $0x30] sm:$0xff] }
 0x334   : > { %6445 = vst.msk [vmem:[#allocation3 + $0x8] sm:$0xff] %vm422_vm4, %v6437_v55  ;;  %v6442_v36 = vadd.f32 %v10640_v8, %v6361_v46  ;;  %v6620_v8 = vpop.f32.mrf.mxu0 }
 0x335   : > { %v6459_v28 = vld [vmem:[#allocation3 + $0x10] sm:$0xff]  ;;  %v7727_v14 = vpop.f32.mrf.mxu1  ;;  %v6359_v41 = vld [vmem:[#allocation3 + $0x20] sm:$0xff] }
 0x336   : > { %v6540_v0 = vadd.f32 %v7726_v31, %v6459_v28  ;;  %6450 = vst.msk [vmem:[#allocation3 + $0x30] sm:$0xff] %vm422_vm4, %v6442_v36  ;;  %v6440_v22 = vadd.f32 %v10644_v5, %v6359_v41  ;;  %v7741_v63 = vpop.f32.mrf.mxu0 }
 0x337   : > { %v6457_v39 = vld [vmem:[#allocation3] sm:$0xff]  ;;  %v6510_v26 = vpop.f32.mrf.mxu1  ;;  %v6362_v52 = vld [vmem:[#allocation3 + $0x38] sm:$0xff] }
 0x338   : > { %6548 = vst.msk [vmem:[#allocation3 + $0x10] sm:$0xff] %vm422_vm4, %v6540_v0  ;;  %v6538_v42 = vadd.f32 %v6507_v10, %v6457_v39  ;;  %6448 = vst.msk [vmem:[#allocation3 + $0x20] sm:$0xff] %vm422_vm4, %v6440_v22  ;;  %v6443_v47 = vadd.f32 %v10648_v18, %v6362_v52  ;;  %v6623_v59 = vpop.f32.mrf.mxu0 }
 0x339   : > { %v6460_v35 = vld [vmem:[#allocation3 + $0x18] sm:$0xff]  ;;  %v7730_v33 = vpop.f32.mrf.mxu1  ;;  %v6360_v1 = vld [vmem:[#allocation3 + $0x28] sm:$0xff] }
 0x33a   : > { %6546 = vst.msk [vmem:[#allocation3] sm:$0xff] %vm422_vm4, %v6538_v42  ;;  %v6541_v43 = vadd.f32 %v7727_v14, %v6460_v35  ;;  %6451 = vst.msk [vmem:[#allocation3 + $0x38] sm:$0xff] %vm422_vm4, %v6443_v47  ;;  %v6441_v5 = vadd.f32 %v10652_v13, %v6360_v1  ;;  %v7756_v4 = vpop.f32.mrf.mxu0 }
 0x33b   : > { %v6458_v38 = vld [vmem:[#allocation3 + $0x8] sm:$0xff]  ;;  %v6523_v34 = vpop.f32.mrf.mxu1 }
 0x33c   : > { %6549 = vst.msk [vmem:[#allocation3 + $0x18] sm:$0xff] %vm422_vm4, %v6541_v43  ;;  %v6539_v40 = vadd.f32 %v6510_v26, %v6458_v38  ;;  %6449 = vst.msk [vmem:[#allocation3 + $0x28] sm:$0xff] %vm422_vm4, %v6441_v5  ;;  %v6814_v2 = vpop.f32.mrf.mxu0 }
 0x33d   : > { %v6463_v18 = vld [vmem:[#allocation3 + $0x30] sm:$0xff]  ;;  %v7731_v16 = vpop.f32.mrf.mxu1 }
 0x33e   : > { %6547 = vst.msk [vmem:[#allocation3 + $0x8] sm:$0xff] %vm422_vm4, %v6539_v40  ;;  %v6544_v23 = vadd.f32 %v7730_v33, %v6463_v18 }
 0x33f   : > { %v6461_v62 = vld [vmem:[#allocation3 + $0x20] sm:$0xff]  ;;  %v6526_v17 = vpop.f32.mrf.mxu1  ;;  %v6556_v6 = vld [vmem:[#allocation3 + $0x10] sm:$0xff] }
 0x340   : > { %6552 = vst.msk [vmem:[#allocation3 + $0x30] sm:$0xff] %vm422_vm4, %v6544_v23  ;;  %v6542_v57 = vadd.f32 %v6523_v34, %v6461_v62  ;;  %v6637_v13 = vadd.f32 %v10656_v45, %v6556_v6 }
 0x341   : > { %v6464_v48 = vld [vmem:[#allocation3 + $0x38] sm:$0xff]  ;;  %v7746_v3 = vpop.f32.mrf.mxu1  ;;  %v6554_v27 = vld [vmem:[#allocation3] sm:$0xff] }
 0x342   : > { %6550 = vst.msk [vmem:[#allocation3 + $0x20] sm:$0xff] %vm422_vm4, %v6542_v57  ;;  %v6545_v25 = vadd.f32 %v7731_v16, %v6464_v48  ;;  %6645 = vst.msk [vmem:[#allocation3 + $0x10] sm:$0xff] %vm422_vm4, %v6637_v13  ;;  %v6635_v50 = vadd.f32 %v10660_v51, %v6554_v27  ;;  %v7279_v16 = vld [vmem:[%s10774_s6] ss:$0 sm:$0xff] }
 0x343   : > { %v6462_v49 = vld [vmem:[#allocation3 + $0x28] sm:$0xff]  ;;  %v6712_v19 = vpop.f32.mrf.mxu1  ;;  %v6557_v54 = vld [vmem:[#allocation3 + $0x18] sm:$0xff]  ;;  %v7280_v57 = vld [vmem:[%s10775_s7] ss:$0 sm:$0xff] }
 0x344   : > { %6553 = vst.msk [vmem:[#allocation3 + $0x38] sm:$0xff] %vm422_vm4, %v6545_v25  ;;  %v6543_v30 = vadd.f32 %v6526_v17, %v6462_v49  ;;  %6643 = vst.msk [vmem:[#allocation3] sm:$0xff] %vm422_vm4, %v6635_v50  ;;  %v6638_v45 = vadd.f32 %v10665_v20, %v6557_v54 }
 0x345   : > { %v7747_v15 = vpop.f32.mrf.mxu1  ;;  %v6555_v9 = vld [vmem:[#allocation3 + $0x8] sm:$0xff] }
 0x346   : > { %6551 = vst.msk [vmem:[#allocation3 + $0x28] sm:$0xff] %vm422_vm4, %v6543_v30  ;;  %6646 = vst.msk [vmem:[#allocation3 + $0x18] sm:$0xff] %vm422_vm4, %v6638_v45  ;;  %v6636_v24 = vadd.f32 %v10673_v56, %v6555_v9  ;;  %v7757_v56 = vpop.f32.mrf.mxu0 }
 0x347   : > { %v6715_v51 = vpop.f32.mrf.mxu1  ;;  %v6560_v12 = vld [vmem:[#allocation3 + $0x30] sm:$0xff] }
 0x348   : > { %6644 = vst.msk [vmem:[#allocation3 + $0x8] sm:$0xff] %vm422_vm4, %v6636_v24  ;;  %v6641_v37 = vadd.f32 %v7740_v21, %v6560_v12  ;;  %v6817_v28 = vpop.f32.mrf.mxu0 }
 0x349   : > { %v6664_v58 = vld [vmem:[#allocation3 + $0x10] sm:$0xff]  ;;  %v6558_v7 = vld [vmem:[#allocation3 + $0x20] sm:$0xff]  ;;  %v7750_v53 = vpop.f32.mrf.mxu1 }
 0x34a   : > { %v6745_v29 = vadd.f32 %v7746_v3, %v6664_v58  ;;  %6649 = vst.msk [vmem:[#allocation3 + $0x30] sm:$0xff] %vm422_vm4, %v6641_v37  ;;  %v6639_v20 = vadd.f32 %v6620_v8, %v6558_v7  ;;  %v7760_v42 = vpop.f32.mrf.mxu0 }
 0x34b   : > { %v6662_v60 = vld [vmem:[#allocation3] sm:$0xff]  ;;  %v6561_v32 = vld [vmem:[#allocation3 + $0x38] sm:$0xff]  ;;  %v6728_v36 = vpop.f32.mrf.mxu1 }
 0x34c   : > { %6753 = vst.msk [vmem:[#allocation3 + $0x10] sm:$0xff] %vm422_vm4, %v6745_v29  ;;  %v6743_v11 = vadd.f32 %v6712_v19, %v6662_v60  ;;  %6647 = vst.msk [vmem:[#allocation3 + $0x20] sm:$0xff] %vm422_vm4, %v6639_v20  ;;  %v6642_v44 = vadd.f32 %v7741_v63, %v6561_v32  ;;  %v6830_v40 = vpop.f32.mrf.mxu0 }
 0x34d   : > { %v6665_v31 = vld [vmem:[#allocation3 + $0x18] sm:$0xff]  ;;  %v6559_v61 = vld [vmem:[#allocation3 + $0x28] sm:$0xff]  ;;  %v7751_v39 = vpop.f32.mrf.mxu1 }
 0x34e   : > { %6751 = vst.msk [vmem:[#allocation3] sm:$0xff] %vm422_vm4, %v6743_v11  ;;  %v6746_v55 = vadd.f32 %v7747_v15, %v6665_v31  ;;  %6650 = vst.msk [vmem:[#allocation3 + $0x38] sm:$0xff] %vm422_vm4, %v6642_v44  ;;  %v6640_v10 = vadd.f32 %v6623_v59, %v6559_v61  ;;  %v7761_v17 = vpop.f32.mrf.mxu0 }
 0x34f   : > { %v6663_v46 = vld [vmem:[#allocation3 + $0x8] sm:$0xff]  ;;  %v6731_v5 = vpop.f32.mrf.mxu1 }
 0x350   : > { %6754 = vst.msk [vmem:[#allocation3 + $0x18] sm:$0xff] %vm422_vm4, %v6746_v55  ;;  %v6744_v21 = vadd.f32 %v6715_v51, %v6663_v46  ;;  %6648 = vst.msk [vmem:[#allocation3 + $0x28] sm:$0xff] %vm422_vm4, %v6640_v10  ;;  %v6833_v19 = vpop.f32.mrf.mxu0 }
 0x351   : > { %v6668_v14 = vld [vmem:[#allocation3 + $0x30] sm:$0xff] }
 0x352   : > { %6752 = vst.msk [vmem:[#allocation3 + $0x8] sm:$0xff] %vm422_vm4, %v6744_v21  ;;  %v6749_v41 = vadd.f32 %v7750_v53, %v6668_v14 }
 0x353   : > { %v6766_v0 = vld [vmem:[#allocation3 + $0x10] sm:$0xff]  ;;  %v6666_v22 = vld [vmem:[#allocation3 + $0x20] sm:$0xff] }
 0x354   : > { %v6847_v26 = vadd.f32 %v7756_v4, %v6766_v0  ;;  %6757 = vst.msk [vmem:[#allocation3 + $0x30] sm:$0xff] %vm422_vm4, %v6749_v41  ;;  %v6747_v52 = vadd.f32 %v6728_v36, %v6666_v22 }
 0x355   : > { %v6764_v47 = vld [vmem:[#allocation3] sm:$0xff]  ;;  %v6669_v8 = vld [vmem:[#allocation3 + $0x38] sm:$0xff] }
 0x356   : > { %6855 = vst.msk [vmem:[#allocation3 + $0x10] sm:$0xff] %vm422_vm4, %v6847_v26  ;;  %v6845_v35 = vadd.f32 %v6814_v2, %v6764_v47  ;;  %6755 = vst.msk [vmem:[#allocation3 + $0x20] sm:$0xff] %vm422_vm4, %v6747_v52  ;;  %v6750_v33 = vadd.f32 %v7751_v39, %v6669_v8 }
 0x357   : > { %v6767_v1 = vld [vmem:[#allocation3 + $0x18] sm:$0xff]  ;;  %v6667_v43 = vld [vmem:[#allocation3 + $0x28] sm:$0xff] }
 0x358   : > { %6853 = vst.msk [vmem:[#allocation3] sm:$0xff] %vm422_vm4, %v6845_v35  ;;  %v6848_v38 = vadd.f32 %v7757_v56, %v6767_v1  ;;  %6758 = vst.msk [vmem:[#allocation3 + $0x38] sm:$0xff] %vm422_vm4, %v6750_v33  ;;  %v6748_v34 = vadd.f32 %v6731_v5, %v6667_v43 }
 0x359   : > { %v6765_v63 = vld [vmem:[#allocation3 + $0x8] sm:$0xff] }
 0x35a   : > { %6856 = vst.msk [vmem:[#allocation3 + $0x18] sm:$0xff] %vm422_vm4, %v6848_v38  ;;  %v6846_v18 = vadd.f32 %v6817_v28, %v6765_v63  ;;  %6756 = vst.msk [vmem:[#allocation3 + $0x28] sm:$0xff] %vm422_vm4, %v6748_v34 }
 0x35b   : > { %v6770_v23 = vld [vmem:[#allocation3 + $0x30] sm:$0xff] }
 0x35c   : > { %6854 = vst.msk [vmem:[#allocation3 + $0x8] sm:$0xff] %vm422_vm4, %v6846_v18  ;;  %v6851_v62 = vadd.f32 %v7760_v42, %v6770_v23 }
 0x35d   : > { %v6863_v6 = vld [vmem:[#allocation3 + $0x10] sm:$0xff]  ;;  %v6768_v13 = vld [vmem:[#allocation3 + $0x20] sm:$0xff] }
 0x35e   : > { %v6878_v59 = vmul.f32 %v7279_v16, %v6863_v6  ;;  %6859 = vst.msk [vmem:[#allocation3 + $0x30] sm:$0xff] %vm422_vm4, %v6851_v62  ;;  %v6849_v48 = vadd.f32 %v6830_v40, %v6768_v13 }
 0x35f   : > { %v6861_v3 = vld [vmem:[#allocation3] sm:$0xff]  ;;  %v6771_v27 = vld [vmem:[#allocation3 + $0x38] sm:$0xff] }
 0x360   : > { %v6893_v25 = vadd.f32 %v7280_v57, %v6878_v59  ;;  %v6876_v50 = vmul.f32 %v7279_v16, %v6861_v3  ;;  %6857 = vst.msk [vmem:[#allocation3 + $0x20] sm:$0xff] %vm422_vm4, %v6849_v48  ;;  %v6852_v49 = vadd.f32 %v7761_v17, %v6771_v27 }
 0x361   : > { %v6864_v54 = vld [vmem:[#allocation3 + $0x18] sm:$0xff]  ;;  %v6769_v30 = vld [vmem:[#allocation3 + $0x28] sm:$0xff] }
 0x362   : > { %v6901_v45 = vmax.f32 %v6893_v25, 0.0  ;;  %v6891_v4 = vadd.f32 %v7280_v57, %v6876_v50  ;;  %v6879_v15 = vmul.f32 %v7279_v16, %v6864_v54  ;;  %6860 = vst.msk [vmem:[#allocation3 + $0x38] sm:$0xff] %vm422_vm4, %v6852_v49  ;;  %v6850_v9 = vadd.f32 %v6833_v19, %v6769_v30 }
 0x363   : > { %v6862_v24 = vld [vmem:[#allocation3 + $0x8] sm:$0xff] }
 0x364   : > { %6909 = vst.msk [vmem:[%s10733_s19 + $0x10] sm:$0xff] %vm422_vm4, %v6901_v45  ;;  %v6899_v51 = vmax.f32 %v6891_v4, 0.0  ;;  %v6894_v12 = vadd.f32 %v7280_v57, %v6879_v15  ;;  %v6877_v37 = vmul.f32 %v7279_v16, %v6862_v24  ;;  %6858 = vst.msk [vmem:[#allocation3 + $0x28] sm:$0xff] %vm422_vm4, %v6850_v9 }
 0x365   : > { %v6867_v2 = vld [vmem:[#allocation3 + $0x30] sm:$0xff] }
 0x366   : > { %6907 = vst.msk [vmem:[%s10733_s19] sm:$0xff] %vm422_vm4, %v6899_v51  ;;  %v6902_v58 = vmax.f32 %v6894_v12, 0.0  ;;  %v6892_v7 = vadd.f32 %v7280_v57, %v6877_v37  ;;  %v6882_v29 = vmul.f32 %v7279_v16, %v6867_v2 }
 0x367   : > { %v6865_v20 = vld [vmem:[#allocation3 + $0x20] sm:$0xff] }
 0x368   : > { %6910 = vst.msk [vmem:[%s10733_s19 + $0x18] sm:$0xff] %vm422_vm4, %v6902_v58  ;;  %v6900_v60 = vmax.f32 %v6892_v7, 0.0  ;;  %v6897_v53 = vadd.f32 %v7280_v57, %v6882_v29  ;;  %v6880_v32 = vmul.f32 %v7279_v16, %v6865_v20 }
 0x369   : > { %v6868_v11 = vld [vmem:[#allocation3 + $0x38] sm:$0xff] }
 0x36a   : > { %6908 = vst.msk [vmem:[%s10733_s19 + $0x8] sm:$0xff] %vm422_vm4, %v6900_v60  ;;  %v6905_v44 = vmax.f32 %v6897_v53, 0.0  ;;  %v6895_v56 = vadd.f32 %v7280_v57, %v6880_v32  ;;  %v6883_v31 = vmul.f32 %v7279_v16, %v6868_v11 }
 0x36b   : > { %v6866_v61 = vld [vmem:[#allocation3 + $0x28] sm:$0xff] }
 0x36c   : > { %6913 = vst.msk [vmem:[%s10733_s19 + $0x30] sm:$0xff] %vm422_vm4, %v6905_v44  ;;  %v6903_v55 = vmax.f32 %v6895_v56, 0.0  ;;  %v6898_v10 = vadd.f32 %v7280_v57, %v6883_v31  ;;  %v6881_v46 = vmul.f32 %v7279_v16, %v6866_v61 }
 0x36e   : > { %6911 = vst.msk [vmem:[%s10733_s19 + $0x20] sm:$0xff] %vm422_vm4, %v6903_v55  ;;  %v6906_v36 = vmax.f32 %v6898_v10, 0.0  ;;  %v6896_v21 = vadd.f32 %v7280_v57, %v6881_v46 }
 0x370   : > { %6914 = vst.msk [vmem:[%s10733_s19 + $0x38] sm:$0xff] %vm422_vm4, %v6906_v36  ;;  %v6904_v28 = vmax.f32 %v6896_v21, 0.0 }
 0x372   : > { %6912 = vst.msk [vmem:[%s10733_s19 + $0x28] sm:$0xff] %vm422_vm4, %v6904_v28 }
 0x373 PF: > { %s18_s9 = sadd.s32 1, %s7856_s9   ;;  %s11114_s27 = smov %s7848_s29 }
 0x374   : > { %p15_p9 = scmp.ge.s32.totalorder %s18_s9, 10   ;;  %s11115_s28 = smov %s7852_s30 }
 0x375   : > { %s11116_s29 = smov %s11119_s10  ;;  %s11117_s30 = smov %s11123_s11 }
 0x376   :  { %17 = sbr.rel (!%p15_p9) target bundleno = 3 (0x3), region = 101 }

</bundles_post_ra>
